<compile_context>
chip_gen: v7x
topology: tpu7x:2x2x1
jax: 0.10.0
libtpu: 0.0.40
codegen_flags: <defaults>
</compile_context>

<pallas_src>
import functools

import numpy as np
import jax
import jax.numpy as jnp
from jax.experimental import pallas as pl
from jax.experimental.pallas import tpu as pltpu


# ---------------------------------------------------------------------------
# Pallas kernel: fused gate GEMM + nonlinearities + LSTM cell update
# ---------------------------------------------------------------------------
def convlstm3d_cell_kernel(lin_ref, patches_ref, cx_ref, wh_ref, hy_ref, cy_ref):
    """One row-block of the fused ConvLSTM3D cell update.

    lin_ref     : (RB, 3C) f32   FC gate term + bias (accumulator init)
    patches_ref : (RB, K^3*C) bf16  im2col of the padded hidden state
    cx_ref      : (RB, C) f32    cell state
    wh_ref      : (K^3*C, 3C) bf16  fused conv weights for all 3 gates
    hy_ref, cy_ref : (RB, C) f32 outputs
    Rows are ordered (d, h, w, b); gate columns are [input | forget | output].
    """
    C = cx_ref.shape[-1]

    # One wide MXU matmul for all taps and all three gates, f32 accumulation.
    gates = lin_ref[...] + jnp.dot(
        patches_ref[...], wh_ref[...], preferred_element_type=jnp.float32)

    input_gate = jax.nn.sigmoid(gates[:, 0:C])
    forget_gate = jax.nn.sigmoid(gates[:, C:2 * C])
    output_gate = jnp.tanh(gates[:, 2 * C:3 * C])

    cy = forget_gate * cx_ref[...] + input_gate * output_gate
    cy_ref[...] = cy
    hy_ref[...] = jnp.tanh(cy)


# ---------------------------------------------------------------------------
# Wrapper: layout glue (im2col, FC gate term, weight fusion) + pallas_call
# ---------------------------------------------------------------------------
def convlstm3d_forward(encoder_out, hidden, params, *, grid_size, kernel_size,
                       row_block=None):
    """encoder_out: (B, F);  hidden = (hx, cx) each (B, C, G, G, G)."""
    hx, cx = hidden
    B, C = hx.shape[0], hx.shape[1]
    G, K = grid_size, kernel_size
    P = K // 2
    S = G ** 3
    R = S * B                      # rows, ordered (d, h, w, b)
    gate_names = ("input", "forget", "output")

    # --- FC gate term (bias folded), computed as one well-shaped XLA GEMM ---
    def fc_gate(p):
        y = jnp.dot(encoder_out, p["W_lin"].T,
                    precision=jax.lax.Precision.HIGHEST) + p["b_lin"]   # (B, C*S)
        y = y.reshape(B, C, G, G, G)
        return jnp.transpose(y, (2, 3, 4, 0, 1)).reshape(R, C)          # rows=(d,h,w,b)

    lin = jnp.concatenate([fc_gate(params[n]) for n in gate_names], axis=-1)  # (R, 3C) f32

    # --- fused conv weights: (K^3*C, 3C), bf16 for the MXU ---
    def conv_w(p):
        # nn.Conv3d weight (Cout, Cin, kd, kh, kw) -> rows = (tap, Cin), cols = Cout
        return p["W_conv"].transpose(2, 3, 4, 1, 0).reshape(K ** 3 * C, C)

    wh = jnp.concatenate([conv_w(params[n]) for n in gate_names],
                         axis=-1).astype(jnp.bfloat16)                  # (K^3*C, 3C)

    # --- im2col of the padded hidden state: (R, K^3*C), bf16 ---
    hxp = jnp.pad(hx, ((0, 0), (0, 0), (P, P), (P, P), (P, P)))
    taps = [hxp[:, :, kd:kd + G, kh:kh + G, kw:kw + G]
            for kd in range(K) for kh in range(K) for kw in range(K)]   # (B,C,G,G,G) each
    patches = jnp.stack(taps, axis=0)                                   # (K^3,B,C,G,G,G)
    patches = jnp.transpose(patches, (3, 4, 5, 1, 0, 2)).reshape(R, K ** 3 * C)
    patches = patches.astype(jnp.bfloat16)

    cx2 = jnp.transpose(cx, (2, 3, 4, 0, 1)).reshape(R, C)              # (R, C) f32

    # --- row tiling: parallel grid over row blocks (both TCs on v7x) ---
    if row_block is None:
        row_block = R // 2 if (R >= 128 and (R // 2) % 8 == 0) else R
    assert R % row_block == 0 and row_block % 8 == 0
    n_blocks = R // row_block
    K3C = K ** 3 * C

    out_sd = jax.ShapeDtypeStruct((R, C), jnp.float32)
    hy2, cy2 = pl.pallas_call(
        convlstm3d_cell_kernel,
        out_shape=(out_sd, out_sd),
        grid=(n_blocks,),
        in_specs=[
            pl.BlockSpec((row_block, 3 * C), lambda i: (i, 0)),   # lin
            pl.BlockSpec((row_block, K3C), lambda i: (i, 0)),     # patches
            pl.BlockSpec((row_block, C), lambda i: (i, 0)),       # cx
            pl.BlockSpec((K3C, 3 * C), lambda i: (0, 0)),         # fused conv weights
        ],
        out_specs=(pl.BlockSpec((row_block, C), lambda i: (i, 0)),
                   pl.BlockSpec((row_block, C), lambda i: (i, 0))),
        compiler_params=pltpu.CompilerParams(dimension_semantics=("parallel",)),
    )(lin, patches, cx2, wh)

    def unflatten(y2):  # (R, C) rows=(d,h,w,b) -> (B, C, G, G, G)
        return jnp.transpose(y2.reshape(G, G, G, B, C), (3, 4, 0, 1, 2))

    return unflatten(hy2), unflatten(cy2)


# ---------------------------------------------------------------------------
# Pure-JAX reference (PyTorch NCDHW semantics, f32 HIGHEST precision)
# ---------------------------------------------------------------------------
def convlstm3d_reference(encoder_out, hidden, params, *, grid_size, kernel_size):
    hx, cx = hidden
    B, C = hx.shape[0], hx.shape[1]
    G = grid_size

    def gate(p):
        lin = jnp.dot(encoder_out, p["W_lin"].T,
                      precision=jax.lax.Precision.HIGHEST) + p["b_lin"]
        lin = lin.reshape(B, C, G, G, G)
        conv = jax.lax.conv_general_dilated(
            hx, p["W_conv"], window_strides=(1, 1, 1), padding="SAME",
            dimension_numbers=("NCDHW", "OIDHW", "NCDHW"),
            precision=jax.lax.Precision.HIGHEST)
        return lin + conv

    ig = jax.nn.sigmoid(gate(params["input"]))
    fg = jax.nn.sigmoid(gate(params["forget"]))
    og = jnp.tanh(gate(params["output"]))
    cy = fg * cx + ig * og
    hy = jnp.tanh(cy)
    return hy, cy


# ---------------------------------------------------------------------------
# Deterministic parameter init (synthetic; shapes follow the module __init__)
# ---------------------------------------------------------------------------
def make_params(key, fan_in, hidden, grid, ksize, scale=0.01):
    params = {}
    for name in ("input", "forget", "output"):
        key, k1, k2, k3 = jax.random.split(key, 4)
        params[name] = {
            "W_lin": scale * jax.random.normal(k1, (hidden * grid ** 3, fan_in), jnp.float32),
            "b_lin": scale * jax.random.normal(k2, (hidden * grid ** 3,), jnp.float32),
            "W_conv": scale * jax.random.normal(k3, (hidden, hidden, ksize, ksize, ksize),
                                                jnp.float32),
        }
    return params


if __name__ == "__main__":
    # Module's real voxel/hidden shape (B, 128, 4, 4, 4); smaller fan_in to keep
    # the synthetic FC weights small.
    B, FAN_IN, HIDDEN, GRID, KSIZE = 2, 256, 128, 4, 3

    key = jax.random.PRNGKey(0)
    kx, kh, kc, kp = jax.random.split(key, 4)
    encoder_out = jax.random.normal(kx, (B, FAN_IN), jnp.float32)
    hx = jax.random.normal(kh, (B, HIDDEN, GRID, GRID, GRID), jnp.float32)
    cx = jax.random.normal(kc, (B, HIDDEN, GRID, GRID, GRID), jnp.float32)
    params = make_params(kp, FAN_IN, HIDDEN, GRID, KSIZE)

    fwd = jax.jit(functools.partial(convlstm3d_forward,
                                    grid_size=GRID, kernel_size=KSIZE))
    hy, cy = fwd(encoder_out, (hx, cx), params)
    jax.block_until_ready((hy, cy))

    hy_ref, cy_ref = convlstm3d_reference(encoder_out, (hx, cx), params,
                                          grid_size=GRID, kernel_size=KSIZE)
    # Tolerance reflects the bf16 MXU path (f32 accumulate) over a 3456-deep
    # contraction vs. the f32 HIGHEST-precision reference.
    np.testing.assert_allclose(np.asarray(hy), np.asarray(hy_ref), atol=2e-2, rtol=2e-2)
    np.testing.assert_allclose(np.asarray(cy), np.asarray(cy_ref), atol=2e-2, rtol=2e-2)
    assert hy.shape == (B, HIDDEN, GRID, GRID, GRID)
    assert cy.shape == (B, HIDDEN, GRID, GRID, GRID)
    print("KERNEL_OK")
</pallas_src>

<mosaic_0001>
module attributes {stable_mosaic.version = 11 : i64} {
  func.func @convlstm3d_cell_kernel(%arg0: i32, %arg1: memref<64x384xf32, #tpu.memory_space<vmem>>, %arg2: memref<64x3456xbf16, #tpu.memory_space<vmem>>, %arg3: memref<64x128xf32, #tpu.memory_space<vmem>>, %arg4: memref<3456x384xbf16, #tpu.memory_space<vmem>>, %arg5: memref<64x128xf32, #tpu.memory_space<vmem>>, %arg6: memref<64x128xf32, #tpu.memory_space<vmem>>) attributes {dimension_semantics = [#tpu.dimension_semantics<parallel>], iteration_bounds = array<i64: 2>, scalar_prefetch = 0 : i64, scratch_operands = 0 : i64, tpu.core_type = #tpu.core_type<tc>, window_params = [{transform_indices = @transform_0, window_bounds = array<i64: 64, 384>}, {transform_indices = @transform_1, window_bounds = array<i64: 64, 3456>}, {transform_indices = @transform_2, window_bounds = array<i64: 64, 128>}, {pipeline_mode = #tpu.pipeline_mode<synchronous>, transform_indices = @transform_3, window_bounds = array<i64: 3456, 384>}, {transform_indices = @transform_4, window_bounds = array<i64: 64, 128>}, {transform_indices = @transform_5, window_bounds = array<i64: 64, 128>}]} {
    %c0 = arith.constant 0 : index
    %c0_0 = arith.constant 0 : index
    %0 = vector.load %arg1[%c0, %c0_0] : memref<64x384xf32, #tpu.memory_space<vmem>>, vector<64x384xf32>
    %c0_1 = arith.constant 0 : index
    %c0_2 = arith.constant 0 : index
    %1 = vector.load %arg2[%c0_1, %c0_2] : memref<64x3456xbf16, #tpu.memory_space<vmem>>, vector<64x3456xbf16>
    %c0_3 = arith.constant 0 : index
    %c0_4 = arith.constant 0 : index
    %2 = vector.load %arg4[%c0_3, %c0_4] : memref<3456x384xbf16, #tpu.memory_space<vmem>>, vector<3456x384xbf16>
    %cst = arith.constant dense<0.000000e+00> : vector<64x384xf32>
    %3 = tpu.matmul %1, %2, %cst {dimension_numbers = #tpu.dot_dimension_numbers<[1], [0], [0], [1], [0, 0, 1, 1], [], []>} : vector<64x3456xbf16>, vector<3456x384xbf16>, vector<64x384xf32> -> vector<64x384xf32>
    %4 = arith.addf %0, %3 : vector<64x384xf32>
    %5 = vector.extract_strided_slice %4 {offsets = [0, 0], sizes = [64, 128], strides = [1, 1]} : vector<64x384xf32> to vector<64x128xf32>
    %6 = arith.negf %5 : vector<64x128xf32>
    %7 = math.exp %6 : vector<64x128xf32>
    %cst_5 = arith.constant 1.000000e+00 : f32
    %8 = vector.broadcast %cst_5 : f32 to vector<64x128xf32>
    %9 = arith.addf %8, %7 : vector<64x128xf32>
    %10 = arith.divf %8, %9 : vector<64x128xf32>
    %11 = vector.extract_strided_slice %4 {offsets = [0, 128], sizes = [64, 128], strides = [1, 1]} : vector<64x384xf32> to vector<64x128xf32>
    %12 = arith.negf %11 : vector<64x128xf32>
    %13 = math.exp %12 : vector<64x128xf32>
    %cst_6 = arith.constant 1.000000e+00 : f32
    %14 = vector.broadcast %cst_6 : f32 to vector<64x128xf32>
    %15 = arith.addf %14, %13 : vector<64x128xf32>
    %16 = arith.divf %14, %15 : vector<64x128xf32>
    %17 = vector.extract_strided_slice %4 {offsets = [0, 256], sizes = [64, 128], strides = [1, 1]} : vector<64x384xf32> to vector<64x128xf32>
    %18 = math.tanh %17 : vector<64x128xf32>
    %c0_7 = arith.constant 0 : index
    %c0_8 = arith.constant 0 : index
    %19 = vector.load %arg3[%c0_7, %c0_8] : memref<64x128xf32, #tpu.memory_space<vmem>>, vector<64x128xf32>
    %20 = arith.mulf %16, %19 : vector<64x128xf32>
    %21 = arith.mulf %10, %18 : vector<64x128xf32>
    %22 = arith.addf %20, %21 : vector<64x128xf32>
    %c0_9 = arith.constant 0 : index
    %c0_10 = arith.constant 0 : index
    %23 = vector.load %arg6[%c0_9, %c0_10] : memref<64x128xf32, #tpu.memory_space<vmem>>, vector<64x128xf32>
    tpu.vector_store %arg6[%c0_9, %c0_10], %22 {strides = array<i32>} : memref<64x128xf32, #tpu.memory_space<vmem>>, vector<64x128xf32>,
    %24 = math.tanh %22 : vector<64x128xf32>
    %c0_11 = arith.constant 0 : index
    %c0_12 = arith.constant 0 : index
    %25 = vector.load %arg5[%c0_11, %c0_12] : memref<64x128xf32, #tpu.memory_space<vmem>>, vector<64x128xf32>
    tpu.vector_store %arg5[%c0_11, %c0_12], %24 {strides = array<i32>} : memref<64x128xf32, #tpu.memory_space<vmem>>, vector<64x128xf32>,
    return
  }
  func.func @transform_0(%arg0: i32) -> (i32, i32) {
    %c0_i32 = arith.constant 0 : i32
    %c0_i32_0 = arith.constant 0 : i32
    return %arg0, %c0_i32 : i32, i32
  }
  func.func @transform_1(%arg0: i32) -> (i32, i32) {
    %c0_i32 = arith.constant 0 : i32
    %c0_i32_0 = arith.constant 0 : i32
    return %arg0, %c0_i32 : i32, i32
  }
  func.func @transform_2(%arg0: i32) -> (i32, i32) {
    %c0_i32 = arith.constant 0 : i32
    %c0_i32_0 = arith.constant 0 : i32
    return %arg0, %c0_i32 : i32, i32
  }
  func.func @transform_3(%arg0: i32) -> (i32, i32) {
    %c0_i32 = arith.constant 0 : i32
    %c0_i32_0 = arith.constant 0 : i32
    %c0_i32_1 = arith.constant 0 : i32
    return %c0_i32, %c0_i32_0 : i32, i32
  }
  func.func @transform_4(%arg0: i32) -> (i32, i32) {
    %c0_i32 = arith.constant 0 : i32
    %c0_i32_0 = arith.constant 0 : i32
    return %arg0, %c0_i32 : i32, i32
  }
  func.func @transform_5(%arg0: i32) -> (i32, i32) {
    %c0_i32 = arith.constant 0 : i32
    %c0_i32_0 = arith.constant 0 : i32
    return %arg0, %c0_i32 : i32, i32
  }
}

</mosaic_0001>

<bundles_post_ra>
// kernel: convlstm3d_forward.1
= control target key start
LH: loop header
LB: loop body
LE: loop exit
PB: predicated region body
PF: predicated region fallthrough
CT: control target
= control target key end

     0   :  { %s10347_s18 = smov 0   ;;  %s12929_s0 = inlined_call_operand.vmem [shape: f32[128,384], index: 0, kind: input, shape index: {}]   ;;  %s12930_s1 = inlined_call_operand.vmem [shape: bf16[128,3456], index: 1, kind: input, shape index: {}]   ;;  %s12931_s2 = inlined_call_operand.vmem [shape: f32[128,128], index: 2, kind: input, shape index: {}]   ;;  %s12932_s3 = inlined_call_operand.vmem [shape: bf16[3456,384], index: 3, kind: input, shape index: {}]   ;;  %s12933_s4 = inlined_call_operand.vmem [shape: f32[128,128], index: 4, kind: output, shape index: {0}]   ;;  %s12934_s5 = inlined_call_operand.vmem [shape: f32[128,128], index: 5, kind: output, shape index: {1}]  }
   0x1 LB: > { %s7523_s19 = sadd.s32 4294967295, %s10314_s18   ;;  %p7527_p0 = scmp.ge.s32.totalorder %s10314_s18, 1  ;;  %s10314_s18 = sphi %s10347_s18, %s16_s18  }
   0x2   : > { %p215_p1 = scmp.lt.s32.totalorder %s10314_s18, 3 }
   0x4   : > { %p216_p2 = pnand %p7527_p0, %p215_p1 }
   0x6   : > { %219 = sbr.rel (%p216_p2) target bundleno = 948 (0x3b4), region = 36 }
   0xd   : > { %v9103_v0 = vld [vmem:[%s12932_s3 + $0x4] ss:$12 sps:$4 sm:$0xff]   ;;  %v9107_v2 = vld [vmem:[%s12932_s3] ss:$12 sps:$4 sm:$0xff]   ;;  %v9109_v4 = vld [vmem:[%s12932_s3 + $0x1c] ss:$12 sps:$4 sm:$0xff]  }
   0xe   : > { %v9105_v1 = vld [vmem:[%s12932_s3 + $0x484] ss:$12 sps:$4 sm:$0xff]   ;;  %5293 = vmatprep.subr.bf16.mxu1 %v9103_v0  ;;  %v9108_v3 = vld [vmem:[%s12932_s3 + $0x480] ss:$12 sps:$4 sm:$0xff]   ;;  %v9111_v5 = vld [vmem:[%s12932_s3 + $0x49c] ss:$12 sps:$4 sm:$0xff]  }
   0xf   : > { %5512 = vmatprep.subr.bf16.mxu0 %v9105_v1  ;;  %5294 = vmatpush1.bf16.msra.mxu1 %v9107_v2  ;;  %v9113_v6 = vld [vmem:[%s12932_s3 + $0x18] ss:$12 sps:$4 sm:$0xff]   ;;  %v9115_v8 = vld [vmem:[%s12932_s3 + $0x34] ss:$12 sps:$4 sm:$0xff]   ;;  %v9119_v10 = vld [vmem:[%s12932_s3 + $0x30] ss:$12 sps:$4 sm:$0xff]  }
  0x10   : > { %5513 = vmatpush1.bf16.msra.mxu0 %v9108_v3  ;;  %5295 = vmatprep.subr.bf16.mxu1 %v9109_v4  ;;  %v9114_v7 = vld [vmem:[%s12932_s3 + $0x498] ss:$12 sps:$4 sm:$0xff]   ;;  %v9117_v9 = vld [vmem:[%s12932_s3 + $0x4b4] ss:$12 sps:$4 sm:$0xff]   ;;  %v9120_v11 = vld [vmem:[%s12932_s3 + $0x4b0] ss:$12 sps:$4 sm:$0xff]  }
  0x11   : > { %5514 = vmatprep.subr.bf16.mxu0 %v9111_v5  ;;  %v9121_v12 = vld [vmem:[%s12932_s3 + $0x4c] ss:$12 sps:$4 sm:$0xff]   ;;  %v9125_v14 = vld [vmem:[%s12932_s3 + $0x48] ss:$12 sps:$4 sm:$0xff]   ;;  %v9127_v16 = vld [vmem:[%s12932_s3 + $0x64] ss:$12 sps:$4 sm:$0xff]  }
  0x12   : > { %v9123_v13 = vld [vmem:[%s12932_s3 + $0x4cc] ss:$12 sps:$4 sm:$0xff]   ;;  %v9126_v15 = vld [vmem:[%s12932_s3 + $0x4c8] ss:$12 sps:$4 sm:$0xff]   ;;  %v9129_v17 = vld [vmem:[%s12932_s3 + $0x4e4] ss:$12 sps:$4 sm:$0xff]  }
  0x13   : > { %5296 = vmatpush1.bf16.msra.mxu1 %v9113_v6  ;;  %v9131_v18 = vld [vmem:[%s12932_s3 + $0x60] ss:$12 sps:$4 sm:$0xff]   ;;  %v9133_v20 = vld [vmem:[%s12932_s3 + $0x7c] ss:$12 sps:$4 sm:$0xff]   ;;  %v9137_v22 = vld [vmem:[%s12932_s3 + $0x78] ss:$12 sps:$4 sm:$0xff]  }
  0x14   : > { %5515 = vmatpush1.bf16.msra.mxu0 %v9114_v7  ;;  %5297 = vmatprep.subr.bf16.mxu1 %v9115_v8  ;;  %v9132_v19 = vld [vmem:[%s12932_s3 + $0x4e0] ss:$12 sps:$4 sm:$0xff]   ;;  %v9135_v21 = vld [vmem:[%s12932_s3 + $0x4fc] ss:$12 sps:$4 sm:$0xff]   ;;  %v9138_v23 = vld [vmem:[%s12932_s3 + $0x4f8] ss:$12 sps:$4 sm:$0xff]  }
  0x15   : > { %5516 = vmatprep.subr.bf16.mxu0 %v9117_v9  ;;  %v9139_v24 = vld [vmem:[%s12932_s3 + $0x94] ss:$12 sps:$4 sm:$0xff]   ;;  %v9143_v26 = vld [vmem:[%s12932_s3 + $0x90] ss:$12 sps:$4 sm:$0xff]   ;;  %v9145_v28 = vld [vmem:[%s12932_s3 + $0xac] ss:$12 sps:$4 sm:$0xff]  }
  0x16   : > { %v9141_v25 = vld [vmem:[%s12932_s3 + $0x514] ss:$12 sps:$4 sm:$0xff]   ;;  %v9144_v27 = vld [vmem:[%s12932_s3 + $0x510] ss:$12 sps:$4 sm:$0xff]   ;;  %v9147_v29 = vld [vmem:[%s12932_s3 + $0x52c] ss:$12 sps:$4 sm:$0xff]  }
  0x17   : > { %5298 = vmatpush1.bf16.msra.mxu1 %v9119_v10  ;;  %s7528_s9 = sshll.u32 %s7523_s19, 3  ;;  %v9149_v30 = vld [vmem:[%s12932_s3 + $0xa8] ss:$12 sps:$4 sm:$0xff]   ;;  %v9151_v32 = vld [vmem:[%s12932_s3 + $0xc4] ss:$12 sps:$4 sm:$0xff]  }
  0x18   : > { %5517 = vmatpush1.bf16.msra.mxu0 %v9120_v11  ;;  %5299 = vmatprep.subr.bf16.mxu1 %v9121_v12  ;;  %v9150_v31 = vld [vmem:[%s12932_s3 + $0x528] ss:$12 sps:$4 sm:$0xff]   ;;  %p261_p3 = scmp.lt.s32.totalorder %s7528_s9, 15  ;;  %v9153_v33 = vld [vmem:[%s12932_s3 + $0x544] ss:$12 sps:$4 sm:$0xff]  }
  0x19   : > { %5518 = vmatprep.subr.bf16.mxu0 %v9123_v13  ;;  %v9155_v34 = vld [vmem:[%s12932_s3 + $0xc0] ss:$12 sps:$4 sm:$0xff]   ;;  %v9157_v36 = vld [vmem:[%s12932_s3 + $0xdc] ss:$12 sps:$4 sm:$0xff]   ;;  %v9161_v38 = vld [vmem:[%s12932_s3 + $0xd8] ss:$12 sps:$4 sm:$0xff]  }
  0x1a   : > { %v9156_v35 = vld [vmem:[%s12932_s3 + $0x540] ss:$12 sps:$4 sm:$0xff]   ;;  %s12938_s9 = smov (!%p261_p3, %s7528_s9), 15  ;;  %v9159_v37 = vld [vmem:[%s12932_s3 + $0x55c] ss:$12 sps:$4 sm:$0xff]  }
  0x1b   : > { %5300 = vmatpush1.bf16.msra.mxu1 %v9125_v14  ;;  %v9162_v39 = vld [vmem:[%s12932_s3 + $0x558] ss:$12 sps:$4 sm:$0xff]   ;;  %v9163_v40 = vld [vmem:[%s12932_s3 + $0xf4] ss:$12 sps:$4 sm:$0xff]   ;;  %s9093_s8 = smul.u32 108, %s12938_s9  ;;  %s12875_s20 = sshll.u32 %s12938_s9, 3 }
  0x1c   : > { %5519 = vmatpush1.bf16.msra.mxu0 %v9126_v15  ;;  %5301 = vmatprep.subr.bf16.mxu1 %v9127_v16  ;;  %v9165_v41 = vld [vmem:[%s12932_s3 + $0x574] ss:$12 sps:$4 sm:$0xff]   ;;  %v9167_v42 = vld [vmem:[%s12932_s3 + $0xf0] ss:$12 sps:$4 sm:$0xff]   ;;  %v9169_v44 = vld [vmem:[%s12932_s3 + $0x10c] ss:$12 sps:$4 sm:$0xff]   ;;  %s12882_s24 = scalar_lea.vmem %s12931_s2, %s12875_s20  ;;  %s12891_s26 = scalar_lea.vmem %s12934_s5, %s12875_s20 }
  0x1d   : > { %5520 = vmatprep.subr.bf16.mxu0 %v9129_v17  ;;  %v9168_v43 = vld [vmem:[%s12932_s3 + $0x570] ss:$12 sps:$4 sm:$0xff]   ;;  %s10498_s21 = scalar_lea.vmem %s12930_s1, %s9093_s8  ;;  %v9171_v45 = vld [vmem:[%s12932_s3 + $0x58c] ss:$12 sps:$4 sm:$0xff]   ;;  %v9173_v46 = vld [vmem:[%s12932_s3 + $0x108] ss:$12 sps:$4 sm:$0xff]   ;;  %s12909_s29 = scalar_lea.vmem %s12933_s4, %s12875_s20 }
  0x1e   : > { %v9174_v47 = vld [vmem:[%s12932_s3 + $0x588] ss:$12 sps:$4 sm:$0xff]   ;;  %v9201_v48 = vld [vmem:[%s10498_s21 + $0x4] ss:$108 sps:$4 sm:$0xff]   ;;  %v9179_v52 = vld [vmem:[%s12932_s3 + $0x120] ss:$12 sps:$4 sm:$0xff]  }
  0x1f   : > { %5302 = vmatpush1.bf16.msra.mxu1 %v9131_v18  ;;  %v9175_v49 = vld [vmem:[%s12932_s3 + $0x124] ss:$12 sps:$4 sm:$0xff]   ;;  %5325 = vmatprep.mubr.bf16.mxu1 %v9201_v48  ;;  %v9207_v51 = vld [vmem:[%s10498_s21 + $0x1c] ss:$108 sps:$4 sm:$0xff]   ;;  %v9180_v53 = vld [vmem:[%s12932_s3 + $0x5a0] ss:$12 sps:$4 sm:$0xff]  }
  0x20   : > { %5521 = vmatpush1.bf16.msra.mxu0 %v9132_v19  ;;  %5303 = vmatprep.subr.bf16.mxu1 %v9133_v20  ;;  %v9177_v50 = vld [vmem:[%s12932_s3 + $0x5a4] ss:$12 sps:$4 sm:$0xff]   ;;  %v9181_v54 = vld [vmem:[%s12932_s3 + $0x13c] ss:$12 sps:$4 sm:$0xff]   ;;  %v9187_v58 = vld [vmem:[%s12932_s3 + $0x154] ss:$12 sps:$4 sm:$0xff]  }
  0x21   : > { %5522 = vmatprep.subr.bf16.mxu0 %v9135_v21  ;;  %v9183_v55 = vld [vmem:[%s12932_s3 + $0x5bc] ss:$12 sps:$4 sm:$0xff]   ;;  %5544 = vmatprep.mubr.bf16.mxu0 %v9207_v51  ;;  %v9185_v56 = vld [vmem:[%s12932_s3 + $0x138] ss:$12 sps:$4 sm:$0xff]   ;;  %v9189_v59 = vld [vmem:[%s12932_s3 + $0x5d4] ss:$12 sps:$4 sm:$0xff]  }
  0x22   : > { %v9186_v57 = vld [vmem:[%s12932_s3 + $0x5b8] ss:$12 sps:$4 sm:$0xff]   ;;  %v9191_v60 = vld [vmem:[%s12932_s3 + $0x150] ss:$12 sps:$4 sm:$0xff]   ;;  %v9197_v0 = vld [vmem:[%s12932_s3 + $0x168] ss:$12 sps:$4 sm:$0xff]  }
  0x23   : > { %5304 = vmatpush1.bf16.msra.mxu1 %v9137_v22  ;;  %v9192_v61 = vld [vmem:[%s12932_s3 + $0x5d0] ss:$12 sps:$4 sm:$0xff]   ;;  %v9193_v62 = vld [vmem:[%s12932_s3 + $0x16c] ss:$12 sps:$4 sm:$0xff]   ;;  %v9198_v1 = vld [vmem:[%s12932_s3 + $0x5e8] ss:$12 sps:$4 sm:$0xff]  }
  0x24   : > { %5523 = vmatpush1.bf16.msra.mxu0 %v9138_v23  ;;  %5305 = vmatprep.subr.bf16.mxu1 %v9139_v24  ;;  %v9195_v63 = vld [vmem:[%s12932_s3 + $0x5ec] ss:$12 sps:$4 sm:$0xff]   ;;  %v9204_v2 = vld [vmem:[%s12932_s3 + $0x184] ss:$12 sps:$4 sm:$0xff]   ;;  %v9213_v8 = vld [vmem:[%s12932_s3 + $0x19c] ss:$12 sps:$4 sm:$0xff]  }
  0x25   : > { %5524 = vmatprep.subr.bf16.mxu0 %v9141_v25  ;;  %v9210_v3 = vld [vmem:[%s12932_s3 + $0x604] ss:$12 sps:$4 sm:$0xff]   ;;  %v9199_v4 = vld [vmem:[%s10498_s21] ss:$108 sps:$4 sm:$0xff]   ;;  %v9216_v9 = vld [vmem:[%s12932_s3 + $0x61c] ss:$12 sps:$4 sm:$0xff]  }
  0x26   : > { %v9202_v5 = vld [vmem:[%s12932_s3 + $0x180] ss:$12 sps:$4 sm:$0xff]   ;;  %v9205_v6 = vld [vmem:[%s10498_s21 + $0x18] ss:$108 sps:$4 sm:$0xff]   ;;  %v9217_v14 = vld [vmem:[%s12932_s3 + $0x1b0] ss:$12 sps:$4 sm:$0xff]  }
  0x27   : > { %5306 = vmatpush1.bf16.msra.mxu1 %v9143_v26  ;;  %v9208_v7 = vld [vmem:[%s12932_s3 + $0x600] ss:$12 sps:$4 sm:$0xff]   ;;  %v9211_v10 = vld [vmem:[%s12932_s3 + $0x198] ss:$12 sps:$4 sm:$0xff]   ;;  %v9220_v15 = vld [vmem:[%s12932_s3 + $0x630] ss:$12 sps:$4 sm:$0xff]  }
  0x28   : > { %5525 = vmatpush1.bf16.msra.mxu0 %v9144_v27  ;;  %5307 = vmatprep.subr.bf16.mxu1 %v9145_v28  ;;  %v9214_v11 = vld [vmem:[%s12932_s3 + $0x618] ss:$12 sps:$4 sm:$0xff]   ;;  %v9219_v12 = vld [vmem:[%s12932_s3 + $0x1b4] ss:$12 sps:$4 sm:$0xff]   ;;  %v9265_v17 = vld [vmem:[%s10498_s21 + $0xdc] ss:$108 sps:$4 sm:$0xff]  }
  0x29   : > { %5526 = vmatprep.subr.bf16.mxu0 %v9147_v29  ;;  %v9222_v13 = vld [vmem:[%s12932_s3 + $0x634] ss:$12 sps:$4 sm:$0xff]   ;;  %v9225_v16 = vld [vmem:[%s12932_s3 + $0x1cc] ss:$12 sps:$4 sm:$0xff]   ;;  %v9231_v22 = vld [vmem:[%s12932_s3 + $0x1e4] ss:$12 sps:$4 sm:$0xff]  }
  0x2a   : > { %v9228_v18 = vld [vmem:[%s12932_s3 + $0x64c] ss:$12 sps:$4 sm:$0xff]   ;;  %v9223_v19 = vld [vmem:[%s12932_s3 + $0x1c8] ss:$12 sps:$4 sm:$0xff]   ;;  %v9234_v23 = vld [vmem:[%s12932_s3 + $0x664] ss:$12 sps:$4 sm:$0xff]  }
  0x2b   : > { %5308 = vmatpush1.bf16.msra.mxu1 %v9149_v30  ;;  %v9226_v20 = vld [vmem:[%s12932_s3 + $0x648] ss:$12 sps:$4 sm:$0xff]   ;;  %v9275_v24 = vld [vmem:[%s10498_s21 + $0xd8] ss:$108 sps:$4 sm:$0xff]   ;;  %v9276_v25 = vld [vmem:[%s10498_s21 + $0xf0] ss:$108 sps:$4 sm:$0xff]  }
  0x2c   : > { %5527 = vmatpush1.bf16.msra.mxu0 %v9150_v31  ;;  %5309 = vmatprep.subr.bf16.mxu1 %v9151_v32  ;;  %v9270_v21 = vld [vmem:[%s10498_s21 + $0xf4] ss:$108 sps:$4 sm:$0xff]   ;;  %v9237_v28 = vld [vmem:[%s12932_s3 + $0x1fc] ss:$12 sps:$4 sm:$0xff]   ;;  %v9235_v31 = vld [vmem:[%s12932_s3 + $0x1f8] ss:$12 sps:$4 sm:$0xff]  }
  0x2d   : > { %5528 = vmatprep.subr.bf16.mxu0 %v9153_v33  ;;  %v9229_v26 = vld [vmem:[%s12932_s3 + $0x1e0] ss:$12 sps:$4 sm:$0xff]   ;;  %v9240_v30 = vld [vmem:[%s12932_s3 + $0x67c] ss:$12 sps:$4 sm:$0xff]   ;;  %v9238_v32 = vld [vmem:[%s12932_s3 + $0x678] ss:$12 sps:$4 sm:$0xff]  }
  0x2e   : > { %v9232_v27 = vld [vmem:[%s12932_s3 + $0x660] ss:$12 sps:$4 sm:$0xff]   ;;  %v9311_v48 = vld [vmem:[%s10498_s21 + $0x288] ss:$108 sps:$4 sm:$0xff]  }
  0x2f   : > { %5310 = vmatpush1.bf16.msra.mxu1 %v9155_v34  ;;  %v9283_v29 = vld [vmem:[%s10498_s21 + $0x1b4] ss:$108 sps:$4 sm:$0xff]   ;;  %v9288_v33 = vld [vmem:[%s10498_s21 + $0x1cc] ss:$108 sps:$4 sm:$0xff]  }
  0x30   : > { %5529 = vmatpush1.bf16.msra.mxu0 %v9156_v35  ;;  %5311 = vmatprep.subr.bf16.mxu1 %v9157_v36  ;;  %v9243_v34 = vld [vmem:[%s12932_s3 + $0x214] ss:$12 sps:$4 sm:$0xff]   ;;  %v9293_v36 = vld [vmem:[%s10498_s21 + $0x1b0] ss:$108 sps:$4 sm:$0xff]  }
  0x31   : > { %5530 = vmatprep.subr.bf16.mxu0 %v9159_v37  ;;  %v9246_v35 = vld [vmem:[%s12932_s3 + $0x694] ss:$12 sps:$4 sm:$0xff]  }
  0x32   : > { %v9294_v37 = vld [vmem:[%s10498_s21 + $0x1c8] ss:$108 sps:$4 sm:$0xff]   ;;  %v9256_v51 = vld [vmem:[%s12932_s3 + $0x6c0] ss:$12 sps:$4 sm:$0xff]  }
  0x33   : > { %5312 = vmatpush1.bf16.msra.mxu1 %v9161_v38  ;;  %v9241_v38 = vld [vmem:[%s12932_s3 + $0x210] ss:$12 sps:$4 sm:$0xff]  }
  0x34   : > { %5531 = vmatpush1.bf16.msra.mxu0 %v9162_v39  ;;  %5313 = vmatprep.subr.bf16.mxu1 %v9163_v40  ;;  %v9244_v39 = vld [vmem:[%s12932_s3 + $0x690] ss:$12 sps:$4 sm:$0xff]   ;;  %v9249_v40 = vld [vmem:[%s12932_s3 + $0x22c] ss:$12 sps:$4 sm:$0xff]  }
  0x35   : > { %5532 = vmatprep.subr.bf16.mxu0 %v9165_v41  ;;  %v9301_v41 = vld [vmem:[%s10498_s21 + $0x28c] ss:$108 sps:$4 sm:$0xff]  }
  0x37   : > { %5314 = vmatpush1.bf16.msra.mxu1 %v9167_v42  ;;  %v9252_v42 = vld [vmem:[%s12932_s3 + $0x6ac] ss:$12 sps:$4 sm:$0xff]  }
  0x38   : > { %5533 = vmatpush1.bf16.msra.mxu0 %v9168_v43  ;;  %5315 = vmatprep.subr.bf16.mxu1 %v9169_v44  ;;  %v9247_v43 = vld [vmem:[%s12932_s3 + $0x228] ss:$12 sps:$4 sm:$0xff]  }
  0x39   : > { %5534 = vmatprep.subr.bf16.mxu0 %v9171_v45  ;;  %v9250_v44 = vld [vmem:[%s12932_s3 + $0x6a8] ss:$12 sps:$4 sm:$0xff]   ;;  %v9306_v45 = vld [vmem:[%s10498_s21 + $0x2a4] ss:$108 sps:$4 sm:$0xff]  }
  0x3b   : > { %5316 = vmatpush1.bf16.msra.mxu1 %v9173_v46  ;;  %v9255_v46 = vld [vmem:[%s12932_s3 + $0x244] ss:$12 sps:$4 sm:$0xff]  }
  0x3c   : > { %5535 = vmatpush1.bf16.msra.mxu0 %v9174_v47  ;;  %5317 = vmatprep.subr.bf16.mxu1 %v9175_v49  ;;  %v9258_v47 = vld [vmem:[%s12932_s3 + $0x6c4] ss:$12 sps:$4 sm:$0xff]   ;;  %v9312_v49 = vld [vmem:[%s10498_s21 + $0x2a0] ss:$108 sps:$4 sm:$0xff]  }
  0x3d   : > { %5536 = vmatprep.subr.bf16.mxu0 %v9177_v50  ;;  %v9253_v50 = vld [vmem:[%s12932_s3 + $0x240] ss:$12 sps:$4 sm:$0xff]  }
  0x3f   : > { %5318 = vmatpush1.bf16.msra.mxu1 %v9179_v52  ;;  %v9261_v52 = vld [vmem:[%s12932_s3 + $0x25c] ss:$12 sps:$4 sm:$0xff]  }
  0x40   : > { %5537 = vmatpush1.bf16.msra.mxu0 %v9180_v53  ;;  %5319 = vmatprep.subr.bf16.mxu1 %v9181_v54  ;;  %v9264_v53 = vld [vmem:[%s12932_s3 + $0x6dc] ss:$12 sps:$4 sm:$0xff]   ;;  %v9321_v54 = vld [vmem:[%s10498_s21 + $0xc] ss:$108 sps:$4 sm:$0xff]  }
  0x41   : > { %5538 = vmatprep.subr.bf16.mxu0 %v9183_v55  ;;  %v9259_v55 = vld [vmem:[%s12932_s3 + $0x258] ss:$12 sps:$4 sm:$0xff]  }
  0x43   : > { %5320 = vmatpush1.bf16.msra.mxu1 %v9185_v56  ;;  %v9262_v56 = vld [vmem:[%s12932_s3 + $0x6d8] ss:$12 sps:$4 sm:$0xff]  }
  0x44   : > { %5539 = vmatpush1.bf16.msra.mxu0 %v9186_v57  ;;  %5321 = vmatprep.subr.bf16.mxu1 %v9187_v58  ;;  %v9327_v57 = vld [vmem:[%s10498_s21 + $0x24] ss:$108 sps:$4 sm:$0xff]   ;;  %v9269_v58 = vld [vmem:[%s12932_s3 + $0x274] ss:$12 sps:$4 sm:$0xff]  }
  0x45   : > { %5540 = vmatprep.subr.bf16.mxu0 %v9189_v59  ;;  %v9274_v59 = vld [vmem:[%s12932_s3 + $0x6f4] ss:$12 sps:$4 sm:$0xff]  }
  0x47   : > { %5322 = vmatpush1.bf16.msra.mxu1 %v9191_v60  ;;  %v9267_v60 = vld [vmem:[%s12932_s3 + $0x270] ss:$12 sps:$4 sm:$0xff]  }
  0x48   : > { %5541 = vmatpush1.bf16.msra.mxu0 %v9192_v61  ;;  %5323 = vmatprep.subr.bf16.mxu1 %v9193_v62  ;;  %v9272_v61 = vld [vmem:[%s12932_s3 + $0x6f0] ss:$12 sps:$4 sm:$0xff]   ;;  %v9279_v62 = vld [vmem:[%s12932_s3 + $0x28c] ss:$12 sps:$4 sm:$0xff]  }
  0x49   : > { %5542 = vmatprep.subr.bf16.mxu0 %v9195_v63  ;;  %v9282_v63 = vld [vmem:[%s12932_s3 + $0x70c] ss:$12 sps:$4 sm:$0xff]  }
  0x4b   : > { %5324 = vmatpush1.bf16.msra.mxu1 %v9197_v0  ;;  %v9277_v0 = vld [vmem:[%s12932_s3 + $0x288] ss:$12 sps:$4 sm:$0xff]  }
  0x4c   : > { %5543 = vmatpush1.bf16.msra.mxu0 %v9198_v1  ;;  %5366 = vmatprep.subr.bf16.mxu1 %v9204_v2  ;;  %v9280_v1 = vld [vmem:[%s12932_s3 + $0x708] ss:$12 sps:$4 sm:$0xff]   ;;  %v9287_v2 = vld [vmem:[%s12932_s3 + $0x2a4] ss:$12 sps:$4 sm:$0xff]  }
  0x4d   : > { %5585 = vmatprep.subr.bf16.mxu0 %v9210_v3  ;;  %v9292_v3 = vld [vmem:[%s12932_s3 + $0x724] ss:$12 sps:$4 sm:$0xff]  }
  0x4e   : > { %5326 = vmatmul.mubr.bf16.vlgmr.msra.gmra.mrb[0].mxu1 %v9199_v4  ;;  %v9285_v4 = vld [vmem:[%s12932_s3 + $0x2a0] ss:$12 sps:$4 sm:$0xff]  }
  0x4f   : > { %5545 = vmatmul.mubr.bf16.vlgmr.msra.gmra.mrb[0].mxu0 %v9205_v6  ;;  %5367 = vmatpush1.bf16.msra.mxu1 %v9202_v5  ;;  %v9290_v5 = vld [vmem:[%s12932_s3 + $0x720] ss:$12 sps:$4 sm:$0xff]   ;;  %v9297_v6 = vld [vmem:[%s12932_s3 + $0x2bc] ss:$12 sps:$4 sm:$0xff]  }
  0x50   : > { %5586 = vmatpush1.bf16.msra.mxu0 %v9208_v7  ;;  %5368 = vmatprep.subr.bf16.mxu1 %v9213_v8  ;;  %v9300_v7 = vld [vmem:[%s12932_s3 + $0x73c] ss:$12 sps:$4 sm:$0xff]   ;;  %v9295_v8 = vld [vmem:[%s12932_s3 + $0x2b8] ss:$12 sps:$4 sm:$0xff]  }
  0x51   : > { %5587 = vmatprep.subr.bf16.mxu0 %v9216_v9  ;;  %5335 = vmatprep.mubr.bf16.mxu1 %v9265_v17  ;;  %v9298_v9 = vld [vmem:[%s12932_s3 + $0x738] ss:$12 sps:$4 sm:$0xff]   ;;  %v9316_v17 = vld [vmem:[%s12932_s3 + $0x768] ss:$12 sps:$4 sm:$0xff]  }
  0x52   : > { %5554 = vmatprep.mubr.bf16.mxu0 %v9270_v21  ;;  %v9322_v21 = vld [vmem:[%s12932_s3 + $0x300] ss:$12 sps:$4 sm:$0xff]  }
  0x53   : > { %5369 = vmatpush1.bf16.msra.mxu1 %v9211_v10  ;;  %v9305_v10 = vld [vmem:[%s12932_s3 + $0x2d4] ss:$12 sps:$4 sm:$0xff]  }
  0x54   : > { %5588 = vmatpush1.bf16.msra.mxu0 %v9214_v11  ;;  %5370 = vmatprep.subr.bf16.mxu1 %v9219_v12  ;;  %v9310_v11 = vld [vmem:[%s12932_s3 + $0x754] ss:$12 sps:$4 sm:$0xff]   ;;  %v9303_v12 = vld [vmem:[%s12932_s3 + $0x2d0] ss:$12 sps:$4 sm:$0xff]  }
  0x55   : > { %5589 = vmatprep.subr.bf16.mxu0 %v9222_v13  ;;  %v9308_v13 = vld [vmem:[%s12932_s3 + $0x750] ss:$12 sps:$4 sm:$0xff]  }
  0x56   : > { %5336 = vmatmul.mubr.bf16.gmra.mrb[4].mxu1 %v9275_v24  ;;  %v9333_v24 = vld [vmem:[%s12932_s3 + $0x31c] ss:$12 sps:$4 sm:$0xff]  }
  0x57   : > { %5371 = vmatpush1.bf16.msra.mxu1 %v9217_v14  ;;  %5555 = vmatmul.mubr.bf16.gmra.mrb[4].mxu0 %v9276_v25  ;;  %v9315_v14 = vld [vmem:[%s12932_s3 + $0x2ec] ss:$12 sps:$4 sm:$0xff]   ;;  %v9336_v25 = vld [vmem:[%s12932_s3 + $0x79c] ss:$12 sps:$4 sm:$0xff]  }
  0x58   : > { %5590 = vmatpush1.bf16.msra.mxu0 %v9220_v15  ;;  %5372 = vmatprep.subr.bf16.mxu1 %v9225_v16  ;;  %v9318_v15 = vld [vmem:[%s12932_s3 + $0x76c] ss:$12 sps:$4 sm:$0xff]   ;;  %v9313_v16 = vld [vmem:[%s12932_s3 + $0x2e8] ss:$12 sps:$4 sm:$0xff]  }
  0x59   : > { %5591 = vmatprep.subr.bf16.mxu0 %v9228_v18  ;;  %5345 = vmatprep.mubr.bf16.mxu1 %v9283_v29  ;;  %v9324_v18 = vld [vmem:[%s12932_s3 + $0x304] ss:$12 sps:$4 sm:$0xff]  }
  0x5a   : > { %5564 = vmatprep.mubr.bf16.mxu0 %v9288_v33  ;;  %v9334_v29 = vld [vmem:[%s12932_s3 + $0x798] ss:$12 sps:$4 sm:$0xff]   ;;  %v9340_v33 = vld [vmem:[%s12932_s3 + $0x7b0] ss:$12 sps:$4 sm:$0xff]  }
  0x5b   : > { %5373 = vmatpush1.bf16.msra.mxu1 %v9223_v19  ;;  %v9330_v19 = vld [vmem:[%s12932_s3 + $0x784] ss:$12 sps:$4 sm:$0xff]  }
  0x5c   : > { %5592 = vmatpush1.bf16.msra.mxu0 %v9226_v20  ;;  %5374 = vmatprep.subr.bf16.mxu1 %v9231_v22  ;;  %v9319_v20 = vld [vmem:[%s10498_s21 + $0x8] ss:$108 sps:$4 sm:$0xff]   ;;  %v9325_v22 = vld [vmem:[%s10498_s21 + $0x20] ss:$108 sps:$4 sm:$0xff]  }
  0x5d   : > { %5593 = vmatprep.subr.bf16.mxu0 %v9234_v23  ;;  %v9328_v23 = vld [vmem:[%s12932_s3 + $0x780] ss:$12 sps:$4 sm:$0xff]  }
  0x5e   : > { %5346 = vmatmul.mubr.bf16.gmra.mrb[8].mxu1 %v9293_v36  ;;  %v9345_v36 = vld [vmem:[%s12932_s3 + $0x34c] ss:$12 sps:$4 sm:$0xff]  }
  0x5f   : > { %5375 = vmatpush1.bf16.msra.mxu1 %v9229_v26  ;;  %5565 = vmatmul.mubr.bf16.gmra.mrb[8].mxu0 %v9294_v37  ;;  %v9385_v26 = vld [vmem:[%s10498_s21 + $0xe4] ss:$108 sps:$4 sm:$0xff]   ;;  %v9348_v37 = vld [vmem:[%s12932_s3 + $0x7cc] ss:$12 sps:$4 sm:$0xff]  }
  0x60   : > { %5594 = vmatpush1.bf16.msra.mxu0 %v9232_v27  ;;  %5376 = vmatprep.subr.bf16.mxu1 %v9237_v28  ;;  %v9391_v27 = vld [vmem:[%s10498_s21 + $0xfc] ss:$108 sps:$4 sm:$0xff]   ;;  %v9331_v28 = vld [vmem:[%s12932_s3 + $0x318] ss:$12 sps:$4 sm:$0xff]  }
  0x61   : > { %5595 = vmatprep.subr.bf16.mxu0 %v9240_v30  ;;  %5355 = vmatprep.mubr.bf16.mxu1 %v9301_v41  ;;  %v9339_v30 = vld [vmem:[%s12932_s3 + $0x334] ss:$12 sps:$4 sm:$0xff]  }
  0x62   : > { %5574 = vmatprep.mubr.bf16.mxu0 %v9306_v45  ;;  %v9346_v41 = vld [vmem:[%s12932_s3 + $0x7c8] ss:$12 sps:$4 sm:$0xff]   ;;  %v9352_v45 = vld [vmem:[%s12932_s3 + $0x7e0] ss:$12 sps:$4 sm:$0xff]  }
  0x63   : > { %5377 = vmatpush1.bf16.msra.mxu1 %v9235_v31  ;;  %v9342_v31 = vld [vmem:[%s12932_s3 + $0x7b4] ss:$12 sps:$4 sm:$0xff]  }
  0x64   : > { %5596 = vmatpush1.bf16.msra.mxu0 %v9238_v32  ;;  %5378 = vmatprep.subr.bf16.mxu1 %v9243_v34  ;;  %v9337_v32 = vld [vmem:[%s12932_s3 + $0x330] ss:$12 sps:$4 sm:$0xff]   ;;  %v9387_v34 = vld [vmem:[%s10498_s21 + $0xe0] ss:$108 sps:$4 sm:$0xff]  }
  0x65   : > { %5597 = vmatprep.subr.bf16.mxu0 %v9246_v35  ;;  %v9396_v35 = vld [vmem:[%s10498_s21 + $0xf8] ss:$108 sps:$4 sm:$0xff]  }
  0x66   : > { %5356 = vmatmul.mubr.bf16.gmra.mrb[12].mxu1 %v9311_v48  ;;  %v9357_v48 = vld [vmem:[%s12932_s3 + $0x37c] ss:$12 sps:$4 sm:$0xff]  }
  0x67   : > { %5379 = vmatpush1.bf16.msra.mxu1 %v9241_v38  ;;  %5575 = vmatmul.mubr.bf16.gmra.mrb[12].mxu0 %v9312_v49  ;;  %v9403_v38 = vld [vmem:[%s10498_s21 + $0x1bc] ss:$108 sps:$4 sm:$0xff]  }
  0x68   : > { %5598 = vmatpush1.bf16.msra.mxu0 %v9244_v39  ;;  %5380 = vmatprep.subr.bf16.mxu1 %v9249_v40  ;;  %v9409_v39 = vld [vmem:[%s10498_s21 + $0x1d4] ss:$108 sps:$4 sm:$0xff]   ;;  %v9360_v49 = vld [vmem:[%s12932_s3 + $0x7fc] ss:$12 sps:$4 sm:$0xff]  }
  0x69   : > { %5599 = vmatprep.subr.bf16.mxu0 %v9252_v42  ;;  %5398 = vmatprep.mubr.bf16.mxu1 %v9321_v54  ;;  %v9343_v40 = vld [vmem:[%s12932_s3 + $0x348] ss:$12 sps:$4 sm:$0xff]   ;;  %v9351_v42 = vld [vmem:[%s12932_s3 + $0x364] ss:$12 sps:$4 sm:$0xff]  }
  0x6a   : > { %5617 = vmatprep.mubr.bf16.mxu0 %v9327_v57  ;;  %v9363_v54 = vld [vmem:[%s12932_s3 + $0x394] ss:$12 sps:$4 sm:$0xff]   ;;  %v9364_v57 = vld [vmem:[%s12932_s3 + $0x810] ss:$12 sps:$4 sm:$0xff]  }
  0x6b   : > { %5381 = vmatpush1.bf16.msra.mxu1 %v9247_v43  ;;  %v9354_v43 = vld [vmem:[%s12932_s3 + $0x7e4] ss:$12 sps:$4 sm:$0xff]  }
  0x6c   : > { %5600 = vmatpush1.bf16.msra.mxu0 %v9250_v44  ;;  %5382 = vmatprep.subr.bf16.mxu1 %v9255_v46  ;;  %v9349_v44 = vld [vmem:[%s12932_s3 + $0x360] ss:$12 sps:$4 sm:$0xff]   ;;  %v9405_v46 = vld [vmem:[%s10498_s21 + $0x1b8] ss:$108 sps:$4 sm:$0xff]  }
  0x6d   : > { %5601 = vmatprep.subr.bf16.mxu0 %v9258_v47  ;;  %v9414_v47 = vld [vmem:[%s10498_s21 + $0x1d0] ss:$108 sps:$4 sm:$0xff]  }
  0x6f   : > { %5383 = vmatpush1.bf16.msra.mxu1 %v9253_v50  ;;  %v9421_v50 = vld [vmem:[%s10498_s21 + $0x294] ss:$108 sps:$4 sm:$0xff]  }
  0x70   : > { %5602 = vmatpush1.bf16.msra.mxu0 %v9256_v51  ;;  %5384 = vmatprep.subr.bf16.mxu1 %v9261_v52  ;;  %v9427_v51 = vld [vmem:[%s10498_s21 + $0x2ac] ss:$108 sps:$4 sm:$0xff]  }
  0x71   : > { %5603 = vmatprep.subr.bf16.mxu0 %v9264_v53  ;;  %v9355_v52 = vld [vmem:[%s12932_s3 + $0x378] ss:$12 sps:$4 sm:$0xff]  }
  0x72   : > { %v9358_v53 = vld [vmem:[%s12932_s3 + $0x7f8] ss:$12 sps:$4 sm:$0xff]  }
  0x73   : > { %5385 = vmatpush1.bf16.msra.mxu1 %v9259_v55  ;;  %v9366_v55 = vld [vmem:[%s12932_s3 + $0x814] ss:$12 sps:$4 sm:$0xff]  }
  0x74   : > { %5604 = vmatpush1.bf16.msra.mxu0 %v9262_v56  ;;  %5386 = vmatprep.subr.bf16.mxu1 %v9269_v58  ;;  %v9361_v56 = vld [vmem:[%s12932_s3 + $0x390] ss:$12 sps:$4 sm:$0xff]  }
  0x75   : > { %5605 = vmatprep.subr.bf16.mxu0 %v9274_v59  ;;  %v9423_v58 = vld [vmem:[%s10498_s21 + $0x290] ss:$108 sps:$4 sm:$0xff]   ;;  %v9432_v59 = vld [vmem:[%s10498_s21 + $0x2a8] ss:$108 sps:$4 sm:$0xff]  }
  0x77   : > { %5387 = vmatpush1.bf16.msra.mxu1 %v9267_v60  ;;  %v9369_v60 = vld [vmem:[%s12932_s3 + $0x3ac] ss:$12 sps:$4 sm:$0xff]  }
  0x78   : > { %5606 = vmatpush1.bf16.msra.mxu0 %v9272_v61  ;;  %5388 = vmatprep.subr.bf16.mxu1 %v9279_v62  ;;  %v9372_v61 = vld [vmem:[%s12932_s3 + $0x82c] ss:$12 sps:$4 sm:$0xff]   ;;  %v9441_v62 = vld [vmem:[%s10498_s21 + $0x14] ss:$108 sps:$4 sm:$0xff]  }
  0x79   : > { %5607 = vmatprep.subr.bf16.mxu0 %v9282_v63  ;;  %v9444_v63 = vld [vmem:[%s10498_s21 + $0x2c] ss:$108 sps:$4 sm:$0xff]  }
  0x7b   : > { %5389 = vmatpush1.bf16.msra.mxu1 %v9277_v0  ;;  %v9367_v0 = vld [vmem:[%s12932_s3 + $0x3a8] ss:$12 sps:$4 sm:$0xff]  }
  0x7c   : > { %5608 = vmatpush1.bf16.msra.mxu0 %v9280_v1  ;;  %5390 = vmatprep.subr.bf16.mxu1 %v9287_v2  ;;  %v9370_v1 = vld [vmem:[%s12932_s3 + $0x828] ss:$12 sps:$4 sm:$0xff]   ;;  %v9375_v2 = vld [vmem:[%s12932_s3 + $0x3c4] ss:$12 sps:$4 sm:$0xff]  }
  0x7d   : > { %5609 = vmatprep.subr.bf16.mxu0 %v9292_v3  ;;  %v9378_v3 = vld [vmem:[%s12932_s3 + $0x844] ss:$12 sps:$4 sm:$0xff]  }
  0x7f   : > { %5391 = vmatpush1.bf16.msra.mxu1 %v9285_v4  ;;  %v9373_v4 = vld [vmem:[%s12932_s3 + $0x3c0] ss:$12 sps:$4 sm:$0xff]  }
  0x80   : > { %5610 = vmatpush1.bf16.msra.mxu0 %v9290_v5  ;;  %5392 = vmatprep.subr.bf16.mxu1 %v9297_v6  ;;  %v9376_v5 = vld [vmem:[%s12932_s3 + $0x840] ss:$12 sps:$4 sm:$0xff]   ;;  %v9381_v6 = vld [vmem:[%s12932_s3 + $0x3dc] ss:$12 sps:$4 sm:$0xff]  }
  0x81   : > { %5611 = vmatprep.subr.bf16.mxu0 %v9300_v7  ;;  %v9384_v7 = vld [vmem:[%s12932_s3 + $0x85c] ss:$12 sps:$4 sm:$0xff]  }
  0x83   : > { %5393 = vmatpush1.bf16.msra.mxu1 %v9295_v8  ;;  %v9379_v8 = vld [vmem:[%s12932_s3 + $0x3d8] ss:$12 sps:$4 sm:$0xff]  }
  0x84   : > { %5612 = vmatpush1.bf16.msra.mxu0 %v9298_v9  ;;  %5394 = vmatprep.subr.bf16.mxu1 %v9305_v10  ;;  %v9382_v9 = vld [vmem:[%s12932_s3 + $0x858] ss:$12 sps:$4 sm:$0xff]   ;;  %v9390_v10 = vld [vmem:[%s12932_s3 + $0x3f4] ss:$12 sps:$4 sm:$0xff]  }
  0x85   : > { %5613 = vmatprep.subr.bf16.mxu0 %v9310_v11  ;;  %v9395_v11 = vld [vmem:[%s12932_s3 + $0x874] ss:$12 sps:$4 sm:$0xff]  }
  0x87   : > { %5395 = vmatpush1.bf16.msra.mxu1 %v9303_v12  ;;  %v9388_v12 = vld [vmem:[%s12932_s3 + $0x3f0] ss:$12 sps:$4 sm:$0xff]  }
  0x88   : > { %5614 = vmatpush1.bf16.msra.mxu0 %v9308_v13  ;;  %5396 = vmatprep.subr.bf16.mxu1 %v9315_v14  ;;  %v9393_v13 = vld [vmem:[%s12932_s3 + $0x870] ss:$12 sps:$4 sm:$0xff]   ;;  %v9399_v14 = vld [vmem:[%s12932_s3 + $0x40c] ss:$12 sps:$4 sm:$0xff]  }
  0x89   : > { %5615 = vmatprep.subr.bf16.mxu0 %v9318_v15  ;;  %v9402_v15 = vld [vmem:[%s12932_s3 + $0x88c] ss:$12 sps:$4 sm:$0xff]  }
  0x8b   : > { %5397 = vmatpush1.bf16.msra.mxu1 %v9313_v16  ;;  %v9397_v16 = vld [vmem:[%s12932_s3 + $0x408] ss:$12 sps:$4 sm:$0xff]  }
  0x8c   : > { %5616 = vmatpush1.bf16.msra.mxu0 %v9316_v17  ;;  %5439 = vmatprep.subr.bf16.mxu1 %v9324_v18  ;;  %v9400_v17 = vld [vmem:[%s12932_s3 + $0x888] ss:$12 sps:$4 sm:$0xff]   ;;  %v9408_v18 = vld [vmem:[%s12932_s3 + $0x424] ss:$12 sps:$4 sm:$0xff]  }
  0x8d   : > { %5658 = vmatprep.subr.bf16.mxu0 %v9330_v19  ;;  %v9413_v19 = vld [vmem:[%s12932_s3 + $0x8a4] ss:$12 sps:$4 sm:$0xff]  }
  0x8e   : > { %5399 = vmatmul.mubr.bf16.vlgmr.msra.gmra.mrb[0].mxu1 %v9319_v20  ;;  %v9406_v20 = vld [vmem:[%s12932_s3 + $0x420] ss:$12 sps:$4 sm:$0xff]  }
  0x8f   : > { %5618 = vmatmul.mubr.bf16.vlgmr.msra.gmra.mrb[0].mxu0 %v9325_v22  ;;  %5440 = vmatpush1.bf16.msra.mxu1 %v9322_v21  ;;  %v9411_v21 = vld [vmem:[%s12932_s3 + $0x8a0] ss:$12 sps:$4 sm:$0xff]   ;;  %v9417_v22 = vld [vmem:[%s12932_s3 + $0x43c] ss:$12 sps:$4 sm:$0xff]  }
  0x90   : > { %5659 = vmatpush1.bf16.msra.mxu0 %v9328_v23  ;;  %5441 = vmatprep.subr.bf16.mxu1 %v9333_v24  ;;  %v9420_v23 = vld [vmem:[%s12932_s3 + $0x8bc] ss:$12 sps:$4 sm:$0xff]   ;;  %v9415_v24 = vld [vmem:[%s12932_s3 + $0x438] ss:$12 sps:$4 sm:$0xff]  }
  0x91   : > { %5660 = vmatprep.subr.bf16.mxu0 %v9336_v25  ;;  %5408 = vmatprep.mubr.bf16.mxu1 %v9385_v26  ;;  %v9418_v25 = vld [vmem:[%s12932_s3 + $0x8b8] ss:$12 sps:$4 sm:$0xff]   ;;  %v9426_v26 = vld [vmem:[%s12932_s3 + $0x454] ss:$12 sps:$4 sm:$0xff]  }
  0x92   : > { %5627 = vmatprep.mubr.bf16.mxu0 %v9391_v27  ;;  %v9431_v27 = vld [vmem:[%s12932_s3 + $0x8d4] ss:$12 sps:$4 sm:$0xff]  }
  0x93   : > { %5442 = vmatpush1.bf16.msra.mxu1 %v9331_v28  ;;  %v9424_v28 = vld [vmem:[%s12932_s3 + $0x450] ss:$12 sps:$4 sm:$0xff]  }
  0x94   : > { %5661 = vmatpush1.bf16.msra.mxu0 %v9334_v29  ;;  %5443 = vmatprep.subr.bf16.mxu1 %v9339_v30  ;;  %v9429_v29 = vld [vmem:[%s12932_s3 + $0x8d0] ss:$12 sps:$4 sm:$0xff]   ;;  %v9435_v30 = vld [vmem:[%s12932_s3 + $0x46c] ss:$12 sps:$4 sm:$0xff]  }
  0x95   : > { %5662 = vmatprep.subr.bf16.mxu0 %v9342_v31  ;;  %v9438_v31 = vld [vmem:[%s12932_s3 + $0x8ec] ss:$12 sps:$4 sm:$0xff]  }
  0x96   : > { %5409 = vmatmul.mubr.bf16.gmra.mrb[4].mxu1 %v9387_v34  ;;  %v9439_v34 = vld [vmem:[%s10498_s21 + $0x10] ss:$108 sps:$4 sm:$0xff]  }
  0x97   : > { %5628 = vmatmul.mubr.bf16.gmra.mrb[4].mxu0 %v9396_v35  ;;  %5444 = vmatpush1.bf16.msra.mxu1 %v9337_v32  ;;  %v9433_v32 = vld [vmem:[%s12932_s3 + $0x468] ss:$12 sps:$4 sm:$0xff]  }
  0x98   : > { %5663 = vmatpush1.bf16.msra.mxu0 %v9340_v33  ;;  %5445 = vmatprep.subr.bf16.mxu1 %v9345_v36  ;;  %v9436_v33 = vld [vmem:[%s12932_s3 + $0x8e8] ss:$12 sps:$4 sm:$0xff]   ;;  %v9447_v36 = vld [vmem:[%s12932_s3 + $0x904] ss:$12 sps:$4 sm:$0xff]  }
  0x99   : > { %5664 = vmatprep.subr.bf16.mxu0 %v9348_v37  ;;  %5418 = vmatprep.mubr.bf16.mxu1 %v9403_v38  ;;  %v9442_v35 = vld [vmem:[%s10498_s21 + $0x28] ss:$108 sps:$4 sm:$0xff]   ;;  %v9450_v37 = vld [vmem:[%s12932_s3 + $0x1384] ss:$12 sps:$4 sm:$0xff]   ;;  %v9445_v38 = vld [vmem:[%s12932_s3 + $0x900] ss:$12 sps:$4 sm:$0xff]  }
  0x9a   : > { %5637 = vmatprep.mubr.bf16.mxu0 %v9409_v39  ;;  %v9448_v39 = vld [vmem:[%s12932_s3 + $0x1380] ss:$12 sps:$4 sm:$0xff]  }
  0x9b   : > { %5446 = vmatpush1.bf16.msra.mxu1 %v9343_v40  ;;  %v9453_v40 = vld [vmem:[%s12932_s3 + $0x91c] ss:$12 sps:$4 sm:$0xff]  }
  0x9c   : > { %5665 = vmatpush1.bf16.msra.mxu0 %v9346_v41  ;;  %5447 = vmatprep.subr.bf16.mxu1 %v9351_v42  ;;  %v9456_v41 = vld [vmem:[%s12932_s3 + $0x139c] ss:$12 sps:$4 sm:$0xff]   ;;  %v9457_v42 = vld [vmem:[%s10498_s21 + $0xec] ss:$108 sps:$4 sm:$0xff]  }
  0x9d   : > { %5666 = vmatprep.subr.bf16.mxu0 %v9354_v43  ;;  %v9451_v43 = vld [vmem:[%s12932_s3 + $0x918] ss:$12 sps:$4 sm:$0xff]  }
  0x9e   : > { %5419 = vmatmul.mubr.bf16.gmra.mrb[8].mxu1 %v9405_v46  ;;  %v9462_v46 = vld [vmem:[%s12932_s3 + $0x934] ss:$12 sps:$4 sm:$0xff]  }
  0x9f   : > { %5638 = vmatmul.mubr.bf16.gmra.mrb[8].mxu0 %v9414_v47  ;;  %5448 = vmatpush1.bf16.msra.mxu1 %v9349_v44  ;;  %v9513_v44 = vld [vmem:[%s10498_s21 + $0x104] ss:$108 sps:$4 sm:$0xff]   ;;  %v9459_v47 = vld [vmem:[%s10498_s21 + $0xe8] ss:$108 sps:$4 sm:$0xff]  }
  0xa0   : > { %5667 = vmatpush1.bf16.msra.mxu0 %v9352_v45  ;;  %5449 = vmatprep.subr.bf16.mxu1 %v9357_v48  ;;  %v9454_v45 = vld [vmem:[%s12932_s3 + $0x1398] ss:$12 sps:$4 sm:$0xff]   ;;  %v9465_v48 = vld [vmem:[%s12932_s3 + $0x13b4] ss:$12 sps:$4 sm:$0xff]  }
  0xa1   : > { %5668 = vmatprep.subr.bf16.mxu0 %v9360_v49  ;;  %5428 = vmatprep.mubr.bf16.mxu1 %v9421_v50  ;;  %v9460_v49 = vld [vmem:[%s12932_s3 + $0x930] ss:$12 sps:$4 sm:$0xff]  }
  0xa2   : > { %5647 = vmatprep.mubr.bf16.mxu0 %v9427_v51  ;;  %v9463_v50 = vld [vmem:[%s12932_s3 + $0x13b0] ss:$12 sps:$4 sm:$0xff]   ;;  %v9520_v51 = vld [vmem:[%s10498_s21 + $0x100] ss:$108 sps:$4 sm:$0xff]  }
  0xa3   : > { %5450 = vmatpush1.bf16.msra.mxu1 %v9355_v52  ;;  %v9468_v52 = vld [vmem:[%s12932_s3 + $0x94c] ss:$12 sps:$4 sm:$0xff]  }
  0xa4   : > { %5669 = vmatpush1.bf16.msra.mxu0 %v9358_v53  ;;  %5451 = vmatprep.subr.bf16.mxu1 %v9363_v54  ;;  %v9471_v53 = vld [vmem:[%s12932_s3 + $0x13cc] ss:$12 sps:$4 sm:$0xff]   ;;  %v9472_v54 = vld [vmem:[%s10498_s21 + $0x1c4] ss:$108 sps:$4 sm:$0xff]  }
  0xa5   : > { %5670 = vmatprep.subr.bf16.mxu0 %v9366_v55  ;;  %v9466_v55 = vld [vmem:[%s12932_s3 + $0x948] ss:$12 sps:$4 sm:$0xff]  }
  0xa6   : > { %5429 = vmatmul.mubr.bf16.gmra.mrb[12].mxu1 %v9423_v58  ;;  %v9477_v58 = vld [vmem:[%s12932_s3 + $0x964] ss:$12 sps:$4 sm:$0xff]  }
  0xa7   : > { %5648 = vmatmul.mubr.bf16.gmra.mrb[12].mxu0 %v9432_v59  ;;  %5452 = vmatpush1.bf16.msra.mxu1 %v9361_v56  ;;  %v9527_v56 = vld [vmem:[%s10498_s21 + $0x1dc] ss:$108 sps:$4 sm:$0xff]   ;;  %v9474_v59 = vld [vmem:[%s10498_s21 + $0x1c0] ss:$108 sps:$4 sm:$0xff]  }
  0xa8   : > { %5671 = vmatpush1.bf16.msra.mxu0 %v9364_v57  ;;  %5453 = vmatprep.subr.bf16.mxu1 %v9369_v60  ;;  %v9469_v57 = vld [vmem:[%s12932_s3 + $0x13c8] ss:$12 sps:$4 sm:$0xff]   ;;  %v9480_v60 = vld [vmem:[%s12932_s3 + $0x13e4] ss:$12 sps:$4 sm:$0xff]  }
  0xa9   : > { %5672 = vmatprep.subr.bf16.mxu0 %v9372_v61  ;;  %5471 = vmatprep.mubr.bf16.mxu1 %v9441_v62  ;;  %v9475_v61 = vld [vmem:[%s12932_s3 + $0x960] ss:$12 sps:$4 sm:$0xff]  }
  0xaa   : > { %5690 = vmatprep.mubr.bf16.mxu0 %v9444_v63  ;;  %v9478_v62 = vld [vmem:[%s12932_s3 + $0x13e0] ss:$12 sps:$4 sm:$0xff]   ;;  %v9534_v63 = vld [vmem:[%s10498_s21 + $0x1d8] ss:$108 sps:$4 sm:$0xff]  }
  0xab   : > { %5454 = vmatpush1.bf16.msra.mxu1 %v9367_v0  ;;  %v9483_v0 = vld [vmem:[%s12932_s3 + $0x97c] ss:$12 sps:$4 sm:$0xff]  }
  0xac   : > { %5673 = vmatpush1.bf16.msra.mxu0 %v9370_v1  ;;  %5455 = vmatprep.subr.bf16.mxu1 %v9375_v2  ;;  %v9486_v1 = vld [vmem:[%s12932_s3 + $0x13fc] ss:$12 sps:$4 sm:$0xff]  }
  0xad   : > { %5674 = vmatprep.subr.bf16.mxu0 %v9378_v3  ;;  %v9487_v2 = vld [vmem:[%s10498_s21 + $0x29c] ss:$108 sps:$4 sm:$0xff]   ;;  %v9481_v3 = vld [vmem:[%s12932_s3 + $0x978] ss:$12 sps:$4 sm:$0xff]  }
  0xaf   : > { %5456 = vmatpush1.bf16.msra.mxu1 %v9373_v4  ;;  %v9541_v4 = vld [vmem:[%s10498_s21 + $0x2b4] ss:$108 sps:$4 sm:$0xff]  }
  0xb0   : > { %5675 = vmatpush1.bf16.msra.mxu0 %v9376_v5  ;;  %5457 = vmatprep.subr.bf16.mxu1 %v9381_v6  ;;  %v9484_v5 = vld [vmem:[%s12932_s3 + $0x13f8] ss:$12 sps:$4 sm:$0xff]   ;;  %v9492_v6 = vld [vmem:[%s12932_s3 + $0x994] ss:$12 sps:$4 sm:$0xff]  }
  0xb1   : > { %5676 = vmatprep.subr.bf16.mxu0 %v9384_v7  ;;  %v9495_v7 = vld [vmem:[%s12932_s3 + $0x1414] ss:$12 sps:$4 sm:$0xff]  }
  0xb3   : > { %5458 = vmatpush1.bf16.msra.mxu1 %v9379_v8  ;;  %v9489_v8 = vld [vmem:[%s10498_s21 + $0x298] ss:$108 sps:$4 sm:$0xff]  }
  0xb4   : > { %5677 = vmatpush1.bf16.msra.mxu0 %v9382_v9  ;;  %5459 = vmatprep.subr.bf16.mxu1 %v9390_v10  ;;  %v9490_v9 = vld [vmem:[%s12932_s3 + $0x990] ss:$12 sps:$4 sm:$0xff]  }
  0xb5   : > { %5678 = vmatprep.subr.bf16.mxu0 %v9395_v11  ;;  %v9548_v10 = vld [vmem:[%s10498_s21 + $0x2b0] ss:$108 sps:$4 sm:$0xff]  }
  0xb6   : > { %v9493_v11 = vld [vmem:[%s12932_s3 + $0x1410] ss:$12 sps:$4 sm:$0xff]  }
  0xb7   : > { %5460 = vmatpush1.bf16.msra.mxu1 %v9388_v12  ;;  %v9498_v12 = vld [vmem:[%s12932_s3 + $0x9ac] ss:$12 sps:$4 sm:$0xff]  }
  0xb8   : > { %5679 = vmatpush1.bf16.msra.mxu0 %v9393_v13  ;;  %5461 = vmatprep.subr.bf16.mxu1 %v9399_v14  ;;  %v9501_v13 = vld [vmem:[%s12932_s3 + $0x142c] ss:$12 sps:$4 sm:$0xff]   ;;  %v9496_v14 = vld [vmem:[%s12932_s3 + $0x9a8] ss:$12 sps:$4 sm:$0xff]  }
  0xb9   : > { %5680 = vmatprep.subr.bf16.mxu0 %v9402_v15  ;;  %v9557_v15 = vld [vmem:[%s10498_s21 + $0x34] ss:$108 sps:$4 sm:$0xff]  }
  0xbb   : > { %5462 = vmatpush1.bf16.msra.mxu1 %v9397_v16  ;;  %v9499_v16 = vld [vmem:[%s12932_s3 + $0x1428] ss:$12 sps:$4 sm:$0xff]  }
  0xbc   : > { %5681 = vmatpush1.bf16.msra.mxu0 %v9400_v17  ;;  %5463 = vmatprep.subr.bf16.mxu1 %v9408_v18  ;;  %v9504_v17 = vld [vmem:[%s12932_s3 + $0x9c4] ss:$12 sps:$4 sm:$0xff]   ;;  %v9506_v18 = vld [vmem:[%s12932_s3 + $0xc8] ss:$12 sps:$4 sm:$0xff]  }
  0xbd   : > { %5682 = vmatprep.subr.bf16.mxu0 %v9413_v19  ;;  %v10316_v19 = vmov 0  }
  0xbf   : > { %5464 = vmatpush1.bf16.msra.mxu1 %v9406_v20  ;;  %v9502_v20 = vld [vmem:[%s12932_s3 + $0x9c0] ss:$12 sps:$4 sm:$0xff]  }
  0xc0   : > { %5683 = vmatpush1.bf16.msra.mxu0 %v9411_v21  ;;  %5465 = vmatprep.subr.bf16.mxu1 %v9417_v22  ;;  %v9505_v21 = vld [vmem:[%s10498_s21 + $0x68] ss:$108 sps:$4 sm:$0xff]  }
  0xc1   : > { %5684 = vmatprep.subr.bf16.mxu0 %v9420_v23  ;;  %v9507_v22 = vld [vmem:[%s12932_s3 + $0x8] ss:$12 sps:$4 sm:$0xff]  }
  0xc2   : > { %v9510_v23 = vld [vmem:[%s12932_s3 + $0x9dc] ss:$12 sps:$4 sm:$0xff]  }
  0xc3   : > { %5466 = vmatpush1.bf16.msra.mxu1 %v9415_v24  ;;  %v9511_v24 = vld [vmem:[%s12932_s3 + $0xe0] ss:$12 sps:$4 sm:$0xff]  }
  0xc4   : > { %5685 = vmatpush1.bf16.msra.mxu0 %v9418_v25  ;;  %5467 = vmatprep.subr.bf16.mxu1 %v9426_v26  ;;  %v9508_v25 = vld [vmem:[%s12932_s3 + $0x9d8] ss:$12 sps:$4 sm:$0xff]   ;;  %v9512_v26 = vld [vmem:[%s12932_s3 + $0x20] ss:$12 sps:$4 sm:$0xff]  }
  0xc5   : > { %5686 = vmatprep.subr.bf16.mxu0 %v9431_v27  ;;  %v9517_v27 = vld [vmem:[%s12932_s3 + $0x9f4] ss:$12 sps:$4 sm:$0xff]  }
  0xc7   : > { %5468 = vmatpush1.bf16.msra.mxu1 %v9424_v28  ;;  %v9519_v28 = vld [vmem:[%s12932_s3 + $0xf8] ss:$12 sps:$4 sm:$0xff]  }
  0xc8   : > { %5687 = vmatpush1.bf16.msra.mxu0 %v9429_v29  ;;  %5469 = vmatprep.subr.bf16.mxu1 %v9435_v30  ;;  %v9515_v29 = vld [vmem:[%s12932_s3 + $0x9f0] ss:$12 sps:$4 sm:$0xff]   ;;  %v9518_v30 = vld [vmem:[%s10498_s21 + $0x140] ss:$108 sps:$4 sm:$0xff]  }
  0xc9   : > { %5688 = vmatprep.subr.bf16.mxu0 %v9438_v31  ;;  %v9521_v31 = vld [vmem:[%s12932_s3 + $0x38] ss:$12 sps:$4 sm:$0xff]  }
  0xcb   : > { %5470 = vmatpush1.bf16.msra.mxu1 %v9433_v32  ;;  %v9524_v32 = vld [vmem:[%s12932_s3 + $0xa0c] ss:$12 sps:$4 sm:$0xff]  }
  0xcc   : > { %5689 = vmatpush1.bf16.msra.mxu0 %v9436_v33  ;;  %6242 = vmatprep.subr.bf16.mxu1 %v9450_v37  ;;  %v9525_v33 = vld [vmem:[%s12932_s3 + $0x110] ss:$12 sps:$4 sm:$0xff]   ;;  %v9533_v37 = vld [vmem:[%s12932_s3 + $0x128] ss:$12 sps:$4 sm:$0xff]  }
  0xcd   : > { %5731 = vmatprep.subr.bf16.mxu0 %v9447_v36  ;;  %v9531_v36 = vld [vmem:[%s12932_s3 + $0xa24] ss:$12 sps:$4 sm:$0xff]  }
  0xce   : > { %5472 = vmatmul.mubr.bf16.vlgmr.msra.gmra.mrb[0].mxu1 %v9439_v34  ;;  %v9522_v34 = vld [vmem:[%s12932_s3 + $0xa08] ss:$12 sps:$4 sm:$0xff]  }
  0xcf   : > { %5691 = vmatmul.mubr.bf16.vlgmr.msra.gmra.mrb[0].mxu0 %v9442_v35  ;;  %6243 = vmatpush1.bf16.msra.mxu1 %v9448_v39  ;;  %v9526_v35 = vld [vmem:[%s12932_s3 + $0x50] ss:$12 sps:$4 sm:$0xff]   ;;  %v9532_v39 = vld [vmem:[%s10498_s21 + $0x218] ss:$108 sps:$4 sm:$0xff]  }
  0xd0   : > { %5732 = vmatpush1.bf16.msra.mxu0 %v9445_v38  ;;  %6244 = vmatprep.subr.bf16.mxu1 %v9456_v41  ;;  %v9529_v38 = vld [vmem:[%s12932_s3 + $0xa20] ss:$12 sps:$4 sm:$0xff]   ;;  %v9538_v41 = vld [vmem:[%s12932_s3 + $0xa3c] ss:$12 sps:$4 sm:$0xff]  }
  0xd1   : > { %5733 = vmatprep.subr.bf16.mxu0 %v9453_v40  ;;  %5481 = vmatprep.mubr.bf16.mxu1 %v9457_v42  ;;  %v9535_v40 = vld [vmem:[%s12932_s3 + $0x68] ss:$12 sps:$4 sm:$0xff]   ;;  %v9539_v42 = vld [vmem:[%s12932_s3 + $0x140] ss:$12 sps:$4 sm:$0xff]  }
  0xd2   : > { %5700 = vmatprep.mubr.bf16.mxu0 %v9513_v44  ;;  %v9540_v44 = vld [vmem:[%s12932_s3 + $0x80] ss:$12 sps:$4 sm:$0xff]  }
  0xd3   : > { %6245 = vmatpush1.bf16.msra.mxu1 %v9454_v45  ;;  %v9545_v45 = vld [vmem:[%s12932_s3 + $0xa54] ss:$12 sps:$4 sm:$0xff]  }
  0xd4   : > { %5734 = vmatpush1.bf16.msra.mxu0 %v9451_v43  ;;  %6246 = vmatprep.subr.bf16.mxu1 %v9465_v48  ;;  %v9536_v43 = vld [vmem:[%s12932_s3 + $0xa38] ss:$12 sps:$4 sm:$0xff]   ;;  %v9546_v48 = vld [vmem:[%s10498_s21 + $0x2f0] ss:$108 sps:$4 sm:$0xff]  }
  0xd5   : > { %5735 = vmatprep.subr.bf16.mxu0 %v9462_v46  ;;  %v9547_v46 = vld [vmem:[%s12932_s3 + $0x158] ss:$12 sps:$4 sm:$0xff]  }
  0xd6   : > { %5482 = vmatmul.mubr.bf16.gmra.mrb[4].mxu1 %v9459_v47  ;;  %v9543_v47 = vld [vmem:[%s12932_s3 + $0xa50] ss:$12 sps:$4 sm:$0xff]  }
  0xd7   : > { %5701 = vmatmul.mubr.bf16.gmra.mrb[4].mxu0 %v9520_v51  ;;  %6247 = vmatpush1.bf16.msra.mxu1 %v9463_v50  ;;  %v9552_v50 = vld [vmem:[%s12932_s3 + $0xa6c] ss:$12 sps:$4 sm:$0xff]   ;;  %v9553_v51 = vld [vmem:[%s12932_s3 + $0x170] ss:$12 sps:$4 sm:$0xff]  }
  0xd8   : > { %5736 = vmatpush1.bf16.msra.mxu0 %v9460_v49  ;;  %6248 = vmatprep.subr.bf16.mxu1 %v9471_v53  ;;  %v9549_v49 = vld [vmem:[%s12932_s3 + $0x98] ss:$12 sps:$4 sm:$0xff]   ;;  %v9554_v53 = vld [vmem:[%s12932_s3 + $0xb0] ss:$12 sps:$4 sm:$0xff]  }
  0xd9   : > { %5737 = vmatprep.subr.bf16.mxu0 %v9468_v52  ;;  %5491 = vmatprep.mubr.bf16.mxu1 %v9472_v54  ;;  %v9550_v52 = vld [vmem:[%s12932_s3 + $0xa68] ss:$12 sps:$4 sm:$0xff]   ;;  %v9560_v54 = vld [vmem:[%s12932_s3 + $0xa84] ss:$12 sps:$4 sm:$0xff]  }
  0xda   : > { %5710 = vmatprep.mubr.bf16.mxu0 %v9527_v56  ;;  %v10223_v56 = vld [vmem:[%s10498_s21 + $0x4] ss:$108 sps:$4 sm:$0xff]  }
  0xdb   : > { %6249 = vmatpush1.bf16.msra.mxu1 %v9469_v57  ;;  %v9555_v57 = vld [vmem:[%s10498_s21 + $0x30] ss:$108 sps:$4 sm:$0xff]  }
  0xdc   : > { %5738 = vmatpush1.bf16.msra.mxu0 %v9466_v55  ;;  %6250 = vmatprep.subr.bf16.mxu1 %v9480_v60  ;;  %v9561_v55 = vld [vmem:[%s12932_s3 + $0x248] ss:$12 sps:$4 sm:$0xff]  }
  0xdd   : > { %5739 = vmatprep.subr.bf16.mxu0 %v9477_v58  ;;  %v9558_v58 = vld [vmem:[%s12932_s3 + $0xa80] ss:$12 sps:$4 sm:$0xff]   ;;  %v9565_v60 = vld [vmem:[%s12932_s3 + $0xa9c] ss:$12 sps:$4 sm:$0xff]  }
  0xde   : > { %5492 = vmatmul.mubr.bf16.gmra.mrb[8].mxu1 %v9474_v59  ;;  %v9562_v59 = vld [vmem:[%s12932_s3 + $0x188] ss:$12 sps:$4 sm:$0xff]  }
  0xdf   : > { %5711 = vmatmul.mubr.bf16.gmra.mrb[8].mxu0 %v9534_v63  ;;  %6251 = vmatpush1.bf16.msra.mxu1 %v9478_v62  ;;  %v9608_v62 = vld [vmem:[%s10498_s21 + $0x10c] ss:$108 sps:$4 sm:$0xff]  }
  0xe0   : > { %5740 = vmatpush1.bf16.msra.mxu0 %v9475_v61  ;;  %6252 = vmatprep.subr.bf16.mxu1 %v9486_v1  ;;  %v9566_v61 = vld [vmem:[%s12932_s3 + $0x260] ss:$12 sps:$4 sm:$0xff]  }
  0xe1   : > { %5741 = vmatprep.subr.bf16.mxu0 %v9483_v0  ;;  %5501 = vmatprep.mubr.bf16.mxu1 %v9487_v2  ;;  %v10224_v63 = vld [vmem:[%s10498_s21] ss:$108 sps:$4 sm:$0xff]   ;;  %v9563_v0 = vld [vmem:[%s12932_s3 + $0xa98] ss:$12 sps:$4 sm:$0xff]  }
  0xe2   : > { %5720 = vmatprep.mubr.bf16.mxu0 %v9541_v4  ;;  %v9567_v1 = vld [vmem:[%s12932_s3 + $0x1a0] ss:$12 sps:$4 sm:$0xff]   ;;  %v10225_v4 = vld [vmem:[%s10498_s21 + $0xdc] ss:$108 sps:$4 sm:$0xff]  }
  0xe3   : > { %6253 = vmatpush1.bf16.msra.mxu1 %v9484_v5  ;;  %v9570_v2 = vld [vmem:[%s12932_s3 + $0xab4] ss:$12 sps:$4 sm:$0xff]   ;;  %v9568_v5 = vld [vmem:[%s12932_s3 + $0xab0] ss:$12 sps:$4 sm:$0xff]  }
  0xe4   : > { %5742 = vmatpush1.bf16.msra.mxu0 %v9481_v3  ;;  %6254 = vmatprep.subr.bf16.mxu1 %v9495_v7  ;;  %v9571_v3 = vld [vmem:[%s12932_s3 + $0x278] ss:$12 sps:$4 sm:$0xff]  }
  0xe5   : > { %5743 = vmatprep.subr.bf16.mxu0 %v9492_v6  ;;  %v9614_v6 = vld [vmem:[%s10498_s21 + $0x108] ss:$108 sps:$4 sm:$0xff]   ;;  %v9572_v7 = vld [vmem:[%s12932_s3 + $0x1b8] ss:$12 sps:$4 sm:$0xff]  }
  0xe6   : > { %5502 = vmatmul.mubr.bf16.gmra.mrb[12].mxu1 %v9489_v8  ;;  %v9575_v8 = vld [vmem:[%s12932_s3 + $0xacc] ss:$12 sps:$4 sm:$0xff]  }
  0xe7   : > { %5721 = vmatmul.mubr.bf16.gmra.mrb[12].mxu0 %v9548_v10  ;;  %6255 = vmatpush1.bf16.msra.mxu1 %v9493_v11  ;;  %v9621_v10 = vld [vmem:[%s10498_s21 + $0x1e4] ss:$108 sps:$4 sm:$0xff]  }
  0xe8   : > { %5744 = vmatpush1.bf16.msra.mxu0 %v9490_v9  ;;  %6256 = vmatprep.subr.bf16.mxu1 %v9501_v13  ;;  %v9576_v9 = vld [vmem:[%s12932_s3 + $0x290] ss:$12 sps:$4 sm:$0xff]   ;;  %v10226_v11 = vld [vmem:[%s10498_s21 + $0xd8] ss:$108 sps:$4 sm:$0xff]  }
  0xe9   : > { %5745 = vmatprep.subr.bf16.mxu0 %v9498_v12  ;;  %6274 = vmatprep.mubr.bf16.mxu1 %v10316_v19  ;;  %v9573_v12 = vld [vmem:[%s12932_s3 + $0xac8] ss:$12 sps:$4 sm:$0xff]   ;;  %v9577_v13 = vld [vmem:[%s12932_s3 + $0x1d0] ss:$12 sps:$4 sm:$0xff]  }
  0xea   : > { %5763 = vmatprep.mubr.bf16.mxu0 %v9557_v15  ;;  %v9581_v15 = vld [vmem:[%s12932_s3 + $0x2a8] ss:$12 sps:$4 sm:$0xff]  }
  0xeb   : > { %6257 = vmatpush1.bf16.msra.mxu1 %v9499_v16  ;;  %v10227_v16 = vld [vmem:[%s10498_s21 + $0x1b4] ss:$108 sps:$4 sm:$0xff]  }
  0xec   : > { %5746 = vmatpush1.bf16.msra.mxu0 %v9496_v14  ;;  %8312 = vmatprep.subr.bf16.mxu1 %v9506_v18  ;;  %v9580_v14 = vld [vmem:[%s12932_s3 + $0xae4] ss:$12 sps:$4 sm:$0xff]   ;;  %v9582_v18 = vld [vmem:[%s12932_s3 + $0x1e8] ss:$12 sps:$4 sm:$0xff]  }
  0xed   : > { %5747 = vmatprep.subr.bf16.mxu0 %v9504_v17  ;;  %v9578_v17 = vld [vmem:[%s12932_s3 + $0xae0] ss:$12 sps:$4 sm:$0xff]  }
  0xee   : > { %6275 = vmatmul.mubr.bf16.vlgmr.msra.gmra.mrb[16].mxu1 %v9505_v21  ;;  %v9586_v21 = vld [vmem:[%s12932_s3 + $0x2c0] ss:$12 sps:$4 sm:$0xff]  }
  0xef   : > { %8313 = vmatpush3.bf16.msra.mxu1 %v9507_v22  ;;  %6284 = vmatprep.mubr.bf16.mxu1 %v10316_v19  ;;  %v9634_v22 = vld [vmem:[%s10498_s21 + $0x2bc] ss:$108 sps:$4 sm:$0xff]  }
  0xf0   : > { %5748 = vmatpush1.bf16.msra.mxu0 %v9502_v20  ;;  %8314 = vmatprep.subr.bf16.mxu1 %v9511_v24  ;;  %v9585_v20 = vld [vmem:[%s12932_s3 + $0xafc] ss:$12 sps:$4 sm:$0xff]   ;;  %v9583_v24 = vld [vmem:[%s12932_s3 + $0xaf8] ss:$12 sps:$4 sm:$0xff]  }
  0xf1   : > { %5749 = vmatprep.subr.bf16.mxu0 %v9510_v23  ;;  %v10228_v23 = vld [vmem:[%s10498_s21 + $0x1b0] ss:$108 sps:$4 sm:$0xff]  }
  0xf3   : > { %8315 = vmatpush3.bf16.msra.mxu1 %v9512_v26  ;;  %v9590_v26 = vld [vmem:[%s12932_s3 + $0xb14] ss:$12 sps:$4 sm:$0xff]  }
  0xf4   : > { %5750 = vmatpush1.bf16.msra.mxu0 %v9508_v25  ;;  %8316 = vmatprep.subr.bf16.mxu1 %v9519_v28  ;;  %v9587_v25 = vld [vmem:[%s12932_s3 + $0x200] ss:$12 sps:$4 sm:$0xff]  }
  0xf5   : > { %5751 = vmatprep.subr.bf16.mxu0 %v9517_v27  ;;  %v9591_v27 = vld [vmem:[%s12932_s3 + $0x2d8] ss:$12 sps:$4 sm:$0xff]  }
  0xf6   : > { %6285 = vmatmul.mubr.bf16.gmra.mrb[20].mxu1 %v9518_v30  ;;  %v10229_v28 = vld [vmem:[%s10498_s21 + $0x28c] ss:$108 sps:$4 sm:$0xff]  }
  0xf7   : > { %8317 = vmatpush3.bf16.msra.mxu1 %v9521_v31  ;;  %6294 = vmatprep.mubr.bf16.mxu1 %v10316_v19  ;;  %v9592_v30 = vld [vmem:[%s12932_s3 + $0x218] ss:$12 sps:$4 sm:$0xff]  }
  0xf8   : > { %5752 = vmatpush1.bf16.msra.mxu0 %v9515_v29  ;;  %8318 = vmatprep.subr.bf16.mxu1 %v9525_v33  ;;  %v9588_v29 = vld [vmem:[%s12932_s3 + $0xb10] ss:$12 sps:$4 sm:$0xff]   ;;  %v9640_v31 = vld [vmem:[%s10498_s21 + $0x2b8] ss:$108 sps:$4 sm:$0xff]  }
  0xf9   : > { %5753 = vmatprep.subr.bf16.mxu0 %v9524_v32  ;;  %v9595_v32 = vld [vmem:[%s12932_s3 + $0xb2c] ss:$12 sps:$4 sm:$0xff]   ;;  %v9596_v33 = vld [vmem:[%s12932_s3 + $0x2f0] ss:$12 sps:$4 sm:$0xff]  }
  0xfb   : > { %8319 = vmatpush3.bf16.msra.mxu1 %v9526_v35  ;;  %v9649_v35 = vld [vmem:[%s10498_s21 + $0x3c] ss:$108 sps:$4 sm:$0xff]  }
  0xfc   : > { %5754 = vmatpush1.bf16.msra.mxu0 %v9522_v34  ;;  %8320 = vmatprep.subr.bf16.mxu1 %v9533_v37  ;;  %v9593_v34 = vld [vmem:[%s12932_s3 + $0xb28] ss:$12 sps:$4 sm:$0xff]   ;;  %v9597_v37 = vld [vmem:[%s12932_s3 + $0x230] ss:$12 sps:$4 sm:$0xff]  }
  0xfd   : > { %5755 = vmatprep.subr.bf16.mxu0 %v9531_v36  ;;  %v10230_v36 = vld [vmem:[%s10498_s21 + $0x288] ss:$108 sps:$4 sm:$0xff]  }
  0xfe   : > { %6295 = vmatmul.mubr.bf16.gmra.mrb[24].mxu1 %v9532_v39  ;;  %v9601_v39 = vld [vmem:[%s12932_s3 + $0x3c8] ss:$12 sps:$4 sm:$0xff]  }
  0xff   : > { %8321 = vmatpush3.bf16.msra.mxu1 %v9535_v40  ;;  %6304 = vmatprep.mubr.bf16.mxu1 %v10316_v19  ;;  %v9627_v19 = vld [vmem:[%s10498_s21 + $0x1e0] ss:$108 sps:$4 sm:$0xff]  }
 0x100   : > { %5756 = vmatpush1.bf16.msra.mxu0 %v9529_v38  ;;  %8322 = vmatprep.subr.bf16.mxu1 %v9539_v42  ;;  %v9600_v38 = vld [vmem:[%s12932_s3 + $0xb44] ss:$12 sps:$4 sm:$0xff]   ;;  %v10231_v40 = vld [vmem:[%s10498_s21 + $0xc] ss:$108 sps:$4 sm:$0xff]   ;;  %v9602_v42 = vld [vmem:[%s12932_s3 + $0x308] ss:$12 sps:$4 sm:$0xff]  }
 0x101   : > { %5757 = vmatprep.subr.bf16.mxu0 %v9538_v41  ;;  %v9598_v41 = vld [vmem:[%s12932_s3 + $0xb40] ss:$12 sps:$4 sm:$0xff]  }
 0x103   : > { %8323 = vmatpush3.bf16.msra.mxu1 %v9540_v44  ;;  %v9606_v44 = vld [vmem:[%s12932_s3 + $0x3e0] ss:$12 sps:$4 sm:$0xff]  }
 0x104   : > { %5758 = vmatpush1.bf16.msra.mxu0 %v9536_v43  ;;  %8324 = vmatprep.subr.bf16.mxu1 %v9547_v46  ;;  %v9605_v43 = vld [vmem:[%s12932_s3 + $0xb5c] ss:$12 sps:$4 sm:$0xff]  }
 0x105   : > { %5759 = vmatprep.subr.bf16.mxu0 %v9545_v45  ;;  %v9603_v45 = vld [vmem:[%s12932_s3 + $0xb58] ss:$12 sps:$4 sm:$0xff]   ;;  %v10232_v46 = vld [vmem:[%s10498_s21 + $0x8] ss:$108 sps:$4 sm:$0xff]  }
 0x106   : > { %6305 = vmatmul.mubr.bf16.gmra.mrb[28].mxu1 %v9546_v48  ;;  %v9612_v48 = vld [vmem:[%s12932_s3 + $0xb74] ss:$12 sps:$4 sm:$0xff]  }
 0x107   : > { %8325 = vmatpush3.bf16.msra.mxu1 %v9549_v49  ;;  %6347 = vmatprep.mubr.bf16.mxu1 %v10223_v56  ;;  %v9613_v49 = vld [vmem:[%s12932_s3 + $0x3f8] ss:$12 sps:$4 sm:$0xff]   ;;  %v9616_v56 = vld [vmem:[%s12932_s3 + $0xb88] ss:$12 sps:$4 sm:$0xff]  }
 0x108   : > { %5760 = vmatpush1.bf16.msra.mxu0 %v9543_v47  ;;  %8326 = vmatprep.subr.bf16.mxu1 %v9553_v51  ;;  %v9607_v47 = vld [vmem:[%s12932_s3 + $0x320] ss:$12 sps:$4 sm:$0xff]   ;;  %v9610_v51 = vld [vmem:[%s12932_s3 + $0xb70] ss:$12 sps:$4 sm:$0xff]  }
 0x109   : > { %5761 = vmatprep.subr.bf16.mxu0 %v9552_v50  ;;  %v10233_v50 = vld [vmem:[%s10498_s21 + $0xe4] ss:$108 sps:$4 sm:$0xff]  }
 0x10b   : > { %8327 = vmatpush3.bf16.msra.mxu1 %v9554_v53  ;;  %v9618_v53 = vld [vmem:[%s12932_s3 + $0xb8c] ss:$12 sps:$4 sm:$0xff]  }
 0x10c   : > { %5762 = vmatpush1.bf16.msra.mxu0 %v9550_v52  ;;  %8352 = vmatprep.subr.bf16.mxu1 %v9561_v55  ;;  %v9615_v52 = vld [vmem:[%s12932_s3 + $0x338] ss:$12 sps:$4 sm:$0xff]   ;;  %v10234_v55 = vld [vmem:[%s10498_s21 + $0xe0] ss:$108 sps:$4 sm:$0xff]  }
 0x10d   : > { %5804 = vmatprep.subr.bf16.mxu0 %v9560_v54  ;;  %v9619_v54 = vld [vmem:[%s12932_s3 + $0x410] ss:$12 sps:$4 sm:$0xff]  }
 0x10e   : > { %6348 = vmatmul.mubr.bf16.vlgmr.msra.gmra.mrb[32].mxu1 %v10224_v63  ;;  %v9631_v63 = vld [vmem:[%s12932_s3 + $0xbbc] ss:$12 sps:$4 sm:$0xff]  }
 0x10f   : > { %5764 = vmatmul.mubr.bf16.vlgmr.msra.gmra.mrb[0].mxu0 %v9555_v57  ;;  %8353 = vmatpush3.bf16.msra.mxu1 %v9562_v59  ;;  %v9620_v57 = vld [vmem:[%s12932_s3 + $0x350] ss:$12 sps:$4 sm:$0xff]   ;;  %v9626_v59 = vld [vmem:[%s12932_s3 + $0x428] ss:$12 sps:$4 sm:$0xff]  }
 0x110   : > { %5805 = vmatpush1.bf16.msra.mxu0 %v9558_v58  ;;  %8354 = vmatprep.subr.bf16.mxu1 %v9566_v61  ;;  %v9625_v58 = vld [vmem:[%s12932_s3 + $0xba4] ss:$12 sps:$4 sm:$0xff]   ;;  %v9623_v61 = vld [vmem:[%s12932_s3 + $0xba0] ss:$12 sps:$4 sm:$0xff]  }
 0x111   : > { %5806 = vmatprep.subr.bf16.mxu0 %v9565_v60  ;;  %6355 = vmatprep.mubr.bf16.mxu1 %v10225_v4  ;;  %v10235_v60 = vld [vmem:[%s10498_s21 + $0x1bc] ss:$108 sps:$4 sm:$0xff]   ;;  %v9638_v4 = vld [vmem:[%s12932_s3 + $0xbd4] ss:$12 sps:$4 sm:$0xff]  }
 0x112   : > { %5773 = vmatprep.mubr.bf16.mxu0 %v9608_v62  ;;  %v9628_v62 = vld [vmem:[%s12932_s3 + $0x368] ss:$12 sps:$4 sm:$0xff]  }
 0x113   : > { %8355 = vmatpush3.bf16.msra.mxu1 %v9567_v1  ;;  %v10236_v1 = vld [vmem:[%s10498_s21 + $0x1b8] ss:$108 sps:$4 sm:$0xff]  }
 0x114   : > { %5807 = vmatpush1.bf16.msra.mxu0 %v9563_v0  ;;  %8356 = vmatprep.subr.bf16.mxu1 %v9571_v3  ;;  %v9632_v0 = vld [vmem:[%s12932_s3 + $0x440] ss:$12 sps:$4 sm:$0xff]  }
 0x115   : > { %5808 = vmatprep.subr.bf16.mxu0 %v9570_v2  ;;  %v9629_v2 = vld [vmem:[%s12932_s3 + $0xbb8] ss:$12 sps:$4 sm:$0xff]   ;;  %v9633_v3 = vld [vmem:[%s12932_s3 + $0x380] ss:$12 sps:$4 sm:$0xff]  }
 0x116   : > { %6356 = vmatmul.mubr.bf16.gmra.mrb[36].mxu1 %v10226_v11  ;;  %v10238_v11 = vld [vmem:[%s10498_s21 + $0x290] ss:$108 sps:$4 sm:$0xff]  }
 0x117   : > { %5774 = vmatmul.mubr.bf16.gmra.mrb[4].mxu0 %v9614_v6  ;;  %8357 = vmatpush3.bf16.msra.mxu1 %v9572_v7  ;;  %v10237_v6 = vld [vmem:[%s10498_s21 + $0x294] ss:$108 sps:$4 sm:$0xff]   ;;  %v9636_v7 = vld [vmem:[%s12932_s3 + $0xbd0] ss:$12 sps:$4 sm:$0xff]  }
 0x118   : > { %5809 = vmatpush1.bf16.msra.mxu0 %v9568_v5  ;;  %8358 = vmatprep.subr.bf16.mxu1 %v9576_v9  ;;  %v9639_v5 = vld [vmem:[%s12932_s3 + $0x458] ss:$12 sps:$4 sm:$0xff]  }
 0x119   : > { %5810 = vmatprep.subr.bf16.mxu0 %v9575_v8  ;;  %6363 = vmatprep.mubr.bf16.mxu1 %v10227_v16  ;;  %v9641_v8 = vld [vmem:[%s12932_s3 + $0x398] ss:$12 sps:$4 sm:$0xff]   ;;  %v9653_v16 = vld [vmem:[%s12932_s3 + $0x548] ss:$12 sps:$4 sm:$0xff]  }
 0x11a   : > { %5783 = vmatprep.mubr.bf16.mxu0 %v9621_v10  ;;  %v9644_v9 = vld [vmem:[%s12932_s3 + $0xbec] ss:$12 sps:$4 sm:$0xff]   ;;  %v9645_v10 = vld [vmem:[%s12932_s3 + $0x470] ss:$12 sps:$4 sm:$0xff]  }
 0x11b   : > { %8359 = vmatpush3.bf16.msra.mxu1 %v9577_v13  ;;  %v9646_v13 = vld [vmem:[%s12932_s3 + $0x3b0] ss:$12 sps:$4 sm:$0xff]  }
 0x11c   : > { %5811 = vmatpush1.bf16.msra.mxu0 %v9573_v12  ;;  %8360 = vmatprep.subr.bf16.mxu1 %v9581_v15  ;;  %v9642_v12 = vld [vmem:[%s12932_s3 + $0xbe8] ss:$12 sps:$4 sm:$0xff]   ;;  %v9647_v15 = vld [vmem:[%s10498_s21 + $0x38] ss:$108 sps:$4 sm:$0xff]  }
 0x11d   : > { %5812 = vmatprep.subr.bf16.mxu0 %v9580_v14  ;;  %v9652_v14 = vld [vmem:[%s12932_s3 + $0xc04] ss:$12 sps:$4 sm:$0xff]  }
 0x11e   : > { %6364 = vmatmul.mubr.bf16.gmra.mrb[40].mxu1 %v10228_v23  ;;  %v10240_v23 = vld [vmem:[%s10498_s21 + $0x10] ss:$108 sps:$4 sm:$0xff]  }
 0x11f   : > { %5784 = vmatmul.mubr.bf16.gmra.mrb[8].mxu0 %v9627_v19  ;;  %8361 = vmatpush3.bf16.msra.mxu1 %v9582_v18  ;;  %v9650_v18 = vld [vmem:[%s12932_s3 + $0xc00] ss:$12 sps:$4 sm:$0xff]   ;;  %v9654_v19 = vld [vmem:[%s12932_s3 + $0x488] ss:$12 sps:$4 sm:$0xff]  }
 0x120   : > { %5813 = vmatpush1.bf16.msra.mxu0 %v9578_v17  ;;  %8362 = vmatprep.subr.bf16.mxu1 %v9586_v21  ;;  %v10239_v17 = vld [vmem:[%s10498_s21 + $0x14] ss:$108 sps:$4 sm:$0xff]  }
 0x121   : > { %5814 = vmatprep.subr.bf16.mxu0 %v9585_v20  ;;  %6371 = vmatprep.mubr.bf16.mxu1 %v10229_v28  ;;  %v9657_v20 = vld [vmem:[%s12932_s3 + $0xc1c] ss:$12 sps:$4 sm:$0xff]   ;;  %v9658_v21 = vld [vmem:[%s12932_s3 + $0x560] ss:$12 sps:$4 sm:$0xff]  }
 0x122   : > { %5793 = vmatprep.mubr.bf16.mxu0 %v9634_v22  ;;  %v9700_v22 = vld [vmem:[%s10498_s21 + $0x114] ss:$108 sps:$4 sm:$0xff]   ;;  %v10241_v28 = vld [vmem:[%s10498_s21 + $0xec] ss:$108 sps:$4 sm:$0xff]  }
 0x123   : > { %8363 = vmatpush3.bf16.msra.mxu1 %v9587_v25  ;;  %v9659_v25 = vld [vmem:[%s12932_s3 + $0x4a0] ss:$12 sps:$4 sm:$0xff]  }
 0x124   : > { %5815 = vmatpush1.bf16.msra.mxu0 %v9583_v24  ;;  %8364 = vmatprep.subr.bf16.mxu1 %v9591_v27  ;;  %v9655_v24 = vld [vmem:[%s12932_s3 + $0xc18] ss:$12 sps:$4 sm:$0xff]  }
 0x125   : > { %5816 = vmatprep.subr.bf16.mxu0 %v9590_v26  ;;  %v9662_v26 = vld [vmem:[%s12932_s3 + $0xc34] ss:$12 sps:$4 sm:$0xff]   ;;  %v9663_v27 = vld [vmem:[%s12932_s3 + $0x578] ss:$12 sps:$4 sm:$0xff]  }
 0x126   : > { %6372 = vmatmul.mubr.bf16.gmra.mrb[44].mxu1 %v10230_v36  ;;  %v9665_v36 = vld [vmem:[%s12932_s3 + $0xc48] ss:$12 sps:$4 sm:$0xff]  }
 0x127   : > { %5794 = vmatmul.mubr.bf16.gmra.mrb[12].mxu0 %v9640_v31  ;;  %8365 = vmatpush3.bf16.msra.mxu1 %v9592_v30  ;;  %v9664_v30 = vld [vmem:[%s12932_s3 + $0x4b8] ss:$12 sps:$4 sm:$0xff]   ;;  %v9706_v31 = vld [vmem:[%s10498_s21 + $0x110] ss:$108 sps:$4 sm:$0xff]  }
 0x128   : > { %5817 = vmatpush1.bf16.msra.mxu0 %v9588_v29  ;;  %8366 = vmatprep.subr.bf16.mxu1 %v9596_v33  ;;  %v9660_v29 = vld [vmem:[%s12932_s3 + $0xc30] ss:$12 sps:$4 sm:$0xff]  }
 0x129   : > { %5818 = vmatprep.subr.bf16.mxu0 %v9595_v32  ;;  %6412 = vmatprep.mubr.bf16.mxu1 %v10231_v40  ;;  %v9667_v32 = vld [vmem:[%s12932_s3 + $0xc4c] ss:$12 sps:$4 sm:$0xff]   ;;  %v9668_v33 = vld [vmem:[%s12932_s3 + $0x590] ss:$12 sps:$4 sm:$0xff]  }
 0x12a   : > { %5836 = vmatprep.mubr.bf16.mxu0 %v9649_v35  ;;  %v10242_v35 = vld [vmem:[%s10498_s21 + $0xe8] ss:$108 sps:$4 sm:$0xff]   ;;  %v10243_v40 = vld [vmem:[%s10498_s21 + $0x1c4] ss:$108 sps:$4 sm:$0xff]  }
 0x12b   : > { %8367 = vmatpush3.bf16.msra.mxu1 %v9597_v37  ;;  %v9669_v37 = vld [vmem:[%s12932_s3 + $0x4d0] ss:$12 sps:$4 sm:$0xff]  }
 0x12c   : > { %5819 = vmatpush1.bf16.msra.mxu0 %v9593_v34  ;;  %8392 = vmatprep.subr.bf16.mxu1 %v9601_v39  ;;  %v9713_v34 = vld [vmem:[%s10498_s21 + $0x1ec] ss:$108 sps:$4 sm:$0xff]   ;;  %v9673_v39 = vld [vmem:[%s12932_s3 + $0x5a8] ss:$12 sps:$4 sm:$0xff]  }
 0x12d   : > { %5820 = vmatprep.subr.bf16.mxu0 %v9600_v38  ;;  %v9672_v38 = vld [vmem:[%s12932_s3 + $0xc64] ss:$12 sps:$4 sm:$0xff]  }
 0x12e   : > { %6413 = vmatmul.mubr.bf16.vlgmr.msra.gmra.mrb[48].mxu1 %v10232_v46  ;;  %v9726_v46 = vld [vmem:[%s10498_s21 + $0x2c4] ss:$108 sps:$4 sm:$0xff]  }
 0x12f   : > { %8393 = vmatpush3.bf16.msra.mxu1 %v9602_v42  ;;  %6420 = vmatprep.mubr.bf16.mxu1 %v10233_v50  ;;  %v9674_v42 = vld [vmem:[%s12932_s3 + $0x4e8] ss:$12 sps:$4 sm:$0xff]  }
 0x130   : > { %5821 = vmatpush1.bf16.msra.mxu0 %v9598_v41  ;;  %8394 = vmatprep.subr.bf16.mxu1 %v9606_v44  ;;  %v9670_v41 = vld [vmem:[%s12932_s3 + $0xc60] ss:$12 sps:$4 sm:$0xff]   ;;  %v9677_v44 = vld [vmem:[%s12932_s3 + $0xc7c] ss:$12 sps:$4 sm:$0xff]  }
 0x131   : > { %5822 = vmatprep.subr.bf16.mxu0 %v9605_v43  ;;  %v9719_v43 = vld [vmem:[%s10498_s21 + $0x1e8] ss:$108 sps:$4 sm:$0xff]  }
 0x132   : > { %v9682_v50 = vld [vmem:[%s12932_s3 + $0xc94] ss:$12 sps:$4 sm:$0xff]  }
 0x133   : > { %8395 = vmatpush3.bf16.msra.mxu1 %v9607_v47  ;;  %v10244_v47 = vld [vmem:[%s10498_s21 + $0x1c0] ss:$108 sps:$4 sm:$0xff]  }
 0x134   : > { %5823 = vmatpush1.bf16.msra.mxu0 %v9603_v45  ;;  %8396 = vmatprep.subr.bf16.mxu1 %v9613_v49  ;;  %v9678_v45 = vld [vmem:[%s12932_s3 + $0x5c0] ss:$12 sps:$4 sm:$0xff]  }
 0x135   : > { %5824 = vmatprep.subr.bf16.mxu0 %v9612_v48  ;;  %v9675_v48 = vld [vmem:[%s12932_s3 + $0xc78] ss:$12 sps:$4 sm:$0xff]   ;;  %v9679_v49 = vld [vmem:[%s12932_s3 + $0x500] ss:$12 sps:$4 sm:$0xff]  }
 0x136   : > { %6421 = vmatmul.mubr.bf16.gmra.mrb[52].mxu1 %v10234_v55  ;;  %v9732_v55 = vld [vmem:[%s10498_s21 + $0x2c0] ss:$108 sps:$4 sm:$0xff]  }
 0x137   : > { %8397 = vmatpush3.bf16.msra.mxu1 %v9615_v52  ;;  %6428 = vmatprep.mubr.bf16.mxu1 %v10235_v60  ;;  %v10245_v52 = vld [vmem:[%s10498_s21 + $0x29c] ss:$108 sps:$4 sm:$0xff]  }
 0x138   : > { %5825 = vmatpush1.bf16.msra.mxu0 %v9610_v51  ;;  %8398 = vmatprep.subr.bf16.mxu1 %v9619_v54  ;;  %v9683_v51 = vld [vmem:[%s12932_s3 + $0x5d8] ss:$12 sps:$4 sm:$0xff]   ;;  %v9685_v60 = vld [vmem:[%s12932_s3 + $0xca8] ss:$12 sps:$4 sm:$0xff]  }
 0x139   : > { %5826 = vmatprep.subr.bf16.mxu0 %v9618_v53  ;;  %v9680_v53 = vld [vmem:[%s12932_s3 + $0xc90] ss:$12 sps:$4 sm:$0xff]   ;;  %v9684_v54 = vld [vmem:[%s12932_s3 + $0x518] ss:$12 sps:$4 sm:$0xff]  }
 0x13b   : > { %8399 = vmatpush3.bf16.msra.mxu1 %v9620_v57  ;;  %v9688_v57 = vld [vmem:[%s12932_s3 + $0x5f0] ss:$12 sps:$4 sm:$0xff]  }
 0x13c   : > { %5827 = vmatpush1.bf16.msra.mxu0 %v9616_v56  ;;  %8400 = vmatprep.subr.bf16.mxu1 %v9626_v59  ;;  %v9687_v56 = vld [vmem:[%s12932_s3 + $0xcac] ss:$12 sps:$4 sm:$0xff]  }
 0x13d   : > { %5828 = vmatprep.subr.bf16.mxu0 %v9625_v58  ;;  %v9741_v58 = vld [vmem:[%s10498_s21 + $0x44] ss:$108 sps:$4 sm:$0xff]  }
 0x13e   : > { %6429 = vmatmul.mubr.bf16.gmra.mrb[56].mxu1 %v10236_v1  ;;  %v10246_v59 = vld [vmem:[%s10498_s21 + $0x298] ss:$108 sps:$4 sm:$0xff]   ;;  %v9690_v1 = vld [vmem:[%s12932_s3 + $0xcc0] ss:$12 sps:$4 sm:$0xff]  }
 0x13f   : > { %8401 = vmatpush3.bf16.msra.mxu1 %v9628_v62  ;;  %6436 = vmatprep.mubr.bf16.mxu1 %v10237_v6  ;;  %v9692_v62 = vld [vmem:[%s12932_s3 + $0xcc4] ss:$12 sps:$4 sm:$0xff]  }
 0x140   : > { %5829 = vmatpush1.bf16.msra.mxu0 %v9623_v61  ;;  %8402 = vmatprep.subr.bf16.mxu1 %v9632_v0  ;;  %v9689_v61 = vld [vmem:[%s12932_s3 + $0x530] ss:$12 sps:$4 sm:$0xff]   ;;  %v10248_v6 = vld [vmem:[%s10498_s21 + $0x18] ss:$108 sps:$4 sm:$0xff]  }
 0x141   : > { %5830 = vmatprep.subr.bf16.mxu0 %v9631_v63  ;;  %v9693_v63 = vld [vmem:[%s12932_s3 + $0x6c8] ss:$12 sps:$4 sm:$0xff]  }
 0x142   : > { %v10247_v0 = vld [vmem:[%s10498_s21 + $0x1c] ss:$108 sps:$4 sm:$0xff]  }
 0x143   : > { %8403 = vmatpush3.bf16.msra.mxu1 %v9633_v3  ;;  %v9697_v3 = vld [vmem:[%s12932_s3 + $0xcdc] ss:$12 sps:$4 sm:$0xff]  }
 0x144   : > { %5831 = vmatpush1.bf16.msra.mxu0 %v9629_v2  ;;  %8404 = vmatprep.subr.bf16.mxu1 %v9639_v5  ;;  %v9694_v2 = vld [vmem:[%s12932_s3 + $0x608] ss:$12 sps:$4 sm:$0xff]   ;;  %v9695_v5 = vld [vmem:[%s12932_s3 + $0xcd8] ss:$12 sps:$4 sm:$0xff]  }
 0x145   : > { %5832 = vmatprep.subr.bf16.mxu0 %v9638_v4  ;;  %v9698_v4 = vld [vmem:[%s12932_s3 + $0x6e0] ss:$12 sps:$4 sm:$0xff]  }
 0x146   : > { %6437 = vmatmul.mubr.bf16.gmra.mrb[60].mxu1 %v10238_v11  ;;  %v9702_v11 = vld [vmem:[%s12932_s3 + $0xcf0] ss:$12 sps:$4 sm:$0xff]  }
 0x147   : > { %8405 = vmatpush3.bf16.msra.mxu1 %v9641_v8  ;;  %6477 = vmatprep.mubr.bf16.mxu1 %v10239_v17  ;;  %v9704_v8 = vld [vmem:[%s12932_s3 + $0xcf4] ss:$12 sps:$4 sm:$0xff]   ;;  %v9712_v17 = vld [vmem:[%s12932_s3 + $0x650] ss:$12 sps:$4 sm:$0xff]  }
 0x148   : > { %5833 = vmatpush1.bf16.msra.mxu0 %v9636_v7  ;;  %8406 = vmatprep.subr.bf16.mxu1 %v9645_v10  ;;  %v9699_v7 = vld [vmem:[%s12932_s3 + $0x620] ss:$12 sps:$4 sm:$0xff]  }
 0x149   : > { %5834 = vmatprep.subr.bf16.mxu0 %v9644_v9  ;;  %v9705_v9 = vld [vmem:[%s12932_s3 + $0x6f8] ss:$12 sps:$4 sm:$0xff]   ;;  %v10249_v10 = vld [vmem:[%s10498_s21 + $0xf4] ss:$108 sps:$4 sm:$0xff]  }
 0x14b   : > { %8407 = vmatpush3.bf16.msra.mxu1 %v9646_v13  ;;  %v9710_v13 = vld [vmem:[%s12932_s3 + $0xd0c] ss:$12 sps:$4 sm:$0xff]  }
 0x14c   : > { %5835 = vmatpush1.bf16.msra.mxu0 %v9642_v12  ;;  %8432 = vmatprep.subr.bf16.mxu1 %v9653_v16  ;;  %v9707_v12 = vld [vmem:[%s12932_s3 + $0x638] ss:$12 sps:$4 sm:$0xff]   ;;  %v10250_v16 = vld [vmem:[%s10498_s21 + $0xf0] ss:$108 sps:$4 sm:$0xff]  }
 0x14d   : > { %5877 = vmatprep.subr.bf16.mxu0 %v9652_v14  ;;  %v9711_v14 = vld [vmem:[%s12932_s3 + $0x710] ss:$12 sps:$4 sm:$0xff]  }
 0x14e   : > { %6478 = vmatmul.mubr.bf16.vlgmr.msra.gmra.mrb[64].mxu1 %v10240_v23  ;;  %v9723_v23 = vld [vmem:[%s12932_s3 + $0xd3c] ss:$12 sps:$4 sm:$0xff]  }
 0x14f   : > { %5837 = vmatmul.mubr.bf16.vlgmr.msra.gmra.mrb[0].mxu0 %v9647_v15  ;;  %8433 = vmatpush3.bf16.msra.mxu1 %v9654_v19  ;;  %v9708_v15 = vld [vmem:[%s12932_s3 + $0xd08] ss:$12 sps:$4 sm:$0xff]  }
 0x150   : > { %5878 = vmatpush1.bf16.msra.mxu0 %v9650_v18  ;;  %8434 = vmatprep.subr.bf16.mxu1 %v9658_v21  ;;  %v9717_v18 = vld [vmem:[%s12932_s3 + $0xd24] ss:$12 sps:$4 sm:$0xff]   ;;  %v9718_v19 = vld [vmem:[%s12932_s3 + $0x728] ss:$12 sps:$4 sm:$0xff]   ;;  %v9715_v21 = vld [vmem:[%s12932_s3 + $0xd20] ss:$12 sps:$4 sm:$0xff]  }
 0x151   : > { %5879 = vmatprep.subr.bf16.mxu0 %v9657_v20  ;;  %6485 = vmatprep.mubr.bf16.mxu1 %v10241_v28  ;;  %v10251_v20 = vld [vmem:[%s10498_s21 + $0x1cc] ss:$108 sps:$4 sm:$0xff]   ;;  %v9730_v28 = vld [vmem:[%s12932_s3 + $0xd54] ss:$12 sps:$4 sm:$0xff]  }
 0x152   : > { %5846 = vmatprep.mubr.bf16.mxu0 %v9700_v22  ;;  %v9720_v22 = vld [vmem:[%s12932_s3 + $0x668] ss:$12 sps:$4 sm:$0xff]  }
 0x153   : > { %8435 = vmatpush3.bf16.msra.mxu1 %v9659_v25  ;;  %v9721_v25 = vld [vmem:[%s12932_s3 + $0xd38] ss:$12 sps:$4 sm:$0xff]  }
 0x154   : > { %5880 = vmatpush1.bf16.msra.mxu0 %v9655_v24  ;;  %8436 = vmatprep.subr.bf16.mxu1 %v9663_v27  ;;  %v9724_v24 = vld [vmem:[%s12932_s3 + $0x740] ss:$12 sps:$4 sm:$0xff]  }
 0x155   : > { %5881 = vmatprep.subr.bf16.mxu0 %v9662_v26  ;;  %v10252_v26 = vld [vmem:[%s10498_s21 + $0x1c8] ss:$108 sps:$4 sm:$0xff]   ;;  %v9725_v27 = vld [vmem:[%s12932_s3 + $0x680] ss:$12 sps:$4 sm:$0xff]  }
 0x156   : > { %6486 = vmatmul.mubr.bf16.gmra.mrb[68].mxu1 %v10242_v35  ;;  %v9734_v35 = vld [vmem:[%s12932_s3 + $0xd68] ss:$12 sps:$4 sm:$0xff]  }
 0x157   : > { %5847 = vmatmul.mubr.bf16.gmra.mrb[4].mxu0 %v9706_v31  ;;  %8437 = vmatpush3.bf16.msra.mxu1 %v9664_v30  ;;  %v10253_v30 = vld [vmem:[%s10498_s21 + $0x2a4] ss:$108 sps:$4 sm:$0xff]  }
 0x158   : > { %5882 = vmatpush1.bf16.msra.mxu0 %v9660_v29  ;;  %8438 = vmatprep.subr.bf16.mxu1 %v9668_v33  ;;  %v9731_v29 = vld [vmem:[%s12932_s3 + $0x758] ss:$12 sps:$4 sm:$0xff]   ;;  %v9728_v31 = vld [vmem:[%s12932_s3 + $0xd50] ss:$12 sps:$4 sm:$0xff]  }
 0x159   : > { %5883 = vmatprep.subr.bf16.mxu0 %v9667_v32  ;;  %6493 = vmatprep.mubr.bf16.mxu1 %v10243_v40  ;;  %v9733_v32 = vld [vmem:[%s12932_s3 + $0x698] ss:$12 sps:$4 sm:$0xff]  }
 0x15a   : > { %5856 = vmatprep.mubr.bf16.mxu0 %v9713_v34  ;;  %v9736_v33 = vld [vmem:[%s12932_s3 + $0xd6c] ss:$12 sps:$4 sm:$0xff]   ;;  %v9737_v34 = vld [vmem:[%s12932_s3 + $0x770] ss:$12 sps:$4 sm:$0xff]  }
 0x15b   : > { %8439 = vmatpush3.bf16.msra.mxu1 %v9669_v37  ;;  %v9738_v37 = vld [vmem:[%s12932_s3 + $0x6b0] ss:$12 sps:$4 sm:$0xff]  }
 0x15c   : > { %5884 = vmatpush1.bf16.msra.mxu0 %v9665_v36  ;;  %8440 = vmatprep.subr.bf16.mxu1 %v9673_v39  ;;  %v10254_v36 = vld [vmem:[%s10498_s21 + $0x2a0] ss:$108 sps:$4 sm:$0xff]   ;;  %v9745_v39 = vld [vmem:[%s12932_s3 + $0x848] ss:$12 sps:$4 sm:$0xff]   ;;  %v10255_v40 = vld [vmem:[%s10498_s21 + $0x24] ss:$108 sps:$4 sm:$0xff]  }
 0x15d   : > { %5885 = vmatprep.subr.bf16.mxu0 %v9672_v38  ;;  %v9744_v38 = vld [vmem:[%s12932_s3 + $0xd84] ss:$12 sps:$4 sm:$0xff]  }
 0x15e   : > { %6494 = vmatmul.mubr.bf16.gmra.mrb[72].mxu1 %v10244_v47  ;;  %v9792_v47 = vld [vmem:[%s10498_s21 + $0x11c] ss:$108 sps:$4 sm:$0xff]  }
 0x15f   : > { %5857 = vmatmul.mubr.bf16.gmra.mrb[8].mxu0 %v9719_v43  ;;  %8441 = vmatpush3.bf16.msra.mxu1 %v9674_v42  ;;  %v9742_v42 = vld [vmem:[%s12932_s3 + $0xd80] ss:$12 sps:$4 sm:$0xff]   ;;  %v9746_v43 = vld [vmem:[%s12932_s3 + $0x788] ss:$12 sps:$4 sm:$0xff]  }
 0x160   : > { %5886 = vmatpush1.bf16.msra.mxu0 %v9670_v41  ;;  %8442 = vmatprep.subr.bf16.mxu1 %v9678_v45  ;;  %v9739_v41 = vld [vmem:[%s10498_s21 + $0x40] ss:$108 sps:$4 sm:$0xff]  }
 0x161   : > { %5887 = vmatprep.subr.bf16.mxu0 %v9677_v44  ;;  %6501 = vmatprep.mubr.bf16.mxu1 %v10245_v52  ;;  %v9749_v44 = vld [vmem:[%s12932_s3 + $0xd9c] ss:$12 sps:$4 sm:$0xff]   ;;  %v9750_v45 = vld [vmem:[%s12932_s3 + $0x860] ss:$12 sps:$4 sm:$0xff]  }
 0x162   : > { %5866 = vmatprep.mubr.bf16.mxu0 %v9726_v46  ;;  %v9747_v46 = vld [vmem:[%s12932_s3 + $0xd98] ss:$12 sps:$4 sm:$0xff]   ;;  %v10257_v52 = vld [vmem:[%s10498_s21 + $0xfc] ss:$108 sps:$4 sm:$0xff]  }
 0x163   : > { %8443 = vmatpush3.bf16.msra.mxu1 %v9679_v49  ;;  %v9751_v49 = vld [vmem:[%s12932_s3 + $0x7a0] ss:$12 sps:$4 sm:$0xff]  }
 0x164   : > { %5888 = vmatpush1.bf16.msra.mxu0 %v9675_v48  ;;  %8444 = vmatprep.subr.bf16.mxu1 %v9683_v51  ;;  %v10256_v48 = vld [vmem:[%s10498_s21 + $0x20] ss:$108 sps:$4 sm:$0xff]   ;;  %v9755_v51 = vld [vmem:[%s12932_s3 + $0x878] ss:$12 sps:$4 sm:$0xff]  }
 0x165   : > { %5889 = vmatprep.subr.bf16.mxu0 %v9682_v50  ;;  %v9754_v50 = vld [vmem:[%s12932_s3 + $0xdb4] ss:$12 sps:$4 sm:$0xff]  }
 0x166   : > { %6502 = vmatmul.mubr.bf16.gmra.mrb[76].mxu1 %v10246_v59  ;;  %v9805_v59 = vld [vmem:[%s10498_s21 + $0x1f4] ss:$108 sps:$4 sm:$0xff]  }
 0x167   : > { %5867 = vmatmul.mubr.bf16.gmra.mrb[12].mxu0 %v9732_v55  ;;  %8445 = vmatpush3.bf16.msra.mxu1 %v9684_v54  ;;  %v9798_v54 = vld [vmem:[%s10498_s21 + $0x118] ss:$108 sps:$4 sm:$0xff]  }
 0x168   : > { %5890 = vmatpush1.bf16.msra.mxu0 %v9680_v53  ;;  %8446 = vmatprep.subr.bf16.mxu1 %v9688_v57  ;;  %v9752_v53 = vld [vmem:[%s12932_s3 + $0xdb0] ss:$12 sps:$4 sm:$0xff]   ;;  %v9756_v55 = vld [vmem:[%s12932_s3 + $0x7b8] ss:$12 sps:$4 sm:$0xff]  }
 0x169   : > { %5891 = vmatprep.subr.bf16.mxu0 %v9687_v56  ;;  %6542 = vmatprep.mubr.bf16.mxu1 %v10247_v0  ;;  %v9759_v56 = vld [vmem:[%s12932_s3 + $0xdcc] ss:$12 sps:$4 sm:$0xff]   ;;  %v9760_v57 = vld [vmem:[%s12932_s3 + $0x890] ss:$12 sps:$4 sm:$0xff]   ;;  %v10259_v0 = vld [vmem:[%s10498_s21 + $0x1d4] ss:$108 sps:$4 sm:$0xff]  }
 0x16a   : > { %5909 = vmatprep.mubr.bf16.mxu0 %v9741_v58  ;;  %v9757_v58 = vld [vmem:[%s12932_s3 + $0xdc8] ss:$12 sps:$4 sm:$0xff]  }
 0x16b   : > { %8447 = vmatpush3.bf16.msra.mxu1 %v9689_v61  ;;  %v9761_v61 = vld [vmem:[%s12932_s3 + $0x7d0] ss:$12 sps:$4 sm:$0xff]  }
 0x16c   : > { %5892 = vmatpush1.bf16.msra.mxu0 %v9685_v60  ;;  %8472 = vmatprep.subr.bf16.mxu1 %v9693_v63  ;;  %v10258_v60 = vld [vmem:[%s10498_s21 + $0xf8] ss:$108 sps:$4 sm:$0xff]   ;;  %v9765_v63 = vld [vmem:[%s12932_s3 + $0x8a8] ss:$12 sps:$4 sm:$0xff]  }
 0x16d   : > { %5893 = vmatprep.subr.bf16.mxu0 %v9692_v62  ;;  %v9764_v62 = vld [vmem:[%s12932_s3 + $0xde4] ss:$12 sps:$4 sm:$0xff]  }
 0x16e   : > { %6543 = vmatmul.mubr.bf16.vlgmr.msra.gmra.mrb[80].mxu1 %v10248_v6  ;;  %v9818_v6 = vld [vmem:[%s10498_s21 + $0x2cc] ss:$108 sps:$4 sm:$0xff]  }
 0x16f   : > { %8473 = vmatpush3.bf16.msra.mxu1 %v9694_v2  ;;  %6550 = vmatprep.mubr.bf16.mxu1 %v10249_v10  ;;  %v9811_v2 = vld [vmem:[%s10498_s21 + $0x1f0] ss:$108 sps:$4 sm:$0xff]   ;;  %v9774_v10 = vld [vmem:[%s12932_s3 + $0xe14] ss:$12 sps:$4 sm:$0xff]  }
 0x170   : > { %5894 = vmatpush1.bf16.msra.mxu0 %v9690_v1  ;;  %8474 = vmatprep.subr.bf16.mxu1 %v9698_v4  ;;  %v9762_v1 = vld [vmem:[%s12932_s3 + $0xde0] ss:$12 sps:$4 sm:$0xff]   ;;  %v9769_v4 = vld [vmem:[%s12932_s3 + $0xdfc] ss:$12 sps:$4 sm:$0xff]  }
 0x171   : > { %5895 = vmatprep.subr.bf16.mxu0 %v9697_v3  ;;  %v9766_v3 = vld [vmem:[%s12932_s3 + $0x7e8] ss:$12 sps:$4 sm:$0xff]  }
 0x173   : > { %8475 = vmatpush3.bf16.msra.mxu1 %v9699_v7  ;;  %v10260_v7 = vld [vmem:[%s10498_s21 + $0x1d0] ss:$108 sps:$4 sm:$0xff]  }
 0x174   : > { %5896 = vmatpush1.bf16.msra.mxu0 %v9695_v5  ;;  %8476 = vmatprep.subr.bf16.mxu1 %v9705_v9  ;;  %v9770_v5 = vld [vmem:[%s12932_s3 + $0x8c0] ss:$12 sps:$4 sm:$0xff]  }
 0x175   : > { %5897 = vmatprep.subr.bf16.mxu0 %v9704_v8  ;;  %v9767_v8 = vld [vmem:[%s12932_s3 + $0xdf8] ss:$12 sps:$4 sm:$0xff]   ;;  %v9771_v9 = vld [vmem:[%s12932_s3 + $0x800] ss:$12 sps:$4 sm:$0xff]  }
 0x176   : > { %6551 = vmatmul.mubr.bf16.gmra.mrb[84].mxu1 %v10250_v16 }
 0x177   : > { %8477 = vmatpush3.bf16.msra.mxu1 %v9707_v12  ;;  %6558 = vmatprep.mubr.bf16.mxu1 %v10251_v20  ;;  %v9780_v20 = vld [vmem:[%s12932_s3 + $0x8f0] ss:$12 sps:$4 sm:$0xff]  }
 0x178   : > { %5898 = vmatpush1.bf16.msra.mxu0 %v9702_v11  ;;  %8478 = vmatprep.subr.bf16.mxu1 %v9711_v14  ;;  %v9775_v11 = vld [vmem:[%s12932_s3 + $0x8d8] ss:$12 sps:$4 sm:$0xff]   ;;  %v9772_v14 = vld [vmem:[%s12932_s3 + $0xe10] ss:$12 sps:$4 sm:$0xff]  }
 0x179   : > { %5899 = vmatprep.subr.bf16.mxu0 %v9710_v13  ;;  %v10261_v13 = vld [vmem:[%s10498_s21 + $0x2ac] ss:$108 sps:$4 sm:$0xff]  }
 0x17b   : > { %8479 = vmatpush3.bf16.msra.mxu1 %v9712_v17  ;;  %v9779_v17 = vld [vmem:[%s12932_s3 + $0xe2c] ss:$12 sps:$4 sm:$0xff]  }
 0x17c   : > { %5900 = vmatpush1.bf16.msra.mxu0 %v9708_v15  ;;  %8480 = vmatprep.subr.bf16.mxu1 %v9718_v19  ;;  %v9776_v15 = vld [vmem:[%s12932_s3 + $0x818] ss:$12 sps:$4 sm:$0xff]  }
 0x17d   : > { %5901 = vmatprep.subr.bf16.mxu0 %v9717_v18  ;;  %v9824_v18 = vld [vmem:[%s10498_s21 + $0x2c8] ss:$108 sps:$4 sm:$0xff]  }
 0x17e   : > { %6559 = vmatmul.mubr.bf16.gmra.mrb[88].mxu1 %v10252_v26  ;;  %v9784_v26 = vld [vmem:[%s12932_s3 + $0xe44] ss:$12 sps:$4 sm:$0xff]  }
 0x17f   : > { %8481 = vmatpush3.bf16.msra.mxu1 %v9720_v22  ;;  %6566 = vmatprep.mubr.bf16.mxu1 %v10253_v30  ;;  %v9833_v22 = vld [vmem:[%s10498_s21 + $0x4c] ss:$108 sps:$4 sm:$0xff]  }
 0x180   : > { %5902 = vmatpush1.bf16.msra.mxu0 %v9715_v21  ;;  %8482 = vmatprep.subr.bf16.mxu1 %v9724_v24  ;;  %v9777_v24 = vld [vmem:[%s12932_s3 + $0xe28] ss:$12 sps:$4 sm:$0xff]  }
 0x181   : > { %5903 = vmatprep.subr.bf16.mxu0 %v9723_v23  ;;  %v10262_v23 = vld [vmem:[%s10498_s21 + $0x2a8] ss:$108 sps:$4 sm:$0xff]  }
 0x183   : > { %8483 = vmatpush3.bf16.msra.mxu1 %v9725_v27  ;;  %v9785_v27 = vld [vmem:[%s12932_s3 + $0x9c8] ss:$12 sps:$4 sm:$0xff]  }
 0x184   : > { %5904 = vmatpush1.bf16.msra.mxu0 %v9721_v25  ;;  %8484 = vmatprep.subr.bf16.mxu1 %v9731_v29  ;;  %v9781_v25 = vld [vmem:[%s12932_s3 + $0x830] ss:$12 sps:$4 sm:$0xff]   ;;  %v10263_v29 = vld [vmem:[%s10498_s21 + $0x2c] ss:$108 sps:$4 sm:$0xff]  }
 0x185   : > { %5905 = vmatprep.subr.bf16.mxu0 %v9730_v28 }
 0x186   : > { %6567 = vmatmul.mubr.bf16.gmra.mrb[92].mxu1 %v10254_v36  ;;  %v9790_v36 = vld [vmem:[%s12932_s3 + $0x9e0] ss:$12 sps:$4 sm:$0xff]  }
 0x187   : > { %8485 = vmatpush3.bf16.msra.mxu1 %v9733_v32  ;;  %6607 = vmatprep.mubr.bf16.mxu1 %v10255_v40  ;;  %v9796_v40 = vld [vmem:[%s12932_s3 + $0xe74] ss:$12 sps:$4 sm:$0xff]  }
 0x188   : > { %5906 = vmatpush1.bf16.msra.mxu0 %v9728_v31  ;;  %8486 = vmatprep.subr.bf16.mxu1 %v9737_v34  ;;  %v9782_v31 = vld [vmem:[%s12932_s3 + $0xe40] ss:$12 sps:$4 sm:$0xff]  }
 0x189   : > { %5907 = vmatprep.subr.bf16.mxu0 %v9736_v33  ;;  %v9786_v33 = vld [vmem:[%s12932_s3 + $0x908] ss:$12 sps:$4 sm:$0xff]  }
 0x18b   : > { %8487 = vmatpush3.bf16.msra.mxu1 %v9738_v37  ;;  %v10264_v37 = vld [vmem:[%s10498_s21 + $0x28] ss:$108 sps:$4 sm:$0xff]  }
 0x18c   : > { %5908 = vmatpush1.bf16.msra.mxu0 %v9734_v35  ;;  %8512 = vmatprep.subr.bf16.mxu1 %v9745_v39  ;;  %v9789_v35 = vld [vmem:[%s12932_s3 + $0xe5c] ss:$12 sps:$4 sm:$0xff]   ;;  %v9791_v39 = vld [vmem:[%s12932_s3 + $0x920] ss:$12 sps:$4 sm:$0xff]  }
 0x18d   : > { %5950 = vmatprep.subr.bf16.mxu0 %v9744_v38  ;;  %v9787_v38 = vld [vmem:[%s12932_s3 + $0xe58] ss:$12 sps:$4 sm:$0xff]  }
 0x18e   : > { %6608 = vmatmul.mubr.bf16.vlgmr.msra.gmra.mrb[96].mxu1 %v10256_v48  ;;  %v9802_v48 = vld [vmem:[%s12932_s3 + $0xe8c] ss:$12 sps:$4 sm:$0xff]  }
 0x18f   : > { %5910 = vmatmul.mubr.bf16.vlgmr.msra.gmra.mrb[0].mxu0 %v9739_v41  ;;  %8513 = vmatpush3.bf16.msra.mxu1 %v9746_v43  ;;  %v9797_v41 = vld [vmem:[%s12932_s3 + $0x9f8] ss:$12 sps:$4 sm:$0xff]  }
 0x190   : > { %5951 = vmatpush1.bf16.msra.mxu0 %v9742_v42  ;;  %8514 = vmatprep.subr.bf16.mxu1 %v9750_v45  ;;  %v10265_v43 = vld [vmem:[%s10498_s21 + $0x104] ss:$108 sps:$4 sm:$0xff]  }
 0x191   : > { %5952 = vmatprep.subr.bf16.mxu0 %v9749_v44  ;;  %6615 = vmatprep.mubr.bf16.mxu1 %v10257_v52  ;;  %v9794_v44 = vld [vmem:[%s12932_s3 + $0xe70] ss:$12 sps:$4 sm:$0xff]   ;;  %v9800_v52 = vld [vmem:[%s12932_s3 + $0xe88] ss:$12 sps:$4 sm:$0xff]  }
 0x192   : > { %5919 = vmatprep.mubr.bf16.mxu0 %v9792_v47 }
 0x193   : > { %8515 = vmatpush3.bf16.msra.mxu1 %v9751_v49  ;;  %v9803_v49 = vld [vmem:[%s12932_s3 + $0xa10] ss:$12 sps:$4 sm:$0xff]  }
 0x194   : > { %5953 = vmatpush1.bf16.msra.mxu0 %v9747_v46  ;;  %8516 = vmatprep.subr.bf16.mxu1 %v9755_v51  ;;  %v9799_v46 = vld [vmem:[%s12932_s3 + $0x938] ss:$12 sps:$4 sm:$0xff]   ;;  %v10266_v51 = vld [vmem:[%s10498_s21 + $0x100] ss:$108 sps:$4 sm:$0xff]  }
 0x195   : > { %5954 = vmatprep.subr.bf16.mxu0 %v9754_v50 }
 0x196   : > { %6616 = vmatmul.mubr.bf16.gmra.mrb[100].mxu1 %v10258_v60  ;;  %v9812_v60 = vld [vmem:[%s12932_s3 + $0x968] ss:$12 sps:$4 sm:$0xff]  }
 0x197   : > { %5920 = vmatmul.mubr.bf16.gmra.mrb[4].mxu0 %v9798_v54  ;;  %8517 = vmatpush3.bf16.msra.mxu1 %v9756_v55  ;;  %v9809_v54 = vld [vmem:[%s12932_s3 + $0xea4] ss:$12 sps:$4 sm:$0xff]   ;;  %v9810_v55 = vld [vmem:[%s12932_s3 + $0xa28] ss:$12 sps:$4 sm:$0xff]  }
 0x198   : > { %5955 = vmatpush1.bf16.msra.mxu0 %v9752_v53  ;;  %8518 = vmatprep.subr.bf16.mxu1 %v9760_v57  ;;  %v9804_v53 = vld [vmem:[%s12932_s3 + $0x950] ss:$12 sps:$4 sm:$0xff]  }
 0x199   : > { %5956 = vmatprep.subr.bf16.mxu0 %v9759_v56  ;;  %6623 = vmatprep.mubr.bf16.mxu1 %v10259_v0  ;;  %v10267_v57 = vld [vmem:[%s10498_s21 + $0x1dc] ss:$108 sps:$4 sm:$0xff]  }
 0x19a   : > { %5929 = vmatprep.mubr.bf16.mxu0 %v9805_v59 }
 0x19b   : > { %8519 = vmatpush3.bf16.msra.mxu1 %v9761_v61 }
 0x19c   : > { %5957 = vmatpush1.bf16.msra.mxu0 %v9757_v58  ;;  %8520 = vmatprep.subr.bf16.mxu1 %v9765_v63  ;;  %v9807_v58 = vld [vmem:[%s12932_s3 + $0xea0] ss:$12 sps:$4 sm:$0xff]  }
 0x19d   : > { %5958 = vmatprep.subr.bf16.mxu0 %v9764_v62  ;;  %v9815_v62 = vld [vmem:[%s12932_s3 + $0xebc] ss:$12 sps:$4 sm:$0xff]   ;;  %v9816_v63 = vld [vmem:[%s12932_s3 + $0xa40] ss:$12 sps:$4 sm:$0xff]  }
 0x19e   : > { %6624 = vmatmul.mubr.bf16.gmra.mrb[104].mxu1 %v10260_v7  ;;  %v9820_v7 = vld [vmem:[%s12932_s3 + $0xed0] ss:$12 sps:$4 sm:$0xff]  }
 0x19f   : > { %5930 = vmatmul.mubr.bf16.gmra.mrb[8].mxu0 %v9811_v2  ;;  %8521 = vmatpush3.bf16.msra.mxu1 %v9766_v3  ;;  %v9813_v2 = vld [vmem:[%s12932_s3 + $0xeb8] ss:$12 sps:$4 sm:$0xff]   ;;  %v9817_v3 = vld [vmem:[%s12932_s3 + $0x980] ss:$12 sps:$4 sm:$0xff]  }
 0x1a0   : > { %5959 = vmatpush1.bf16.msra.mxu0 %v9762_v1  ;;  %8522 = vmatprep.subr.bf16.mxu1 %v9770_v5  ;;  %v10268_v1 = vld [vmem:[%s10498_s21 + $0x1d8] ss:$108 sps:$4 sm:$0xff]  }
 0x1a1   : > { %5960 = vmatprep.subr.bf16.mxu0 %v9769_v4  ;;  %v11708_v12 = vpop.f32.mrb[0].mxu1  ;;  %6631 = vmatprep.mubr.bf16.mxu1 %v10261_v13  ;;  %v9822_v4 = vld [vmem:[%s12932_s3 + $0xed4] ss:$12 sps:$4 sm:$0xff]   ;;  %v9823_v5 = vld [vmem:[%s12932_s3 + $0xa58] ss:$12 sps:$4 sm:$0xff]  }
 0x1a2   : > { %5939 = vmatprep.mubr.bf16.mxu0 %v9818_v6  ;;  %v11717_v16 = vpop.f32.mrb[1].mxu1  ;;  %v10269_v6 = vld [vmem:[%s10498_s21 + $0x2b4] ss:$108 sps:$4 sm:$0xff]   ;;  %v9828_v13 = vld [vmem:[%s12932_s3 + $0xeec] ss:$12 sps:$4 sm:$0xff]  }
 0x1a3   : > { %v11723_v19 = vpop.f32.mrb[2].mxu1  ;;  %8523 = vmatpush3.bf16.msra.mxu1 %v9771_v9  ;;  %v9825_v9 = vld [vmem:[%s12932_s3 + $0x998] ss:$12 sps:$4 sm:$0xff]  }
 0x1a4   : > { %5961 = vmatpush1.bf16.msra.mxu0 %v9767_v8  ;;  %v11728_v21 = vpop.f32.mrb[3].mxu1  ;;  %8524 = vmatprep.subr.bf16.mxu1 %v9775_v11 }
 0x1a5   : > { %5962 = vmatprep.subr.bf16.mxu0 %v9774_v10 }
 0x1a6   : > { %6632 = vmatmul.mubr.bf16.gmra.mrb[108].mxu1 %v10262_v23  ;;  %v9837_v23 = vld [vmem:[%s12932_s3 + $0xb48] ss:$12 sps:$4 sm:$0xff]  }
 0x1a7   : > { %5940 = vmatmul.mubr.bf16.gmra.mrb[12].mxu0 %v9824_v18  ;;  %8525 = vmatpush3.bf16.msra.mxu1 %v9776_v15  ;;  %v9826_v18 = vld [vmem:[%s12932_s3 + $0xee8] ss:$12 sps:$4 sm:$0xff]  }
 0x1a8   : > { %5963 = vmatpush1.bf16.msra.mxu0 %v9772_v14  ;;  %8526 = vmatprep.subr.bf16.mxu1 %v9780_v20  ;;  %v9829_v14 = vld [vmem:[%s12932_s3 + $0xa70] ss:$12 sps:$4 sm:$0xff]  }
 0x1a9   : > { %5964 = vmatprep.subr.bf16.mxu0 %v9779_v17  ;;  %v11744_v28 = vpop.f32.mrb[4].mxu1  ;;  %6672 = vmatprep.mubr.bf16.mxu1 %v10263_v29  ;;  %v10270_v17 = vld [vmem:[%s10498_s21 + $0x2b0] ss:$108 sps:$4 sm:$0xff]   ;;  %v9838_v29 = vld [vmem:[%s12932_s3 + $0xa88] ss:$12 sps:$4 sm:$0xff]  }
 0x1aa   : > { %5982 = vmatprep.mubr.bf16.mxu0 %v9833_v22  ;;  %v11747_v30 = vpop.f32.mrb[5].mxu1  ;;  %v9830_v20 = vld [vmem:[%s12932_s3 + $0x9b0] ss:$12 sps:$4 sm:$0xff]  }
 0x1ab   : > { %v11752_v32 = vpop.f32.mrb[6].mxu1  ;;  %8527 = vmatpush3.bf16.msra.mxu1 %v9781_v25  ;;  %v9836_v22 = vld [vmem:[%s12932_s3 + $0xf04] ss:$12 sps:$4 sm:$0xff]   ;;  %v9831_v25 = vld [vmem:[%s10498_s21 + $0x48] ss:$108 sps:$4 sm:$0xff]  }
 0x1ac   : > { %5965 = vmatpush1.bf16.msra.mxu0 %v9777_v24  ;;  %v11757_v34 = vpop.f32.mrb[7].mxu1  ;;  %8552 = vmatprep.subr.bf16.mxu1 %v9785_v27  ;;  %v10271_v24 = vld [vmem:[%s10498_s21 + $0x34] ss:$108 sps:$4 sm:$0xff]  }
 0x1ad   : > { %5966 = vmatprep.subr.bf16.mxu0 %v9784_v26  ;;  %v9834_v27 = vld [vmem:[%s12932_s3 + $0xf00] ss:$12 sps:$4 sm:$0xff]  }
 0x1ae   : > { %6673 = vmatmul.mubr.bf16.vlgmr.msra.gmra.mrb[112].mxu1 %v10264_v37  ;;  %v9842_v37 = vld [vmem:[%s12932_s3 + $0xb60] ss:$12 sps:$4 sm:$0xff]  }
 0x1af   : > { %8553 = vmatpush3.bf16.msra.mxu1 %v9786_v33  ;;  %6680 = vmatprep.mubr.bf16.mxu1 %v10265_v43  ;;  %v9846_v43 = vld [vmem:[%s12932_s3 + $0xf34] ss:$12 sps:$4 sm:$0xff]  }
 0x1b0   : > { %5967 = vmatpush1.bf16.msra.mxu0 %v9782_v31  ;;  %8554 = vmatprep.subr.bf16.mxu1 %v9790_v36 }
 0x1b1   : > { %5968 = vmatprep.subr.bf16.mxu0 %v9789_v35  ;;  %v11778_v42 = vpop.f32.mrb[8].mxu1  ;;  %v9841_v35 = vld [vmem:[%s12932_s3 + $0xf1c] ss:$12 sps:$4 sm:$0xff]  }
 0x1b2   : > { %v11784_v45 = vpop.f32.mrb[9].mxu1 }
 0x1b3   : > { %v11789_v47 = vpop.f32.mrb[10].mxu1  ;;  %8555 = vmatpush3.bf16.msra.mxu1 %v9791_v39  ;;  %v10272_v39 = vld [vmem:[%s10498_s21 + $0x30] ss:$108 sps:$4 sm:$0xff]  }
 0x1b4   : > { %5969 = vmatpush1.bf16.msra.mxu0 %v9787_v38  ;;  %v11797_v50 = vpop.f32.mrb[11].mxu1  ;;  %8556 = vmatprep.subr.bf16.mxu1 %v9797_v41  ;;  %v9884_v38 = vld [vmem:[%s10498_s21 + $0x124] ss:$108 sps:$4 sm:$0xff]   ;;  %v9843_v41 = vld [vmem:[%s12932_s3 + $0xaa0] ss:$12 sps:$4 sm:$0xff]  }
 0x1b5   : > { %5970 = vmatprep.subr.bf16.mxu0 %v9796_v40  ;;  %v9839_v40 = vld [vmem:[%s12932_s3 + $0xf18] ss:$12 sps:$4 sm:$0xff]  }
 0x1b6   : > { %6681 = vmatmul.mubr.bf16.gmra.mrb[116].mxu1 %v10266_v51  ;;  %v9848_v51 = vld [vmem:[%s12932_s3 + $0xab8] ss:$12 sps:$4 sm:$0xff]  }
 0x1b7   : > { %8557 = vmatpush3.bf16.msra.mxu1 %v9799_v46  ;;  %6688 = vmatprep.mubr.bf16.mxu1 %v10267_v57  ;;  %v10273_v46 = vld [vmem:[%s10498_s21 + $0x10c] ss:$108 sps:$4 sm:$0xff]  }
 0x1b8   : > { %5971 = vmatpush1.bf16.msra.mxu0 %v9794_v44  ;;  %8558 = vmatprep.subr.bf16.mxu1 %v9803_v49  ;;  %v9847_v44 = vld [vmem:[%s12932_s3 + $0xb78] ss:$12 sps:$4 sm:$0xff]  }
 0x1b9   : > { %5972 = vmatprep.subr.bf16.mxu0 %v9802_v48  ;;  %v11812_v56 = vpop.f32.mrb[12].mxu1  ;;  %v9844_v48 = vld [vmem:[%s12932_s3 + $0xf30] ss:$12 sps:$4 sm:$0xff]  }
 0x1ba   : > { %v11818_v59 = vpop.f32.mrb[13].mxu1 }
 0x1bb   : > { %v11823_v61 = vpop.f32.mrb[14].mxu1  ;;  %8559 = vmatpush3.bf16.msra.mxu1 %v9804_v53  ;;  %v9851_v53 = vld [vmem:[%s12932_s3 + $0xf4c] ss:$12 sps:$4 sm:$0xff]  }
 0x1bc   : > { %5973 = vmatpush1.bf16.msra.mxu0 %v9800_v52  ;;  %v11831_v0 = vpop.f32.mrb[15].mxu1  ;;  %8560 = vmatprep.subr.bf16.mxu1 %v9810_v55 }
 0x1bd   : > { %5974 = vmatprep.subr.bf16.mxu0 %v9809_v54  ;;  %v9890_v54 = vld [vmem:[%s10498_s21 + $0x120] ss:$108 sps:$4 sm:$0xff]  }
 0x1be   : > { %6689 = vmatmul.mubr.bf16.gmra.mrb[120].mxu1 %v10268_v1  ;;  %v9853_v1 = vld [vmem:[%s12932_s3 + $0xad0] ss:$12 sps:$4 sm:$0xff]  }
 0x1bf   : > { %8561 = vmatpush3.bf16.msra.mxu1 %v9812_v60  ;;  %6696 = vmatprep.mubr.bf16.mxu1 %v10269_v6  ;;  %v9849_v60 = vld [vmem:[%s12932_s3 + $0xf48] ss:$12 sps:$4 sm:$0xff]  }
 0x1c0   : > { %5975 = vmatpush1.bf16.msra.mxu0 %v9807_v58  ;;  %8562 = vmatprep.subr.bf16.mxu1 %v9816_v63  ;;  %v9852_v58 = vld [vmem:[%s12932_s3 + $0xb90] ss:$12 sps:$4 sm:$0xff]   ;;  %v10274_v63 = vld [vmem:[%s10498_s21 + $0x108] ss:$108 sps:$4 sm:$0xff]  }
 0x1c1   : > { %5976 = vmatprep.subr.bf16.mxu0 %v9815_v62  ;;  %v11850_v8 = vpop.f32.mrb[16].mxu1  ;;  %v9897_v62 = vld [vmem:[%s10498_s21 + $0x1fc] ss:$108 sps:$4 sm:$0xff]  }
 0x1c2   : > { %v11855_v10 = vpop.f32.mrb[17].mxu1 }
 0x1c3   : > { %8563 = vmatpush3.bf16.msra.mxu1 %v9817_v3  ;;  %v11857_v11 = vpop.f32.mrb[18].mxu1  ;;  %v9857_v3 = vld [vmem:[%s12932_s3 + $0xba8] ss:$12 sps:$4 sm:$0xff]  }
 0x1c4   : > { %5977 = vmatpush1.bf16.msra.mxu0 %v9813_v2  ;;  %8564 = vmatprep.subr.bf16.mxu1 %v9823_v5  ;;  %v11865_v15 = vpop.f32.mrb[19].mxu1  ;;  %v9856_v2 = vld [vmem:[%s12932_s3 + $0xf64] ss:$12 sps:$4 sm:$0xff]   ;;  %v9854_v5 = vld [vmem:[%s12932_s3 + $0xf60] ss:$12 sps:$4 sm:$0xff]  }
 0x1c5   : > { %5978 = vmatprep.subr.bf16.mxu0 %v9822_v4  ;;  %v10275_v4 = vld [vmem:[%s10498_s21 + $0x1e4] ss:$108 sps:$4 sm:$0xff]  }
 0x1c6   : > { %6697 = vmatmul.mubr.bf16.gmra.mrb[124].mxu1 %v10270_v17  ;;  %v9861_v17 = vld [vmem:[%s12932_s3 + $0xf7c] ss:$12 sps:$4 sm:$0xff]  }
 0x1c7   : > { %8565 = vmatpush3.bf16.msra.mxu1 %v9825_v9  ;;  %6737 = vmatprep.mubr.bf16.mxu1 %v10271_v24  ;;  %v9903_v9 = vld [vmem:[%s10498_s21 + $0x1f8] ss:$108 sps:$4 sm:$0xff]  }
 0x1c8   : > { %5979 = vmatpush1.bf16.msra.mxu0 %v9820_v7  ;;  %8566 = vmatprep.subr.bf16.mxu1 %v9829_v14  ;;  %v9858_v7 = vld [vmem:[%s12932_s3 + $0xae8] ss:$12 sps:$4 sm:$0xff]   ;;  %v9859_v24 = vld [vmem:[%s12932_s3 + $0xf78] ss:$12 sps:$4 sm:$0xff]  }
 0x1c9   : > { %5980 = vmatprep.subr.bf16.mxu0 %v9828_v13  ;;  %v11882_v26 = vpop.f32.mrb[20].mxu1 }
 0x1ca   : > { %v11890_v31 = vpop.f32.mrb[21].mxu1 }
 0x1cb   : > { %8567 = vmatpush3.bf16.msra.mxu1 %v9830_v20  ;;  %v11892_v33 = vpop.f32.mrb[22].mxu1  ;;  %v9862_v20 = vld [vmem:[%s12932_s3 + $0xbc0] ss:$12 sps:$4 sm:$0xff]  }
 0x1cc   : > { %5981 = vmatpush1.bf16.msra.mxu0 %v9826_v18  ;;  %8592 = vmatprep.subr.bf16.mxu1 %v9837_v23  ;;  %v11897_v36 = vpop.f32.mrb[23].mxu1  ;;  %v10276_v23 = vld [vmem:[%s10498_s21 + $0x1e0] ss:$108 sps:$4 sm:$0xff]  }
 0x1cd   : > { %6023 = vmatprep.subr.bf16.mxu0 %v9836_v22  ;;  %v9910_v22 = vld [vmem:[%s10498_s21 + $0x2d4] ss:$108 sps:$4 sm:$0xff]  }
 0x1ce   : > { %6738 = vmatmul.mubr.bf16.vlgmr.msra.gmra.mrb[128].mxu1 %v10272_v39  ;;  %v9868_v39 = vld [vmem:[%s12932_s3 + $0xb18] ss:$12 sps:$4 sm:$0xff]  }
 0x1cf   : > { %5983 = vmatmul.mubr.bf16.vlgmr.msra.gmra.mrb[0].mxu0 %v9831_v25  ;;  %8593 = vmatpush3.bf16.msra.mxu1 %v9838_v29  ;;  %v9863_v25 = vld [vmem:[%s12932_s3 + $0xb00] ss:$12 sps:$4 sm:$0xff]   ;;  %v9867_v29 = vld [vmem:[%s12932_s3 + $0xbd8] ss:$12 sps:$4 sm:$0xff]  }
 0x1d0   : > { %6024 = vmatpush1.bf16.msra.mxu0 %v9834_v27  ;;  %8594 = vmatprep.subr.bf16.mxu1 %v9842_v37  ;;  %v9866_v27 = vld [vmem:[%s12932_s3 + $0xf94] ss:$12 sps:$4 sm:$0xff]   ;;  %v9864_v37 = vld [vmem:[%s12932_s3 + $0xf90] ss:$12 sps:$4 sm:$0xff]  }
 0x1d1   : > { %6025 = vmatprep.subr.bf16.mxu0 %v9841_v35  ;;  %6745 = vmatprep.mubr.bf16.mxu1 %v10273_v46  ;;  %v11920_v49 = vpop.f32.mrb[24].mxu1  ;;  %v10277_v35 = vld [vmem:[%s10498_s21 + $0x2bc] ss:$108 sps:$4 sm:$0xff]   ;;  %v9871_v46 = vld [vmem:[%s12932_s3 + $0xfac] ss:$12 sps:$4 sm:$0xff]  }
 0x1d2   : > { %5992 = vmatprep.mubr.bf16.mxu0 %v9884_v38  ;;  %v11925_v52 = vpop.f32.mrb[25].mxu1 }
 0x1d3   : > { %8595 = vmatpush3.bf16.msra.mxu1 %v9843_v41  ;;  %v11931_v55 = vpop.f32.mrb[26].mxu1  ;;  %v9916_v41 = vld [vmem:[%s10498_s21 + $0x2d0] ss:$108 sps:$4 sm:$0xff]  }
 0x1d4   : > { %6026 = vmatpush1.bf16.msra.mxu0 %v9839_v40  ;;  %8596 = vmatprep.subr.bf16.mxu1 %v9847_v44  ;;  %v11933_v57 = vpop.f32.mrb[27].mxu1 }
 0x1d5   : > { %6027 = vmatprep.subr.bf16.mxu0 %v9846_v43 }
 0x1d6   : > { %6746 = vmatmul.mubr.bf16.gmra.mrb[132].mxu1 %v10274_v63  ;;  %v9876_v63 = vld [vmem:[%s12932_s3 + $0xfc4] ss:$12 sps:$4 sm:$0xff]  }
 0x1d7   : > { %5993 = vmatmul.mubr.bf16.gmra.mrb[4].mxu0 %v9890_v54  ;;  %8597 = vmatpush3.bf16.msra.mxu1 %v9848_v51  ;;  %v9925_v54 = vld [vmem:[%s10498_s21 + $0x54] ss:$108 sps:$4 sm:$0xff]  }
 0x1d8   : > { %6028 = vmatpush1.bf16.msra.mxu0 %v9844_v48  ;;  %8598 = vmatprep.subr.bf16.mxu1 %v9852_v58  ;;  %v9872_v48 = vld [vmem:[%s12932_s3 + $0xbf0] ss:$12 sps:$4 sm:$0xff]   ;;  %v10278_v58 = vld [vmem:[%s10498_s21 + $0x2b8] ss:$108 sps:$4 sm:$0xff]  }
 0x1d9   : > { %6029 = vmatprep.subr.bf16.mxu0 %v9851_v53  ;;  %6753 = vmatprep.mubr.bf16.mxu1 %v10275_v4  ;;  %v11956_v6 = vpop.f32.mrb[28].mxu1 }
 0x1da   : > { %6002 = vmatprep.mubr.bf16.mxu0 %v9897_v62  ;;  %v11962_v13 = vpop.f32.mrb[29].mxu1  ;;  %v9873_v62 = vld [vmem:[%s12932_s3 + $0xb30] ss:$12 sps:$4 sm:$0xff]  }
 0x1db   : > { %8599 = vmatpush3.bf16.msra.mxu1 %v9853_v1  ;;  %v11964_v14 = vpop.f32.mrb[30].mxu1  ;;  %v9877_v1 = vld [vmem:[%s12932_s3 + $0xcc8] ss:$12 sps:$4 sm:$0xff]  }
 0x1dc   : > { %6030 = vmatpush1.bf16.msra.mxu0 %v9849_v60  ;;  %8600 = vmatprep.subr.bf16.mxu1 %v9857_v3  ;;  %v11969_v18 = vpop.f32.mrb[31].mxu1  ;;  %v9869_v60 = vld [vmem:[%s12932_s3 + $0xfa8] ss:$12 sps:$4 sm:$0xff]   ;;  %v9874_v3 = vld [vmem:[%s12932_s3 + $0xfc0] ss:$12 sps:$4 sm:$0xff]  }
 0x1dd   : > { %6031 = vmatprep.subr.bf16.mxu0 %v9856_v2  ;;  %12935 = vst [vmem:[#allocation2_spill] sm:$0xff] %v11969_v18  ;;  %v10279_v2 = vld [vmem:[%s10498_s21 + $0x3c] ss:$108 sps:$4 sm:$0xff]   ;;  %v12450_v18 = vld [vmem:[%s10498_s21 + $0x134] ss:$108 sps:$4 sm:$0xff]  }
 0x1de   : > { %6754 = vmatmul.mubr.bf16.gmra.mrb[136].mxu1 %v10276_v23 }
 0x1df   : > { %6003 = vmatmul.mubr.bf16.gmra.mrb[8].mxu0 %v9903_v9  ;;  %8601 = vmatpush3.bf16.msra.mxu1 %v9858_v7  ;;  %v9881_v9 = vld [vmem:[%s12932_s3 + $0xfdc] ss:$12 sps:$4 sm:$0xff]  }
 0x1e0   : > { %6032 = vmatpush1.bf16.msra.mxu0 %v9854_v5  ;;  %8602 = vmatprep.subr.bf16.mxu1 %v9862_v20  ;;  %v9878_v5 = vld [vmem:[%s12932_s3 + $0xc08] ss:$12 sps:$4 sm:$0xff]  }
 0x1e1   : > { %6033 = vmatprep.subr.bf16.mxu0 %v9861_v17  ;;  %6761 = vmatprep.mubr.bf16.mxu1 %v10277_v35  ;;  %v8328_v38 = vpop.f32.mrb[32].mxu1  ;;  %v9888_v35 = vld [vmem:[%s12932_s3 + $0xff4] ss:$12 sps:$4 sm:$0xff]  }
 0x1e2   : > { %6012 = vmatprep.mubr.bf16.mxu0 %v9910_v22  ;;  %v8329_v40 = vpop.f32.mrb[33].mxu1  ;;  %v9882_v22 = vld [vmem:[%s12932_s3 + $0xce0] ss:$12 sps:$4 sm:$0xff]  }
 0x1e3   : > { %8603 = vmatpush3.bf16.msra.mxu1 %v9863_v25  ;;  %v11996_v43 = vadd.f32 %v8329_v40, %v8328_v38  ;;  %v8331_v44 = vpop.f32.mrb[34].mxu1  ;;  %v10280_v25 = vld [vmem:[%s10498_s21 + $0x38] ss:$108 sps:$4 sm:$0xff]   ;;  %v10281_v38 = vld [vmem:[%s10498_s21 + $0x114] ss:$108 sps:$4 sm:$0xff]  }
 0x1e4   : > { %6034 = vmatpush1.bf16.msra.mxu0 %v9859_v24  ;;  %8604 = vmatprep.subr.bf16.mxu1 %v9867_v29  ;;  %v8332_v51 = vpop.f32.mrb[35].mxu1  ;;  %v9883_v29 = vld [vmem:[%s12932_s3 + $0xc20] ss:$12 sps:$4 sm:$0xff]  }
 0x1e5   : > { %6035 = vmatprep.subr.bf16.mxu0 %v9866_v27  ;;  %v12004_v53 = vadd.f32 %v8332_v51, %v8331_v44  ;;  %v9879_v27 = vld [vmem:[%s12932_s3 + $0xfd8] ss:$12 sps:$4 sm:$0xff]  }
 0x1e6   : > { %6762 = vmatmul.mubr.bf16.gmra.mrb[140].mxu1 %v10278_v58 }
 0x1e7   : > { %6013 = vmatmul.mubr.bf16.gmra.mrb[12].mxu0 %v9916_v41  ;;  %8605 = vmatpush3.bf16.msra.mxu1 %v9868_v39  ;;  %v9886_v39 = vld [vmem:[%s12932_s3 + $0xff0] ss:$12 sps:$4 sm:$0xff]   ;;  %v9891_v41 = vld [vmem:[%s12932_s3 + $0xc38] ss:$12 sps:$4 sm:$0xff]  }
 0x1e8   : > { %6036 = vmatpush1.bf16.msra.mxu0 %v9864_v37  ;;  %8606 = vmatprep.subr.bf16.mxu1 %v9872_v48  ;;  %v9889_v37 = vld [vmem:[%s12932_s3 + $0xcf8] ss:$12 sps:$4 sm:$0xff]  }
 0x1e9   : > { %6037 = vmatprep.subr.bf16.mxu0 %v9871_v46  ;;  %6802 = vmatprep.mubr.bf16.mxu1 %v10279_v2  ;;  %v8334_v4 = vpop.f32.mrb[36].mxu1  ;;  %v9894_v46 = vld [vmem:[%s12932_s3 + $0x100c] ss:$12 sps:$4 sm:$0xff]   ;;  %v9901_v2 = vld [vmem:[%s12932_s3 + $0x1024] ss:$12 sps:$4 sm:$0xff]  }
 0x1ea   : > { %6055 = vmatprep.mubr.bf16.mxu0 %v9925_v54  ;;  %v8335_v7 = vpop.f32.mrb[37].mxu1  ;;  %v9895_v54 = vld [vmem:[%s12932_s3 + $0xd10] ss:$12 sps:$4 sm:$0xff]  }
 0x1eb   : > { %8607 = vmatpush3.bf16.msra.mxu1 %v9873_v62  ;;  %v12030_v17 = vadd.f32 %v8335_v7, %v8334_v4  ;;  %v8337_v20 = vpop.f32.mrb[38].mxu1  ;;  %v10282_v62 = vld [vmem:[%s10498_s21 + $0x110] ss:$108 sps:$4 sm:$0xff]   ;;  %v9899_v7 = vld [vmem:[%s12932_s3 + $0x1020] ss:$12 sps:$4 sm:$0xff]  }
 0x1ec   : > { %6038 = vmatpush1.bf16.msra.mxu0 %v9869_v60  ;;  %8632 = vmatprep.subr.bf16.mxu1 %v9877_v1  ;;  %v8338_v23 = vpop.f32.mrb[39].mxu1  ;;  %v9896_v1 = vld [vmem:[%s12932_s3 + $0xc50] ss:$12 sps:$4 sm:$0xff]  }
 0x1ed   : > { %6039 = vmatprep.subr.bf16.mxu0 %v9876_v63  ;;  %v12035_v24 = vadd.f32 %v8338_v23, %v8337_v20  ;;  %v9892_v63 = vld [vmem:[%s12932_s3 + $0x1008] ss:$12 sps:$4 sm:$0xff]  }
 0x1ee   : > { %6803 = vmatmul.mubr.bf16.vlgmr.msra.gmra.mrb[144].mxu1 %v10280_v25 }
 0x1ef   : > { %8633 = vmatpush3.bf16.msra.mxu1 %v9878_v5  ;;  %6810 = vmatprep.mubr.bf16.mxu1 %v10281_v38  ;;  %v10283_v5 = vld [vmem:[%s10498_s21 + $0x1ec] ss:$108 sps:$4 sm:$0xff]  }
 0x1f0   : > { %6040 = vmatpush1.bf16.msra.mxu0 %v9874_v3  ;;  %8634 = vmatprep.subr.bf16.mxu1 %v9882_v22  ;;  %v9902_v3 = vld [vmem:[%s12932_s3 + $0xd28] ss:$12 sps:$4 sm:$0xff]   ;;  %v9905_v38 = vld [vmem:[%s12932_s3 + $0x1038] ss:$12 sps:$4 sm:$0xff]  }
 0x1f1   : > { %6041 = vmatprep.subr.bf16.mxu0 %v9881_v9  ;;  %v8340_v40 = vpop.f32.mrb[40].mxu1  ;;  %v9904_v9 = vld [vmem:[%s12932_s3 + $0xc68] ss:$12 sps:$4 sm:$0xff]  }
 0x1f2   : > { %v8341_v44 = vpop.f32.mrb[41].mxu1  ;;  %v9907_v22 = vld [vmem:[%s12932_s3 + $0x103c] ss:$12 sps:$4 sm:$0xff]  }
 0x1f3   : > { %8635 = vmatpush3.bf16.msra.mxu1 %v9883_v29  ;;  %v12060_v48 = vadd.f32 %v8341_v44, %v8340_v40  ;;  %v8343_v51 = vpop.f32.mrb[42].mxu1  ;;  %v9914_v40 = vld [vmem:[%s12932_s3 + $0x1054] ss:$12 sps:$4 sm:$0xff]  }
 0x1f4   : > { %6042 = vmatpush1.bf16.msra.mxu0 %v9879_v27  ;;  %8636 = vmatprep.subr.bf16.mxu1 %v9889_v37  ;;  %v8344_v58 = vpop.f32.mrb[43].mxu1  ;;  %v9908_v27 = vld [vmem:[%s12932_s3 + $0xd40] ss:$12 sps:$4 sm:$0xff]   ;;  %v10284_v37 = vld [vmem:[%s10498_s21 + $0x1e8] ss:$108 sps:$4 sm:$0xff]  }
 0x1f5   : > { %6043 = vmatprep.subr.bf16.mxu0 %v9888_v35  ;;  %v12065_v60 = vadd.f32 %v8344_v58, %v8343_v51  ;;  %v9912_v51 = vld [vmem:[%s12932_s3 + $0x1050] ss:$12 sps:$4 sm:$0xff]  }
 0x1f6   : > { %6811 = vmatmul.mubr.bf16.gmra.mrb[148].mxu1 %v10282_v62  ;;  %v9920_v62 = vld [vmem:[%s12932_s3 + $0x106c] ss:$12 sps:$4 sm:$0xff]  }
 0x1f7   : > { %8637 = vmatpush3.bf16.msra.mxu1 %v9891_v41  ;;  %6818 = vmatprep.mubr.bf16.mxu1 %v10283_v5  ;;  %v9915_v41 = vld [vmem:[%s12932_s3 + $0xd58] ss:$12 sps:$4 sm:$0xff]  }
 0x1f8   : > { %6044 = vmatpush1.bf16.msra.mxu0 %v9886_v39  ;;  %8638 = vmatprep.subr.bf16.mxu1 %v9895_v54  ;;  %v9909_v39 = vld [vmem:[%s12932_s3 + $0xc80] ss:$12 sps:$4 sm:$0xff]   ;;  %v9917_v54 = vld [vmem:[%s12932_s3 + $0xc98] ss:$12 sps:$4 sm:$0xff]  }
 0x1f9   : > { %6045 = vmatprep.subr.bf16.mxu0 %v9894_v46  ;;  %v8346_v4 = vpop.f32.mrb[44].mxu1  ;;  %v10285_v46 = vld [vmem:[%s10498_s21 + $0x2c4] ss:$108 sps:$4 sm:$0xff]  }
 0x1fa   : > { %v8347_v20 = vpop.f32.mrb[45].mxu1 }
 0x1fb   : > { %8639 = vmatpush3.bf16.msra.mxu1 %v9896_v1  ;;  %v12090_v23 = vadd.f32 %v8347_v20, %v8346_v4  ;;  %v8349_v25 = vpop.f32.mrb[46].mxu1  ;;  %v9922_v20 = vld [vmem:[%s12932_s3 + $0xcb0] ss:$12 sps:$4 sm:$0xff]  }
 0x1fc   : > { %6046 = vmatpush1.bf16.msra.mxu0 %v9892_v63  ;;  %8640 = vmatprep.subr.bf16.mxu1 %v9902_v3  ;;  %v8350_v29 = vpop.f32.mrb[47].mxu1 }
 0x1fd   : > { %6047 = vmatprep.subr.bf16.mxu0 %v9901_v2  ;;  %v12095_v35 = vadd.f32 %v8350_v29, %v8349_v25  ;;  %v9921_v2 = vld [vmem:[%s12932_s3 + $0xd70] ss:$12 sps:$4 sm:$0xff]  }
 0x1fe   : > { %6819 = vmatmul.mubr.bf16.gmra.mrb[152].mxu1 %v10284_v37  ;;  %v12140_v25 = vld [vmem:[%s10498_s21 + $0x50] ss:$108 sps:$4 sm:$0xff]  }
 0x1ff   : > { %8641 = vmatpush3.bf16.msra.mxu1 %v9904_v9  ;;  %6826 = vmatprep.mubr.bf16.mxu1 %v10285_v46  ;;  %v9918_v9 = vld [vmem:[%s12932_s3 + $0x1068] ss:$12 sps:$4 sm:$0xff]   ;;  %v10287_v37 = vld [vmem:[%s10498_s21 + $0x44] ss:$108 sps:$4 sm:$0xff]   ;;  %v9934_v46 = vld [vmem:[%s12932_s3 + $0xe60] ss:$12 sps:$4 sm:$0xff]  }
 0x200   : > { %6048 = vmatpush1.bf16.msra.mxu0 %v9899_v7  ;;  %8642 = vmatprep.subr.bf16.mxu1 %v9908_v27  ;;  %v10286_v7 = vld [vmem:[%s10498_s21 + $0x2c0] ss:$108 sps:$4 sm:$0xff]   ;;  %v9929_v27 = vld [vmem:[%s12932_s3 + $0xe48] ss:$12 sps:$4 sm:$0xff]  }
 0x201   : > { %6049 = vmatprep.subr.bf16.mxu0 %v9907_v22  ;;  %v8368_v44 = vpop.f32.mrb[48].mxu1 }
 0x202   : > { %v8369_v58 = vpop.f32.mrb[49].mxu1 }
 0x203   : > { %v8370_v63 = vadd.f32 %v8369_v58, %v8368_v44  ;;  %v8371_v1 = vpop.f32.mrb[50].mxu1  ;;  %8643 = vmatpush3.bf16.msra.mxu1 %v9909_v39 }
 0x204   : > { %6050 = vmatpush1.bf16.msra.mxu0 %v9905_v38  ;;  %v8372_v3 = vpop.f32.mrb[51].mxu1  ;;  %8644 = vmatprep.subr.bf16.mxu1 %v9915_v41  ;;  %v9930_v38 = vld [vmem:[%s12932_s3 + $0xd88] ss:$12 sps:$4 sm:$0xff]  }
 0x205   : > { %6051 = vmatprep.subr.bf16.mxu0 %v9914_v40  ;;  %v12124_v4 = vadd.f32 %v8370_v63, %v11996_v43  ;;  %v8373_v5 = vadd.f32 %v8372_v3, %v8371_v1  ;;  %v9928_v43 = vld [vmem:[%s12932_s3 + $0x1084] ss:$12 sps:$4 sm:$0xff]   ;;  %v9933_v40 = vld [vmem:[%s12932_s3 + $0x109c] ss:$12 sps:$4 sm:$0xff]   ;;  %v10288_v63 = vld [vmem:[%s10498_s21 + $0x40] ss:$108 sps:$4 sm:$0xff]  }
 0x206   : > { %6827 = vmatmul.mubr.bf16.gmra.mrb[156].mxu1 %v10286_v7  ;;  %v9931_v1 = vld [vmem:[%s12932_s3 + $0x1098] ss:$12 sps:$4 sm:$0xff]   ;;  %v9938_v3 = vld [vmem:[%s12932_s3 + $0x10b4] ss:$12 sps:$4 sm:$0xff]  }
 0x207   : > { %v12134_v22 = vadd.f32 %v8373_v5, %v12004_v53  ;;  %8645 = vmatpush3.bf16.msra.mxu1 %v9917_v54  ;;  %6867 = vmatprep.mubr.bf16.mxu1 %v10287_v37  ;;  %v9926_v53 = vld [vmem:[%s12932_s3 + $0x1080] ss:$12 sps:$4 sm:$0xff]   ;;  %v9939_v5 = vld [vmem:[%s12932_s3 + $0xe78] ss:$12 sps:$4 sm:$0xff]  }
 0x208   : > { %6052 = vmatpush1.bf16.msra.mxu0 %v9912_v51  ;;  %8646 = vmatprep.subr.bf16.mxu1 %v9921_v2  ;;  %v9940_v37 = vld [vmem:[%s12932_s3 + $0xdb8] ss:$12 sps:$4 sm:$0xff]  }
 0x209   : > { %6053 = vmatprep.subr.bf16.mxu0 %v9920_v62  ;;  %v8374_v29 = vpop.f32.mrb[52].mxu1  ;;  %v12162_v62 = vld [vmem:[%s10498_s21 + $0x12c] ss:$108 sps:$4 sm:$0xff]  }
 0x20a   : > { %v8375_v39 = vpop.f32.mrb[53].mxu1 }
 0x20b   : > { %v8376_v41 = vadd.f32 %v8375_v39, %v8374_v29  ;;  %v8377_v44 = vpop.f32.mrb[54].mxu1  ;;  %8647 = vmatpush3.bf16.msra.mxu1 %v9922_v20  ;;  %v9944_v39 = vld [vmem:[%s12932_s3 + $0xe90] ss:$12 sps:$4 sm:$0xff]  }
 0x20c   : > { %6054 = vmatpush1.bf16.msra.mxu0 %v9918_v9  ;;  %v8378_v51 = vpop.f32.mrb[55].mxu1  ;;  %8672 = vmatprep.subr.bf16.mxu1 %v9929_v27  ;;  %v10289_v9 = vld [vmem:[%s10498_s21 + $0x11c] ss:$108 sps:$4 sm:$0xff]  }
 0x20d   : > { %6096 = vmatprep.subr.bf16.mxu0 %v9928_v43  ;;  %v12159_v54 = vadd.f32 %v8376_v41, %v12030_v17  ;;  %v8379_v58 = vadd.f32 %v8378_v51, %v8377_v44  ;;  %v9935_v17 = vld [vmem:[%s12932_s3 + $0xda0] ss:$12 sps:$4 sm:$0xff]   ;;  %v12187_v43 = vld [vmem:[%s10498_s21 + $0x128] ss:$108 sps:$4 sm:$0xff]   ;;  %v12202_v44 = vld [vmem:[%s10498_s21 + $0x204] ss:$108 sps:$4 sm:$0xff]  }
 0x20e   : > { %6868 = vmatmul.mubr.bf16.vlgmr.msra.gmra.mrb[160].mxu1 %v10288_v63  ;;  %v9941_v51 = vld [vmem:[%s12932_s3 + $0x10c8] ss:$12 sps:$4 sm:$0xff]   ;;  %v9948_v63 = vld [vmem:[%s12932_s3 + $0x10e4] ss:$12 sps:$4 sm:$0xff]  }
 0x20f   : > { %6056 = vmatmul.mubr.bf16.vlgmr.msra.gmra.mrb[0].mxu0 %v12140_v25  ;;  %v12170_v2 = vadd.f32 %v8379_v58, %v12035_v24  ;;  %8673 = vmatpush3.bf16.msra.mxu1 %v9930_v38  ;;  %v9936_v24 = vld [vmem:[%s12932_s3 + $0x10b0] ss:$12 sps:$4 sm:$0xff]   ;;  %v9943_v38 = vld [vmem:[%s12932_s3 + $0x10cc] ss:$12 sps:$4 sm:$0xff]  }
 0x210   : > { %6097 = vmatpush1.bf16.msra.mxu0 %v9926_v53  ;;  %8674 = vmatprep.subr.bf16.mxu1 %v9934_v46  ;;  %v10290_v46 = vld [vmem:[%s10498_s21 + $0x118] ss:$108 sps:$4 sm:$0xff]  }
 0x211   : > { %6098 = vmatprep.subr.bf16.mxu0 %v9933_v40  ;;  %v8380_v7 = vpop.f32.mrb[56].mxu1  ;;  %6875 = vmatprep.mubr.bf16.mxu1 %v10289_v9  ;;  %v9953_v9 = vld [vmem:[%s12932_s3 + $0x10fc] ss:$12 sps:$4 sm:$0xff]  }
 0x212   : > { %6065 = vmatprep.mubr.bf16.mxu0 %v12162_v62  ;;  %v8381_v20 = vpop.f32.mrb[57].mxu1 }
 0x213   : > { %v8382_v27 = vadd.f32 %v8381_v20, %v8380_v7  ;;  %v8383_v29 = vpop.f32.mrb[58].mxu1  ;;  %8675 = vmatpush3.bf16.msra.mxu1 %v9935_v17 }
 0x214   : > { %6099 = vmatpush1.bf16.msra.mxu0 %v9931_v1  ;;  %v8384_v53 = vpop.f32.mrb[59].mxu1  ;;  %8676 = vmatprep.subr.bf16.mxu1 %v9939_v5  ;;  %v9949_v1 = vld [vmem:[%s12932_s3 + $0xea8] ss:$12 sps:$4 sm:$0xff]  }
 0x215   : > { %6100 = vmatprep.subr.bf16.mxu0 %v9938_v3  ;;  %v12199_v40 = vadd.f32 %v8382_v27, %v12060_v48  ;;  %v8385_v41 = vadd.f32 %v8384_v53, %v8383_v29  ;;  %v9945_v48 = vld [vmem:[%s12932_s3 + $0xdd0] ss:$12 sps:$4 sm:$0xff]   ;;  %v9946_v3 = vld [vmem:[%s12932_s3 + $0x10e0] ss:$12 sps:$4 sm:$0xff]   ;;  %v9950_v5 = vld [vmem:[%s12932_s3 + $0xde8] ss:$12 sps:$4 sm:$0xff]  }
 0x216   : > { %6876 = vmatmul.mubr.bf16.gmra.mrb[164].mxu1 %v10290_v46  ;;  %v10292_v46 = vld [vmem:[%s10498_s21 + $0x1f0] ss:$108 sps:$4 sm:$0xff]  }
 0x217   : > { %6066 = vmatmul.mubr.bf16.gmra.mrb[4].mxu0 %v12187_v43  ;;  %v12210_v58 = vadd.f32 %v8385_v41, %v12065_v60  ;;  %8677 = vmatpush3.bf16.msra.mxu1 %v9940_v37  ;;  %v10291_v60 = vld [vmem:[%s10498_s21 + $0x1f4] ss:$108 sps:$4 sm:$0xff]   ;;  %v12245_v41 = vld [vmem:[%s10498_s21 + $0x2dc] ss:$108 sps:$4 sm:$0xff]  }
 0x218   : > { %6101 = vmatpush1.bf16.msra.mxu0 %v9936_v24  ;;  %8678 = vmatprep.subr.bf16.mxu1 %v9944_v39  ;;  %v12233_v24 = vld [vmem:[%s10498_s21 + $0x200] ss:$108 sps:$4 sm:$0xff]   ;;  %v9951_v39 = vld [vmem:[%s12932_s3 + $0x10f8] ss:$12 sps:$4 sm:$0xff]  }
 0x219   : > { %6102 = vmatprep.subr.bf16.mxu0 %v9943_v38  ;;  %v8386_v17 = vpop.f32.mrb[60].mxu1  ;;  %6883 = vmatprep.mubr.bf16.mxu1 %v10291_v60  ;;  %v9954_v37 = vld [vmem:[%s12932_s3 + $0xec0] ss:$12 sps:$4 sm:$0xff]   ;;  %v9960_v60 = vld [vmem:[%s12932_s3 + $0xe18] ss:$12 sps:$4 sm:$0xff]  }
 0x21a   : > { %6075 = vmatprep.mubr.bf16.mxu0 %v12202_v44  ;;  %v8387_v7 = vpop.f32.mrb[61].mxu1 }
 0x21b   : > { %v8388_v20 = vadd.f32 %v8387_v7, %v8386_v17  ;;  %v8389_v27 = vpop.f32.mrb[62].mxu1  ;;  %8679 = vmatpush3.bf16.msra.mxu1 %v9945_v48  ;;  %v9958_v48 = vld [vmem:[%s12932_s3 + $0x1114] ss:$12 sps:$4 sm:$0xff]   ;;  %v10293_v17 = vld [vmem:[%s10498_s21 + $0x2cc] ss:$108 sps:$4 sm:$0xff]  }
 0x21c   : > { %6103 = vmatpush1.bf16.msra.mxu0 %v9941_v51  ;;  %v8390_v29 = vpop.f32.mrb[63].mxu1  ;;  %8680 = vmatprep.subr.bf16.mxu1 %v9949_v1  ;;  %v9955_v51 = vld [vmem:[%s12932_s3 + $0xe00] ss:$12 sps:$4 sm:$0xff]  }
 0x21d   : > { %6104 = vmatprep.subr.bf16.mxu0 %v9948_v63  ;;  %v12239_v53 = vadd.f32 %v8388_v20, %v12090_v23  ;;  %v8391_v38 = vadd.f32 %v8390_v29, %v8389_v27  ;;  %v9959_v63 = vld [vmem:[%s12932_s3 + $0xed8] ss:$12 sps:$4 sm:$0xff]   ;;  %v9964_v29 = vld [vmem:[%s12932_s3 + $0xef0] ss:$12 sps:$4 sm:$0xff]  }
 0x21e   : > { %6884 = vmatmul.mubr.bf16.gmra.mrb[168].mxu1 %v10292_v46  ;;  %v9963_v20 = vld [vmem:[%s12932_s3 + $0x112c] ss:$12 sps:$4 sm:$0xff]   ;;  %v12282_v46 = vld [vmem:[%s10498_s21 + $0x5c] ss:$108 sps:$4 sm:$0xff]  }
 0x21f   : > { %6076 = vmatmul.mubr.bf16.gmra.mrb[8].mxu0 %v12233_v24  ;;  %v12253_v23 = vadd.f32 %v8391_v38, %v12095_v35  ;;  %8681 = vmatpush3.bf16.msra.mxu1 %v9950_v5  ;;  %v9956_v35 = vld [vmem:[%s12932_s3 + $0x1110] ss:$12 sps:$4 sm:$0xff]  }
 0x220   : > { %6105 = vmatpush1.bf16.msra.mxu0 %v9946_v3  ;;  %8682 = vmatprep.subr.bf16.mxu1 %v9954_v37  ;;  %v12270_v3 = vld [vmem:[%s10498_s21 + $0x2d8] ss:$108 sps:$4 sm:$0xff]  }
 0x221   : > { %6106 = vmatprep.subr.bf16.mxu0 %v9953_v9  ;;  %v8408_v1 = vpop.f32.mrb[64].mxu1  ;;  %6891 = vmatprep.mubr.bf16.mxu1 %v10293_v17 }
 0x222   : > { %6085 = vmatprep.mubr.bf16.mxu0 %v12245_v41  ;;  %v8409_v5 = vpop.f32.mrb[65].mxu1 }
 0x223   : > { %v8410_v7 = vadd.f32 %v8409_v5, %v8408_v1  ;;  %v8411_v9 = vpop.f32.mrb[66].mxu1  ;;  %8683 = vmatpush3.bf16.msra.mxu1 %v9955_v51  ;;  %v9961_v51 = vld [vmem:[%s12932_s3 + $0x1128] ss:$12 sps:$4 sm:$0xff]   ;;  %v10295_v5 = vld [vmem:[%s10498_s21 + $0x4c] ss:$108 sps:$4 sm:$0xff]  }
 0x224   : > { %6107 = vmatpush1.bf16.msra.mxu0 %v9951_v39  ;;  %v8412_v27 = vpop.f32.mrb[67].mxu1  ;;  %8684 = vmatprep.subr.bf16.mxu1 %v9959_v63  ;;  %v10294_v39 = vld [vmem:[%s10498_s21 + $0x2c8] ss:$108 sps:$4 sm:$0xff]   ;;  %v9968_v63 = vld [vmem:[%s12932_s3 + $0x1144] ss:$12 sps:$4 sm:$0xff]  }
 0x225   : > { %6108 = vmatprep.subr.bf16.mxu0 %v9958_v48  ;;  %v12279_v37 = vadd.f32 %v8410_v7, %v12124_v4  ;;  %v8413_v38 = vadd.f32 %v8412_v27, %v8411_v9  ;;  %v9965_v4 = vld [vmem:[%s12932_s3 + $0xe30] ss:$12 sps:$4 sm:$0xff]   ;;  %v9969_v1 = vld [vmem:[%s12932_s3 + $0xfc8] ss:$12 sps:$4 sm:$0xff]  }
 0x226   : > { %6892 = vmatmul.mubr.bf16.gmra.mrb[172].mxu1 %v10294_v39 }
 0x227   : > { %6086 = vmatmul.mubr.bf16.gmra.mrb[12].mxu0 %v12270_v3  ;;  %v12290_v48 = vadd.f32 %v8413_v38, %v12134_v22  ;;  %8685 = vmatpush3.bf16.msra.mxu1 %v9960_v60  ;;  %v9966_v22 = vld [vmem:[%s12932_s3 + $0x1140] ss:$12 sps:$4 sm:$0xff]  }
 0x228   : > { %6109 = vmatpush1.bf16.msra.mxu0 %v9956_v35  ;;  %8686 = vmatprep.subr.bf16.mxu1 %v9964_v29  ;;  %v9970_v35 = vld [vmem:[%s12932_s3 + $0xf08] ss:$12 sps:$4 sm:$0xff]   ;;  %v9974_v29 = vld [vmem:[%s12932_s3 + $0xfe0] ss:$12 sps:$4 sm:$0xff]  }
 0x229   : > { %6110 = vmatprep.subr.bf16.mxu0 %v9963_v20  ;;  %v8414_v17 = vpop.f32.mrb[68].mxu1  ;;  %6932 = vmatprep.mubr.bf16.mxu1 %v10295_v5  ;;  %v9973_v20 = vld [vmem:[%s12932_s3 + $0x115c] ss:$12 sps:$4 sm:$0xff]  }
 0x22a   : > { %6128 = vmatprep.mubr.bf16.mxu0 %v12282_v46  ;;  %v8415_v60 = vpop.f32.mrb[69].mxu1 }
 0x22b   : > { %v8416_v7 = vadd.f32 %v8415_v60, %v8414_v17  ;;  %v8417_v9 = vpop.f32.mrb[70].mxu1  ;;  %8687 = vmatpush3.bf16.msra.mxu1 %v9965_v4  ;;  %v10296_v17 = vld [vmem:[%s10498_s21 + $0x48] ss:$108 sps:$4 sm:$0xff]   ;;  %v10297_v60 = vld [vmem:[%s10498_s21 + $0x124] ss:$108 sps:$4 sm:$0xff]  }
 0x22c   : > { %6111 = vmatpush1.bf16.msra.mxu0 %v9961_v51  ;;  %v8418_v27 = vpop.f32.mrb[71].mxu1  ;;  %8712 = vmatprep.subr.bf16.mxu1 %v9969_v1  ;;  %v9971_v51 = vld [vmem:[%s12932_s3 + $0x1158] ss:$12 sps:$4 sm:$0xff]  }
 0x22d   : > { %6112 = vmatprep.subr.bf16.mxu0 %v9968_v63  ;;  %v12316_v38 = vadd.f32 %v8416_v7, %v12159_v54  ;;  %v8419_v39 = vadd.f32 %v8418_v27, %v8417_v9  ;;  %v9975_v63 = vld [vmem:[%s12932_s3 + $0xf20] ss:$12 sps:$4 sm:$0xff]   ;;  %v9981_v1 = vld [vmem:[%s12932_s3 + $0xff8] ss:$12 sps:$4 sm:$0xff]  }
 0x22e   : > { %6933 = vmatmul.mubr.bf16.vlgmr.msra.gmra.mrb[176].mxu1 %v10296_v17  ;;  %v9980_v54 = vld [vmem:[%s12932_s3 + $0x1174] ss:$12 sps:$4 sm:$0xff]  }
 0x22f   : > { %v12323_v4 = vadd.f32 %v8419_v39, %v12170_v2  ;;  %8713 = vmatpush3.bf16.msra.mxu1 %v9970_v35  ;;  %6940 = vmatprep.mubr.bf16.mxu1 %v10297_v60  ;;  %v9978_v2 = vld [vmem:[%s12932_s3 + $0x1170] ss:$12 sps:$4 sm:$0xff]  }
 0x230   : > { %6113 = vmatpush1.bf16.msra.mxu0 %v9966_v22  ;;  %8714 = vmatprep.subr.bf16.mxu1 %v9974_v29  ;;  %v9983_v22 = vld [vmem:[%s12932_s3 + $0xf38] ss:$12 sps:$4 sm:$0xff]   ;;  %v9987_v29 = vld [vmem:[%s12932_s3 + $0x1010] ss:$12 sps:$4 sm:$0xff]  }
 0x231   : > { %6114 = vmatprep.subr.bf16.mxu0 %v9973_v20  ;;  %v8420_v5 = vpop.f32.mrb[72].mxu1  ;;  %v9986_v20 = vld [vmem:[%s12932_s3 + $0x118c] ss:$12 sps:$4 sm:$0xff]  }
 0x232   : > { %v8421_v35 = vpop.f32.mrb[73].mxu1 }
 0x233   : > { %v8422_v7 = vadd.f32 %v8421_v35, %v8420_v5  ;;  %v8423_v9 = vpop.f32.mrb[74].mxu1  ;;  %8715 = vmatpush3.bf16.msra.mxu1 %v9975_v63  ;;  %v10298_v5 = vld [vmem:[%s10498_s21 + $0x120] ss:$108 sps:$4 sm:$0xff]   ;;  %v10299_v35 = vld [vmem:[%s10498_s21 + $0x1fc] ss:$108 sps:$4 sm:$0xff]  }
 0x234   : > { %6115 = vmatpush1.bf16.msra.mxu0 %v9971_v51  ;;  %v8424_v27 = vpop.f32.mrb[75].mxu1  ;;  %8716 = vmatprep.subr.bf16.mxu1 %v9981_v1  ;;  %v9984_v51 = vld [vmem:[%s12932_s3 + $0x1188] ss:$12 sps:$4 sm:$0xff]  }
 0x235   : > { %6116 = vmatprep.subr.bf16.mxu0 %v9980_v54  ;;  %v12348_v39 = vadd.f32 %v8422_v7, %v12199_v40  ;;  %v8425_v17 = vadd.f32 %v8424_v27, %v8423_v9  ;;  %v9988_v54 = vld [vmem:[%s12932_s3 + $0xf50] ss:$12 sps:$4 sm:$0xff]   ;;  %v9994_v1 = vld [vmem:[%s12932_s3 + $0x1028] ss:$12 sps:$4 sm:$0xff]  }
 0x236   : > { %6941 = vmatmul.mubr.bf16.gmra.mrb[180].mxu1 %v10298_v5  ;;  %v9993_v40 = vld [vmem:[%s12932_s3 + $0x11a4] ss:$12 sps:$4 sm:$0xff]  }
 0x237   : > { %v12355_v63 = vadd.f32 %v8425_v17, %v12210_v58  ;;  %8717 = vmatpush3.bf16.msra.mxu1 %v9983_v22  ;;  %6948 = vmatprep.mubr.bf16.mxu1 %v10299_v35  ;;  %v9991_v58 = vld [vmem:[%s12932_s3 + $0x11a0] ss:$12 sps:$4 sm:$0xff]  }
 0x238   : > { %6117 = vmatpush1.bf16.msra.mxu0 %v9978_v2  ;;  %8718 = vmatprep.subr.bf16.mxu1 %v9987_v29  ;;  %v9996_v2 = vld [vmem:[%s12932_s3 + $0xf68] ss:$12 sps:$4 sm:$0xff]   ;;  %v10000_v29 = vld [vmem:[%s12932_s3 + $0x1040] ss:$12 sps:$4 sm:$0xff]  }
 0x239   : > { %6118 = vmatprep.subr.bf16.mxu0 %v9986_v20  ;;  %v8426_v60 = vpop.f32.mrb[76].mxu1  ;;  %v9999_v20 = vld [vmem:[%s12932_s3 + $0x11bc] ss:$12 sps:$4 sm:$0xff]  }
 0x23a   : > { %v8427_v22 = vpop.f32.mrb[77].mxu1 }
 0x23b   : > { %v8428_v7 = vadd.f32 %v8427_v22, %v8426_v60  ;;  %v8429_v9 = vpop.f32.mrb[78].mxu1  ;;  %8719 = vmatpush3.bf16.msra.mxu1 %v9988_v54  ;;  %v10300_v60 = vld [vmem:[%s10498_s21 + $0x1f8] ss:$108 sps:$4 sm:$0xff]   ;;  %v10301_v22 = vld [vmem:[%s10498_s21 + $0x2d4] ss:$108 sps:$4 sm:$0xff]  }
 0x23c   : > { %6119 = vmatpush1.bf16.msra.mxu0 %v9984_v51  ;;  %v8430_v27 = vpop.f32.mrb[79].mxu1  ;;  %8720 = vmatprep.subr.bf16.mxu1 %v9994_v1  ;;  %v9997_v51 = vld [vmem:[%s12932_s3 + $0x11b8] ss:$12 sps:$4 sm:$0xff]  }
 0x23d   : > { %6120 = vmatprep.subr.bf16.mxu0 %v9993_v40  ;;  %v12380_v17 = vadd.f32 %v8428_v7, %v12239_v53  ;;  %v8431_v5 = vadd.f32 %v8430_v27, %v8429_v9  ;;  %v10001_v40 = vld [vmem:[%s12932_s3 + $0xf80] ss:$12 sps:$4 sm:$0xff]   ;;  %v10007_v1 = vld [vmem:[%s12932_s3 + $0x1058] ss:$12 sps:$4 sm:$0xff]   ;;  %v10013_v27 = vld [vmem:[%s12932_s3 + $0x1070] ss:$12 sps:$4 sm:$0xff]  }
 0x23e   : > { %6949 = vmatmul.mubr.bf16.gmra.mrb[184].mxu1 %v10300_v60  ;;  %v10006_v53 = vld [vmem:[%s12932_s3 + $0x11d4] ss:$12 sps:$4 sm:$0xff]  }
 0x23f   : > { %v12387_v54 = vadd.f32 %v8431_v5, %v12253_v23  ;;  %8721 = vmatpush3.bf16.msra.mxu1 %v9996_v2  ;;  %6956 = vmatprep.mubr.bf16.mxu1 %v10301_v22  ;;  %v10004_v23 = vld [vmem:[%s12932_s3 + $0x11d0] ss:$12 sps:$4 sm:$0xff]   ;;  %v10009_v2 = vld [vmem:[%s12932_s3 + $0xf98] ss:$12 sps:$4 sm:$0xff]  }
 0x240   : > { %6121 = vmatpush1.bf16.msra.mxu0 %v9991_v58  ;;  %8722 = vmatprep.subr.bf16.mxu1 %v10000_v29 }
 0x241   : > { %6122 = vmatprep.subr.bf16.mxu0 %v9999_v20  ;;  %v8448_v35 = vpop.f32.mrb[80].mxu1  ;;  %v10012_v20 = vld [vmem:[%s12932_s3 + $0x11ec] ss:$12 sps:$4 sm:$0xff]  }
 0x242   : > { %v8449_v58 = vpop.f32.mrb[81].mxu1 }
 0x243   : > { %v8450_v7 = vadd.f32 %v8449_v58, %v8448_v35  ;;  %v8451_v9 = vpop.f32.mrb[82].mxu1  ;;  %8723 = vmatpush3.bf16.msra.mxu1 %v10001_v40  ;;  %v10010_v40 = vld [vmem:[%s12932_s3 + $0x11e8] ss:$12 sps:$4 sm:$0xff]   ;;  %v10014_v35 = vld [vmem:[%s12932_s3 + $0xfb0] ss:$12 sps:$4 sm:$0xff]  }
 0x244   : > { %6123 = vmatpush1.bf16.msra.mxu0 %v9997_v51  ;;  %v8452_v29 = vpop.f32.mrb[83].mxu1  ;;  %8724 = vmatprep.subr.bf16.mxu1 %v10007_v1  ;;  %v10302_v51 = vld [vmem:[%s10498_s21 + $0x2d0] ss:$108 sps:$4 sm:$0xff]   ;;  %v10021_v1 = vld [vmem:[%s12932_s3 + $0x1148] ss:$12 sps:$4 sm:$0xff]  }
 0x245   : > { %6124 = vmatprep.subr.bf16.mxu0 %v10006_v53  ;;  %v12412_v5 = vadd.f32 %v8450_v7, %v12279_v37  ;;  %v8453_v60 = vadd.f32 %v8452_v29, %v8451_v9  ;;  %v10020_v37 = vld [vmem:[%s12932_s3 + $0x1204] ss:$12 sps:$4 sm:$0xff]   ;;  %v10303_v7 = vld [vmem:[%s10498_s21 + $0x54] ss:$108 sps:$4 sm:$0xff]   ;;  %v10025_v9 = vld [vmem:[%s12932_s3 + $0x121c] ss:$12 sps:$4 sm:$0xff]  }
 0x246   : > { %6957 = vmatmul.mubr.bf16.gmra.mrb[188].mxu1 %v10302_v51  ;;  %v12428_v53 = vld [vmem:[%s10498_s21 + $0x58] ss:$108 sps:$4 sm:$0xff]   ;;  %v10026_v29 = vld [vmem:[%s12932_s3 + $0x1160] ss:$12 sps:$4 sm:$0xff]  }
 0x247   : > { %v12422_v22 = vadd.f32 %v8453_v60, %v12290_v48  ;;  %8725 = vmatpush3.bf16.msra.mxu1 %v10009_v2  ;;  %6997 = vmatprep.mubr.bf16.mxu1 %v10303_v7  ;;  %v10018_v48 = vld [vmem:[%s12932_s3 + $0x1200] ss:$12 sps:$4 sm:$0xff]  }
 0x248   : > { %6125 = vmatpush1.bf16.msra.mxu0 %v10004_v23  ;;  %8726 = vmatprep.subr.bf16.mxu1 %v10013_v27  ;;  %v10022_v23 = vld [vmem:[%s12932_s3 + $0x1088] ss:$12 sps:$4 sm:$0xff]  }
 0x249   : > { %6126 = vmatprep.subr.bf16.mxu0 %v10012_v20  ;;  %v8454_v58 = vpop.f32.mrb[84].mxu1 }
 0x24a   : > { %v8455_v2 = vpop.f32.mrb[85].mxu1 }
 0x24b   : > { %v8456_v20 = vadd.f32 %v8455_v2, %v8454_v58  ;;  %v8457_v27 = vpop.f32.mrb[86].mxu1  ;;  %8727 = vmatpush3.bf16.msra.mxu1 %v10014_v35  ;;  %v10023_v35 = vld [vmem:[%s12932_s3 + $0x1218] ss:$12 sps:$4 sm:$0xff]   ;;  %v12472_v58 = vld [vmem:[%s10498_s21 + $0x130] ss:$108 sps:$4 sm:$0xff]  }
 0x24c   : > { %6127 = vmatpush1.bf16.msra.mxu0 %v10010_v40  ;;  %v8458_v60 = vpop.f32.mrb[87].mxu1  ;;  %8752 = vmatprep.subr.bf16.mxu1 %v10021_v1  ;;  %v10028_v2 = vld [vmem:[%s12932_s3 + $0x1230] ss:$12 sps:$4 sm:$0xff]  }
 0x24d   : > { %6169 = vmatprep.subr.bf16.mxu0 %v10020_v37  ;;  %v12447_v51 = vadd.f32 %v8456_v20, %v12316_v38  ;;  %v8459_v7 = vadd.f32 %v8458_v60, %v8457_v27  ;;  %v10027_v38 = vld [vmem:[%s12932_s3 + $0x10a0] ss:$12 sps:$4 sm:$0xff]   ;;  %v10036_v27 = vld [vmem:[%s12932_s3 + $0x1190] ss:$12 sps:$4 sm:$0xff]  }
 0x24e   : > { %6998 = vmatmul.mubr.bf16.vlgmr.msra.gmra.mrb[192].mxu1 %v12140_v25  ;;  %v10030_v25 = vld [vmem:[%s12932_s3 + $0x1234] ss:$12 sps:$4 sm:$0xff]  }
 0x24f   : > { %6129 = vmatmul.mubr.bf16.vlgmr.msra.gmra.mrb[0].mxu0 %v12428_v53  ;;  %v12455_v40 = vadd.f32 %v8459_v7, %v12323_v4  ;;  %8753 = vmatpush3.bf16.msra.mxu1 %v10022_v23  ;;  %v10031_v4 = vld [vmem:[%s12932_s3 + $0x1178] ss:$12 sps:$4 sm:$0xff]  }
 0x250   : > { %6170 = vmatpush1.bf16.msra.mxu0 %v10018_v48  ;;  %8754 = vmatprep.subr.bf16.mxu1 %v10026_v29  ;;  %v12490_v7 = vld [vmem:[%s10498_s21 + $0x20c] ss:$108 sps:$4 sm:$0xff]  }
 0x251   : > { %6171 = vmatprep.subr.bf16.mxu0 %v10025_v9  ;;  %v8460_v37 = vpop.f32.mrb[88].mxu1  ;;  %7005 = vmatprep.mubr.bf16.mxu1 %v12162_v62  ;;  %v10032_v9 = vld [vmem:[%s12932_s3 + $0x10b8] ss:$12 sps:$4 sm:$0xff]  }
 0x252   : > { %6138 = vmatprep.mubr.bf16.mxu0 %v12450_v18  ;;  %v8461_v1 = vpop.f32.mrb[89].mxu1  ;;  %v10035_v62 = vld [vmem:[%s12932_s3 + $0x124c] ss:$12 sps:$4 sm:$0xff]  }
 0x253   : > { %v8462_v48 = vadd.f32 %v8461_v1, %v8460_v37  ;;  %v8463_v23 = vpop.f32.mrb[90].mxu1  ;;  %8755 = vmatpush3.bf16.msra.mxu1 %v10027_v38  ;;  %v10033_v38 = vld [vmem:[%s12932_s3 + $0x1248] ss:$12 sps:$4 sm:$0xff]  }
 0x254   : > { %6172 = vmatpush1.bf16.msra.mxu0 %v10023_v35  ;;  %v8464_v20 = vpop.f32.mrb[91].mxu1  ;;  %8756 = vmatprep.subr.bf16.mxu1 %v10031_v4  ;;  %v12512_v37 = vld [vmem:[%s10498_s21 + $0x208] ss:$108 sps:$4 sm:$0xff]  }
 0x255   : > { %6173 = vmatprep.subr.bf16.mxu0 %v10030_v25  ;;  %v12487_v29 = vadd.f32 %v8462_v48, %v12348_v39  ;;  %v8465_v60 = vadd.f32 %v8464_v20, %v8463_v23  ;;  %v10037_v39 = vld [vmem:[%s12932_s3 + $0x10d0] ss:$12 sps:$4 sm:$0xff]   ;;  %v10038_v23 = vld [vmem:[%s12932_s3 + $0x1260] ss:$12 sps:$4 sm:$0xff]  }
 0x256   : > { %7006 = vmatmul.mubr.bf16.gmra.mrb[196].mxu1 %v12187_v43  ;;  %v10040_v43 = vld [vmem:[%s12932_s3 + $0x1264] ss:$12 sps:$4 sm:$0xff]   ;;  %v10046_v20 = vld [vmem:[%s12932_s3 + $0x11c0] ss:$12 sps:$4 sm:$0xff]  }
 0x257   : > { %6139 = vmatmul.mubr.bf16.gmra.mrb[4].mxu0 %v12472_v58  ;;  %v12495_v35 = vadd.f32 %v8465_v60, %v12355_v63  ;;  %8757 = vmatpush3.bf16.msra.mxu1 %v10032_v9  ;;  %v10041_v63 = vld [vmem:[%s12932_s3 + $0x11a8] ss:$12 sps:$4 sm:$0xff]   ;;  %v12530_v60 = vld [vmem:[%s10498_s21 + $0x2e4] ss:$108 sps:$4 sm:$0xff]  }
 0x258   : > { %6174 = vmatpush1.bf16.msra.mxu0 %v10028_v2  ;;  %8758 = vmatprep.subr.bf16.mxu1 %v10036_v27  ;;  %v10042_v2 = vld [vmem:[%s12932_s3 + $0x10e8] ss:$12 sps:$4 sm:$0xff]  }
 0x259   : > { %6175 = vmatprep.subr.bf16.mxu0 %v10035_v62  ;;  %v8466_v25 = vpop.f32.mrb[92].mxu1  ;;  %7013 = vmatprep.mubr.bf16.mxu1 %v12202_v44  ;;  %v10045_v44 = vld [vmem:[%s12932_s3 + $0x127c] ss:$12 sps:$4 sm:$0xff]  }
 0x25a   : > { %6148 = vmatprep.mubr.bf16.mxu0 %v12490_v7  ;;  %v8467_v4 = vpop.f32.mrb[93].mxu1 }
 0x25b   : > { %v8468_v1 = vadd.f32 %v8467_v4, %v8466_v25  ;;  %v8469_v48 = vpop.f32.mrb[94].mxu1  ;;  %8759 = vmatpush3.bf16.msra.mxu1 %v10037_v39  ;;  %v10043_v39 = vld [vmem:[%s12932_s3 + $0x1278] ss:$12 sps:$4 sm:$0xff]   ;;  %v12552_v25 = vld [vmem:[%s10498_s21 + $0x2e0] ss:$108 sps:$4 sm:$0xff]  }
 0x25c   : > { %6176 = vmatpush1.bf16.msra.mxu0 %v10033_v38  ;;  %v8470_v9 = vpop.f32.mrb[95].mxu1  ;;  %8760 = vmatprep.subr.bf16.mxu1 %v10041_v63 }
 0x25d   : > { %6177 = vmatprep.subr.bf16.mxu0 %v10040_v43  ;;  %v12527_v62 = vadd.f32 %v8468_v1, %v12380_v17  ;;  %v8471_v27 = vadd.f32 %v8470_v9, %v8469_v48  ;;  %v10047_v17 = vld [vmem:[%s12932_s3 + $0x1100] ss:$12 sps:$4 sm:$0xff]   ;;  %v10048_v48 = vld [vmem:[%s12932_s3 + $0x1290] ss:$12 sps:$4 sm:$0xff]  }
 0x25e   : > { %7014 = vmatmul.mubr.bf16.gmra.mrb[200].mxu1 %v12233_v24  ;;  %v10050_v24 = vld [vmem:[%s12932_s3 + $0x1294] ss:$12 sps:$4 sm:$0xff]   ;;  %v10056_v9 = vld [vmem:[%s12932_s3 + $0x11f0] ss:$12 sps:$4 sm:$0xff]  }
 0x25f   : > { %6149 = vmatmul.mubr.bf16.gmra.mrb[8].mxu0 %v12512_v37  ;;  %v12535_v38 = vadd.f32 %v8471_v27, %v12387_v54  ;;  %8761 = vmatpush3.bf16.msra.mxu1 %v10042_v2  ;;  %v10051_v54 = vld [vmem:[%s12932_s3 + $0x11d8] ss:$12 sps:$4 sm:$0xff]  }
 0x260   : > { %6178 = vmatpush1.bf16.msra.mxu0 %v10038_v23  ;;  %8762 = vmatprep.subr.bf16.mxu1 %v10046_v20  ;;  %v10052_v23 = vld [vmem:[%s12932_s3 + $0x1118] ss:$12 sps:$4 sm:$0xff]  }
 0x261   : > { %6179 = vmatprep.subr.bf16.mxu0 %v10045_v44  ;;  %v8488_v43 = vpop.f32.mrb[96].mxu1  ;;  %7021 = vmatprep.mubr.bf16.mxu1 %v12245_v41  ;;  %v10055_v41 = vld [vmem:[%s12932_s3 + $0x12ac] ss:$12 sps:$4 sm:$0xff]   ;;  %v12570_v27 = vld [vmem:[%s10498_s21 + $0x64] ss:$108 sps:$4 sm:$0xff]  }
 0x262   : > { %6158 = vmatprep.mubr.bf16.mxu0 %v12530_v60  ;;  %v8489_v63 = vpop.f32.mrb[97].mxu1 }
 0x263   : > { %v8490_v4 = vadd.f32 %v8489_v63, %v8488_v43  ;;  %v8491_v1 = vpop.f32.mrb[98].mxu1  ;;  %8763 = vmatpush3.bf16.msra.mxu1 %v10047_v17  ;;  %v10053_v17 = vld [vmem:[%s12932_s3 + $0x12a8] ss:$12 sps:$4 sm:$0xff]  }
 0x264   : > { %6180 = vmatpush1.bf16.msra.mxu0 %v10043_v39  ;;  %v8492_v2 = vpop.f32.mrb[99].mxu1  ;;  %8764 = vmatprep.subr.bf16.mxu1 %v10051_v54 }
 0x265   : > { %6181 = vmatprep.subr.bf16.mxu0 %v10050_v24  ;;  %v12567_v44 = vadd.f32 %v8490_v4, %v12412_v5  ;;  %v8493_v20 = vadd.f32 %v8492_v2, %v8491_v1  ;;  %v10057_v5 = vld [vmem:[%s12932_s3 + $0x1130] ss:$12 sps:$4 sm:$0xff]   ;;  %v10058_v4 = vld [vmem:[%s12932_s3 + $0x12c0] ss:$12 sps:$4 sm:$0xff]   ;;  %v10062_v1 = vld [vmem:[%s12932_s3 + $0x1208] ss:$12 sps:$4 sm:$0xff]  }
 0x266   : > { %7022 = vmatmul.mubr.bf16.gmra.mrb[204].mxu1 %v12270_v3  ;;  %v10060_v3 = vld [vmem:[%s12932_s3 + $0x12c4] ss:$12 sps:$4 sm:$0xff]  }
 0x267   : > { %6159 = vmatmul.mubr.bf16.gmra.mrb[12].mxu0 %v12552_v25  ;;  %v12575_v39 = vadd.f32 %v8493_v20, %v12422_v22  ;;  %8765 = vmatpush3.bf16.msra.mxu1 %v10052_v23  ;;  %v10061_v22 = vld [vmem:[%s12932_s3 + $0x12c8] ss:$12 sps:$4 sm:$0xff]   ;;  %v10066_v23 = vld [vmem:[%s12932_s3 + $0x12e0] ss:$12 sps:$4 sm:$0xff]   ;;  %v10063_v20 = vld [vmem:[%s12932_s3 + $0x12d8] ss:$12 sps:$4 sm:$0xff]  }
 0x268   : > { %6182 = vmatpush1.bf16.msra.mxu0 %v10048_v48  ;;  %8766 = vmatprep.subr.bf16.mxu1 %v10056_v9 }
 0x269   : > { %6183 = vmatprep.subr.bf16.mxu0 %v10055_v41  ;;  %v8494_v24 = vpop.f32.mrb[100].mxu1  ;;  %7062 = vmatprep.mubr.bf16.mxu1 %v12282_v46  ;;  %v10065_v46 = vld [vmem:[%s12932_s3 + $0x12dc] ss:$12 sps:$4 sm:$0xff]  }
 0x26a   : > { %6201 = vmatprep.mubr.bf16.mxu0 %v12570_v27  ;;  %v8495_v54 = vpop.f32.mrb[101].mxu1 }
 0x26b   : > { %v8496_v43 = vadd.f32 %v8495_v54, %v8494_v24  ;;  %v8497_v63 = vpop.f32.mrb[102].mxu1  ;;  %8767 = vmatpush3.bf16.msra.mxu1 %v10057_v5  ;;  %v10071_v24 = vld [vmem:[%s12932_s3 + $0x12f0] ss:$12 sps:$4 sm:$0xff]   ;;  %v10075_v54 = vld [vmem:[%s12932_s3 + $0x1238] ss:$12 sps:$4 sm:$0xff]  }
 0x26c   : > { %6184 = vmatpush1.bf16.msra.mxu0 %v10053_v17  ;;  %v8498_v48 = vpop.f32.mrb[103].mxu1  ;;  %8792 = vmatprep.subr.bf16.mxu1 %v10061_v22  ;;  %v10067_v17 = vld [vmem:[%s12932_s3 + $0x1220] ss:$12 sps:$4 sm:$0xff]  }
 0x26d   : > { %6185 = vmatprep.subr.bf16.mxu0 %v10060_v3  ;;  %v12604_v2 = vadd.f32 %v8496_v43, %v12447_v51  ;;  %v8499_v41 = vadd.f32 %v8498_v48, %v8497_v63  ;;  %v10073_v51 = vld [vmem:[%s12932_s3 + $0x12f4] ss:$12 sps:$4 sm:$0xff]   ;;  %v10079_v63 = vld [vmem:[%s12932_s3 + $0x1310] ss:$12 sps:$4 sm:$0xff]  }
 0x26e   : > { %7063 = vmatmul.mubr.bf16.vlgmr.msra.gmra.mrb[208].mxu1 %v12428_v53  ;;  %v10074_v53 = vld [vmem:[%s12932_s3 + $0x12f8] ss:$12 sps:$4 sm:$0xff]  }
 0x26f   : > { %v12608_v9 = vadd.f32 %v8499_v41, %v12455_v40  ;;  %8793 = vmatpush3.bf16.msra.mxu1 %v10062_v1  ;;  %7070 = vmatprep.mubr.bf16.mxu1 %v12450_v18  ;;  %v10078_v18 = vld [vmem:[%s12932_s3 + $0x130c] ss:$12 sps:$4 sm:$0xff]  }
 0x270   : > { %6186 = vmatpush1.bf16.msra.mxu0 %v10058_v4  ;;  %8794 = vmatprep.subr.bf16.mxu1 %v10066_v23  ;;  %v10080_v23 = vld [vmem:[%s12932_s3 + $0x1250] ss:$12 sps:$4 sm:$0xff]  }
 0x271   : > { %6187 = vmatprep.subr.bf16.mxu0 %v10065_v46  ;;  %v8500_v40 = vpop.f32.mrb[104].mxu1  ;;  %v10076_v46 = vld [vmem:[%s12932_s3 + $0x1308] ss:$12 sps:$4 sm:$0xff]  }
 0x272   : > { %v8501_v5 = vpop.f32.mrb[105].mxu1 }
 0x273   : > { %v8502_v3 = vadd.f32 %v8501_v5, %v8500_v40  ;;  %v8503_v22 = vpop.f32.mrb[106].mxu1  ;;  %8795 = vmatpush3.bf16.msra.mxu1 %v10067_v17  ;;  %v10092_v5 = vld [vmem:[%s12932_s3 + $0x1340] ss:$12 sps:$4 sm:$0xff]  }
 0x274   : > { %6188 = vmatpush1.bf16.msra.mxu0 %v10063_v20  ;;  %v8504_v43 = vpop.f32.mrb[107].mxu1  ;;  %8796 = vmatprep.subr.bf16.mxu1 %v10074_v53  ;;  %v10088_v53 = vld [vmem:[%s12932_s3 + $0x1268] ss:$12 sps:$4 sm:$0xff]  }
 0x275   : > { %6189 = vmatprep.subr.bf16.mxu0 %v10073_v51  ;;  %v12636_v4 = vadd.f32 %v8502_v3, %v12487_v29  ;;  %v8505_v1 = vadd.f32 %v8504_v43, %v8503_v22  ;;  %v10086_v29 = vld [vmem:[%s12932_s3 + $0x1324] ss:$12 sps:$4 sm:$0xff]   ;;  %v10084_v51 = vld [vmem:[%s12932_s3 + $0x1320] ss:$12 sps:$4 sm:$0xff]  }
 0x276   : > { %7071 = vmatmul.mubr.bf16.gmra.mrb[212].mxu1 %v12472_v58  ;;  %v10087_v58 = vld [vmem:[%s12932_s3 + $0x1328] ss:$12 sps:$4 sm:$0xff]   ;;  %v10093_v43 = vld [vmem:[%s12932_s3 + $0x1280] ss:$12 sps:$4 sm:$0xff]  }
 0x277   : > { %v12640_v48 = vadd.f32 %v8505_v1, %v12495_v35  ;;  %8797 = vmatpush3.bf16.msra.mxu1 %v10075_v54  ;;  %7078 = vmatprep.mubr.bf16.mxu1 %v12490_v7  ;;  %v10091_v7 = vld [vmem:[%s12932_s3 + $0x133c] ss:$12 sps:$4 sm:$0xff]   ;;  %v10089_v54 = vld [vmem:[%s12932_s3 + $0x1338] ss:$12 sps:$4 sm:$0xff]  }
 0x278   : > { %6190 = vmatpush1.bf16.msra.mxu0 %v10071_v24  ;;  %8798 = vmatprep.subr.bf16.mxu1 %v10079_v63 }
 0x279   : > { %6191 = vmatprep.subr.bf16.mxu0 %v10078_v18  ;;  %v8506_v35 = vpop.f32.mrb[108].mxu1 }
 0x27a   : > { %v8507_v41 = vpop.f32.mrb[109].mxu1 }
 0x27b   : > { %v8508_v20 = vadd.f32 %v8507_v41, %v8506_v35  ;;  %v8509_v17 = vpop.f32.mrb[110].mxu1  ;;  %8799 = vmatpush3.bf16.msra.mxu1 %v10080_v23  ;;  %v10101_v23 = vld [vmem:[%s12932_s3 + $0x1298] ss:$12 sps:$4 sm:$0xff]  }
 0x27c   : > { %6192 = vmatpush1.bf16.msra.mxu0 %v10076_v46  ;;  %v8510_v40 = vpop.f32.mrb[111].mxu1  ;;  %8800 = vmatprep.subr.bf16.mxu1 %v10087_v58  ;;  %v10097_v46 = vld [vmem:[%s12932_s3 + $0x1350] ss:$12 sps:$4 sm:$0xff]  }
 0x27d   : > { %6193 = vmatprep.subr.bf16.mxu0 %v10086_v29  ;;  %v12668_v3 = vadd.f32 %v8508_v20, %v12527_v62  ;;  %v8511_v22 = vadd.f32 %v8510_v40, %v8509_v17  ;;  %v10099_v62 = vld [vmem:[%s12932_s3 + $0x1354] ss:$12 sps:$4 sm:$0xff]   ;;  %v10105_v58 = vld [vmem:[%s12932_s3 + $0x1370] ss:$12 sps:$4 sm:$0xff]  }
 0x27e   : > { %7079 = vmatmul.mubr.bf16.gmra.mrb[216].mxu1 %v12512_v37  ;;  %v10100_v37 = vld [vmem:[%s12932_s3 + $0x1358] ss:$12 sps:$4 sm:$0xff]   ;;  %v10102_v17 = vld [vmem:[%s12932_s3 + $0x1368] ss:$12 sps:$4 sm:$0xff]  }
 0x27f   : > { %v12672_v24 = vadd.f32 %v8511_v22, %v12535_v38  ;;  %8801 = vmatpush3.bf16.msra.mxu1 %v10088_v53  ;;  %7086 = vmatprep.mubr.bf16.mxu1 %v12530_v60  ;;  %v10104_v60 = vld [vmem:[%s12932_s3 + $0x136c] ss:$12 sps:$4 sm:$0xff]  }
 0x280   : > { %6194 = vmatpush1.bf16.msra.mxu0 %v10084_v51  ;;  %8802 = vmatprep.subr.bf16.mxu1 %v10092_v5  ;;  %v10106_v51 = vld [vmem:[%s12932_s3 + $0x12b0] ss:$12 sps:$4 sm:$0xff]   ;;  %v10107_v53 = vld [vmem:[%s10498_s21 + $0x60] ss:$108 sps:$4 sm:$0xff]  }
 0x281   : > { %6195 = vmatprep.subr.bf16.mxu0 %v10091_v7  ;;  %v8528_v38 = vpop.f32.mrb[112].mxu1  ;;  %v10111_v22 = vld [vmem:[%s12932_s3 + $0x13a0] ss:$12 sps:$4 sm:$0xff]  }
 0x282   : > { %v8529_v18 = vpop.f32.mrb[113].mxu1 }
 0x283   : > { %v8530_v63 = vadd.f32 %v8529_v18, %v8528_v38  ;;  %v8531_v1 = vpop.f32.mrb[114].mxu1  ;;  %8803 = vmatpush3.bf16.msra.mxu1 %v10093_v43  ;;  %v10114_v18 = vld [vmem:[%s10498_s21 + $0x138] ss:$108 sps:$4 sm:$0xff]  }
 0x284   : > { %6196 = vmatpush1.bf16.msra.mxu0 %v10089_v54  ;;  %v8532_v29 = vpop.f32.mrb[115].mxu1  ;;  %8804 = vmatprep.subr.bf16.mxu1 %v10100_v37  ;;  %v10115_v37 = vld [vmem:[%s12932_s3 + $0x13b8] ss:$12 sps:$4 sm:$0xff]  }
 0x285   : > { %6197 = vmatprep.subr.bf16.mxu0 %v10099_v62  ;;  %v12700_v35 = vadd.f32 %v8530_v63, %v12567_v44  ;;  %v8533_v41 = vadd.f32 %v8532_v29, %v8531_v1  ;;  %v10112_v62 = vld [vmem:[%s10498_s21 + $0x13c] ss:$108 sps:$4 sm:$0xff]  }
 0x286   : > { %7087 = vmatmul.mubr.bf16.gmra.mrb[220].mxu1 %v12552_v25  ;;  %v10110_v25 = vld [vmem:[%s12932_s3 + $0x1388] ss:$12 sps:$4 sm:$0xff]  }
 0x287   : > { %v12704_v20 = vadd.f32 %v8533_v41, %v12575_v39  ;;  %8805 = vmatpush3.bf16.msra.mxu1 %v10101_v23  ;;  %7127 = vmatprep.mubr.bf16.mxu1 %v12570_v27  ;;  %v10120_v41 = vld [vmem:[%s12932_s3 + $0x13e8] ss:$12 sps:$4 sm:$0xff]  }
 0x288   : > { %6198 = vmatpush1.bf16.msra.mxu0 %v10097_v46  ;;  %8806 = vmatprep.subr.bf16.mxu1 %v10105_v58  ;;  %v10116_v46 = vld [vmem:[%s12932_s3 + $0x13d0] ss:$12 sps:$4 sm:$0xff]  }
 0x289   : > { %6199 = vmatprep.subr.bf16.mxu0 %v10104_v60  ;;  %v8534_v44 = vpop.f32.mrb[116].mxu1  ;;  %v10117_v60 = vld [vmem:[%s10498_s21 + $0x214] ss:$108 sps:$4 sm:$0xff]  }
 0x28a   : > { %v8535_v39 = vpop.f32.mrb[117].mxu1 }
 0x28b   : > { %v8536_v40 = vadd.f32 %v8535_v39, %v8534_v44  ;;  %v8537_v7 = vpop.f32.mrb[118].mxu1  ;;  %8807 = vmatpush3.bf16.msra.mxu1 %v10106_v51  ;;  %v10119_v51 = vld [vmem:[%s10498_s21 + $0x210] ss:$108 sps:$4 sm:$0xff]   ;;  %v10121_v39 = vld [vmem:[%s12932_s3 + $0x1400] ss:$12 sps:$4 sm:$0xff]  }
 0x28c   : > { %6200 = vmatpush1.bf16.msra.mxu0 %v10102_v17  ;;  %v8538_v5 = vpop.f32.mrb[119].mxu1  ;;  %8868 = vmatprep.subr.bf16.mxu1 %v10110_v25 }
 0x28d   : > { %8844 = vmatprep.subr.bf16.mxu0 %v10110_v25  ;;  %v12721_v54 = vadd.f32 %v8536_v40, %v12604_v2  ;;  %v8539_v43 = vadd.f32 %v8538_v5, %v8537_v7  ;;  %v10122_v7 = vld [vmem:[%s10498_s21 + $0x2ec] ss:$108 sps:$4 sm:$0xff]  }
 0x28e   : > { %7128 = vmatmul.mubr.bf16.vlgmr.msra.gmra.mrb[224].mxu1 %v10107_v53 }
 0x28f   : > { %6202 = vmatmul.mubr.bf16.vlgmr.msra.gmra.mrb[0].mxu0 %v10107_v53  ;;  %v12725_v27 = vadd.f32 %v8539_v43, %v12608_v9  ;;  %8876 = vmatpush3.bf16.msra.mxu1 %v10110_v25 }
 0x290   : > { %8845 = vmatpush3.bf16.msra.mxu0 %v10110_v25  ;;  %8869 = vmatprep.subr.bf16.mxu1 %v10111_v22 }
 0x291   : > { %8846 = vmatprep.subr.bf16.mxu0 %v10111_v22  ;;  %v8540_v38 = vpop.f32.mrb[120].mxu1  ;;  %6211 = vmatprep.mubr.bf16.mxu0 %v10112_v62 }
 0x292   : > { %7135 = vmatprep.mubr.bf16.mxu1 %v10112_v62  ;;  %v8541_v2 = vpop.f32.mrb[121].mxu1 }
 0x293   : > { %v8542_v63 = vadd.f32 %v8541_v2, %v8540_v38  ;;  %v8543_v1 = vpop.f32.mrb[122].mxu1  ;;  %8877 = vmatpush3.bf16.msra.mxu1 %v10111_v22 }
 0x294   : > { %8847 = vmatpush3.bf16.msra.mxu0 %v10111_v22  ;;  %v8544_v9 = vpop.f32.mrb[123].mxu1  ;;  %8870 = vmatprep.subr.bf16.mxu1 %v10115_v37  ;;  %v10125_v22 = vld [vmem:[%s12932_s3 + $0x1418] ss:$12 sps:$4 sm:$0xff]  }
 0x295   : > { %8848 = vmatprep.subr.bf16.mxu0 %v10115_v37  ;;  %v12735_v23 = vadd.f32 %v8542_v63, %v12636_v4  ;;  %v8545_v29 = vadd.f32 %v8544_v9, %v8543_v1 }
 0x296   : > { %7136 = vmatmul.mubr.bf16.gmra.mrb[228].mxu1 %v10114_v18 }
 0x297   : > { %6212 = vmatmul.mubr.bf16.gmra.mrb[4].mxu0 %v10114_v18  ;;  %v12739_v58 = vadd.f32 %v8545_v29, %v12640_v48  ;;  %8878 = vmatpush3.bf16.msra.mxu1 %v10115_v37  ;;  %v10305_v29 = vld [vmem:[%s10498_s21 + $0x218] ss:$108 sps:$4 sm:$0xff]  }
 0x298   : > { %8849 = vmatpush3.bf16.msra.mxu0 %v10115_v37  ;;  %8871 = vmatprep.subr.bf16.mxu1 %v10116_v46 }
 0x299   : > { %8850 = vmatprep.subr.bf16.mxu0 %v10116_v46  ;;  %v8546_v17 = vpop.f32.mrb[124].mxu1  ;;  %6221 = vmatprep.mubr.bf16.mxu0 %v10117_v60 }
 0x29a   : > { %7143 = vmatprep.mubr.bf16.mxu1 %v10117_v60  ;;  %v8547_v4 = vpop.f32.mrb[125].mxu1 }
 0x29b   : > { %v8548_v25 = vadd.f32 %v8547_v4, %v8546_v17  ;;  %v8549_v44 = vpop.f32.mrb[126].mxu1  ;;  %8879 = vmatpush3.bf16.msra.mxu1 %v10116_v46 }
 0x29c   : > { %8851 = vmatpush3.bf16.msra.mxu0 %v10116_v46  ;;  %v8550_v48 = vpop.f32.mrb[127].mxu1  ;;  %8872 = vmatprep.subr.bf16.mxu1 %v10120_v41  ;;  %v10304_v46 = vld [vmem:[%s10498_s21 + $0x68] ss:$108 sps:$4 sm:$0xff]  }
 0x29d   : > { %8852 = vmatprep.subr.bf16.mxu0 %v10120_v41  ;;  %v12749_v53 = vadd.f32 %v8548_v25, %v12668_v3  ;;  %v8551_v40 = vadd.f32 %v8550_v48, %v8549_v44  ;;  %v10124_v3 = vld [vmem:[%s10498_s21 + $0x2e8] ss:$108 sps:$4 sm:$0xff]   ;;  %v10307_v25 = vld [vmem:[%s10498_s21 + $0x2f0] ss:$108 sps:$4 sm:$0xff]  }
 0x29e   : > { %7144 = vmatmul.mubr.bf16.gmra.mrb[232].mxu1 %v10119_v51 }
 0x29f   : > { %6222 = vmatmul.mubr.bf16.gmra.mrb[8].mxu0 %v10119_v51  ;;  %v6702_v5 = vadd.f32 %v8551_v40, %v12672_v24  ;;  %8880 = vmatpush3.bf16.msra.mxu1 %v10120_v41  ;;  %v10126_v24 = vld [vmem:[%s12932_s3 + $0x1430] ss:$12 sps:$4 sm:$0xff]   ;;  %v10306_v51 = vld [vmem:[%s10498_s21 + $0x140] ss:$108 sps:$4 sm:$0xff]   ;;  %s9092_s21 = smul.u32 24, %s12938_s9 }
 0x2a0   : > { %8853 = vmatpush3.bf16.msra.mxu0 %v10120_v41  ;;  %8873 = vmatprep.subr.bf16.mxu1 %v10121_v39 }
 0x2a1   : > { %8854 = vmatprep.subr.bf16.mxu0 %v10121_v39  ;;  %v8568_v43 = vpop.f32.mrb[128].mxu1  ;;  %6231 = vmatprep.mubr.bf16.mxu0 %v10122_v7  ;;  %s12787_s19 = scalar_lea.vmem %s12929_s0, %s9092_s21 }
 0x2a2   : > { %7151 = vmatprep.mubr.bf16.mxu1 %v10122_v7  ;;  %v8569_v62 = vpop.f32.mrb[129].mxu1 }
 0x2a3   : > { %v8570_v37 = vadd.f32 %v8569_v62, %v8568_v43  ;;  %v8571_v38 = vpop.f32.mrb[130].mxu1  ;;  %8881 = vmatpush3.bf16.msra.mxu1 %v10121_v39 }
 0x2a4   : > { %8855 = vmatpush3.bf16.msra.mxu0 %v10121_v39  ;;  %v8572_v2 = vpop.f32.mrb[131].mxu1  ;;  %8874 = vmatprep.subr.bf16.mxu1 %v10125_v22 }
 0x2a5   : > { %8856 = vmatprep.subr.bf16.mxu0 %v10125_v22  ;;  %v6740_v18 = vadd.f32 %v8570_v37, %v12700_v35  ;;  %v8573_v63 = vadd.f32 %v8572_v2, %v8571_v38 }
 0x2a6   : > { %7152 = vmatmul.mubr.bf16.gmra.mrb[236].mxu1 %v10124_v3 }
 0x2a7   : > { %6232 = vmatmul.mubr.bf16.gmra.mrb[12].mxu0 %v10124_v3  ;;  %v6743_v1 = vadd.f32 %v8573_v63, %v12704_v20  ;;  %8882 = vmatpush3.bf16.msra.mxu1 %v10125_v22 }
 0x2a8   : > { %8857 = vmatpush3.bf16.msra.mxu0 %v10125_v22  ;;  %8875 = vmatprep.subr.bf16.mxu1 %v10126_v24 }
 0x2a9   : > { %8858 = vmatprep.subr.bf16.mxu0 %v10126_v24  ;;  %v8574_v9 = vpop.f32.mrb[132].mxu1  ;;  %8860 = vmatprep.mubr.bf16.mxu0 %v10304_v46 }
 0x2aa   : > { %8864 = vmatprep.mubr.bf16.mxu1 %v10305_v29  ;;  %v8575_v60 = vpop.f32.mrb[133].mxu1 }
 0x2ab   : > { %v8576_v41 = vadd.f32 %v8575_v60, %v8574_v9  ;;  %v8577_v17 = vpop.f32.mrb[134].mxu1  ;;  %8883 = vmatpush3.bf16.msra.mxu1 %v10126_v24 }
 0x2ac   : > { %8859 = vmatpush3.bf16.msra.mxu0 %v10126_v24  ;;  %v8578_v35 = vpop.f32.mrb[135].mxu1 }
 0x2ad   : > { %v6748_v4 = vadd.f32 %v8576_v41, %v12721_v54  ;;  %v8579_v20 = vadd.f32 %v8578_v35, %v8577_v17 }
 0x2ae   : > { %8865 = vmatmul.mubr.bf16.vlgmr.msra.gmra.mrb[240].mxu1 %v10307_v25 }
 0x2af   : > { %8861 = vmatmul.mubr.bf16.vlgmr.msra.gmra.mrb[16].mxu0 %v10306_v51  ;;  %v6751_v44 = vadd.f32 %v8579_v20, %v12725_v27 }
 0x2b1   : > { %v8580_v48 = vpop.f32.mrb[136].mxu1 }
 0x2b2   : > { %v8581_v39 = vpop.f32.mrb[137].mxu1 }
 0x2b3   : > { %v8582_v40 = vadd.f32 %v8581_v39, %v8580_v48  ;;  %v8583_v7 = vpop.f32.mrb[138].mxu1 }
 0x2b4   : > { %v8584_v22 = vpop.f32.mrb[139].mxu1 }
 0x2b5   : > { %v6756_v43 = vadd.f32 %v8582_v40, %v12735_v23  ;;  %v8585_v62 = vadd.f32 %v8584_v22, %v8583_v7 }
 0x2b7   : > { %v6759_v3 = vadd.f32 %v8585_v62, %v12739_v58 }
 0x2b9   : > { %v8586_v37 = vpop.f32.mrb[140].mxu1 }
 0x2ba   : > { %v8587_v38 = vpop.f32.mrb[141].mxu1 }
 0x2bb   : > { %v8588_v54 = vadd.f32 %v8587_v38, %v8586_v37  ;;  %v8589_v2 = vpop.f32.mrb[142].mxu1 }
 0x2bc   : > { %v8590_v24 = vpop.f32.mrb[143].mxu1 }
 0x2bd   : > { %v6764_v63 = vadd.f32 %v8588_v54, %v12749_v53  ;;  %v8591_v9 = vadd.f32 %v8590_v24, %v8589_v2 }
 0x2bf   : > { %v6767_v46 = vadd.f32 %v8591_v9, %v6702_v5 }
 0x2c1   : > { %v8608_v27 = vpop.f32.mrb[144].mxu1 }
 0x2c2   : > { %v8609_v29 = vpop.f32.mrb[145].mxu1 }
 0x2c3   : > { %v8610_v60 = vadd.f32 %v8609_v29, %v8608_v27  ;;  %v8611_v41 = vpop.f32.mrb[146].mxu1 }
 0x2c4   : > { %v8612_v17 = vpop.f32.mrb[147].mxu1 }
 0x2c5   : > { %v6805_v35 = vadd.f32 %v8610_v60, %v6740_v18  ;;  %v8613_v20 = vadd.f32 %v8612_v17, %v8611_v41 }
 0x2c7   : > { %v6808_v23 = vadd.f32 %v8613_v20, %v6743_v1 }
 0x2c9   : > { %v8614_v51 = vpop.f32.mrb[148].mxu1 }
 0x2ca   : > { %v8615_v25 = vpop.f32.mrb[149].mxu1 }
 0x2cb   : > { %v8616_v58 = vadd.f32 %v8615_v25, %v8614_v51  ;;  %v8617_v48 = vpop.f32.mrb[150].mxu1 }
 0x2cc   : > { %v8618_v39 = vpop.f32.mrb[151].mxu1 }
 0x2cd   : > { %v6813_v40 = vadd.f32 %v8616_v58, %v6748_v4  ;;  %v8619_v7 = vadd.f32 %v8618_v39, %v8617_v48 }
 0x2cf   : > { %v6816_v22 = vadd.f32 %v8619_v7, %v6751_v44 }
 0x2d1   : > { %v8620_v62 = vpop.f32.mrb[152].mxu1 }
 0x2d2   : > { %v8621_v53 = vpop.f32.mrb[153].mxu1 }
 0x2d3   : > { %v8622_v37 = vadd.f32 %v8621_v53, %v8620_v62  ;;  %v8623_v5 = vpop.f32.mrb[154].mxu1 }
 0x2d4   : > { %v8624_v38 = vpop.f32.mrb[155].mxu1 }
 0x2d5   : > { %v6821_v54 = vadd.f32 %v8622_v37, %v6756_v43  ;;  %v8625_v2 = vadd.f32 %v8624_v38, %v8623_v5 }
 0x2d7   : > { %v6824_v24 = vadd.f32 %v8625_v2, %v6759_v3 }
 0x2d9   : > { %v8626_v9 = vpop.f32.mrb[156].mxu1 }
 0x2da   : > { %v8627_v18 = vpop.f32.mrb[157].mxu1 }
 0x2db   : > { %v8628_v27 = vadd.f32 %v8627_v18, %v8626_v9  ;;  %v8629_v1 = vpop.f32.mrb[158].mxu1 }
 0x2dc   : > { %v8630_v29 = vpop.f32.mrb[159].mxu1 }
 0x2dd   : > { %v6829_v60 = vadd.f32 %v8628_v27, %v6764_v63  ;;  %v8631_v41 = vadd.f32 %v8630_v29, %v8629_v1 }
 0x2df   : > { %v6832_v17 = vadd.f32 %v8631_v41, %v6767_v46 }
 0x2e1   : > { %v8648_v20 = vpop.f32.mrb[160].mxu1 }
 0x2e2   : > { %v8649_v4 = vpop.f32.mrb[161].mxu1 }
 0x2e3   : > { %v8650_v51 = vadd.f32 %v8649_v4, %v8648_v20  ;;  %v8651_v44 = vpop.f32.mrb[162].mxu1 }
 0x2e4   : > { %v8652_v25 = vpop.f32.mrb[163].mxu1 }
 0x2e5   : > { %v6870_v58 = vadd.f32 %v8650_v51, %v6805_v35  ;;  %v8653_v48 = vadd.f32 %v8652_v25, %v8651_v44 }
 0x2e7   : > { %v6873_v39 = vadd.f32 %v8653_v48, %v6808_v23 }
 0x2e9   : > { %v8654_v7 = vpop.f32.mrb[164].mxu1 }
 0x2ea   : > { %v8655_v43 = vpop.f32.mrb[165].mxu1 }
 0x2eb   : > { %v8656_v62 = vadd.f32 %v8655_v43, %v8654_v7  ;;  %v8657_v3 = vpop.f32.mrb[166].mxu1 }
 0x2ec   : > { %v8658_v53 = vpop.f32.mrb[167].mxu1 }
 0x2ed   : > { %v6878_v37 = vadd.f32 %v8656_v62, %v6813_v40  ;;  %v8659_v5 = vadd.f32 %v8658_v53, %v8657_v3 }
 0x2ef   : > { %v6881_v38 = vadd.f32 %v8659_v5, %v6816_v22 }
 0x2f1   : > { %v8660_v2 = vpop.f32.mrb[168].mxu1 }
 0x2f2   : > { %v8661_v63 = vpop.f32.mrb[169].mxu1 }
 0x2f3   : > { %v8662_v9 = vadd.f32 %v8661_v63, %v8660_v2  ;;  %v8663_v46 = vpop.f32.mrb[170].mxu1 }
 0x2f4   : > { %v8664_v18 = vpop.f32.mrb[171].mxu1 }
 0x2f5   : > { %v6886_v27 = vadd.f32 %v8662_v9, %v6821_v54  ;;  %v8665_v1 = vadd.f32 %v8664_v18, %v8663_v46 }
 0x2f7   : > { %v6889_v29 = vadd.f32 %v8665_v1, %v6824_v24 }
 0x2f9   : > { %v8666_v41 = vpop.f32.mrb[172].mxu1 }
 0x2fa   : > { %v8667_v35 = vpop.f32.mrb[173].mxu1 }
 0x2fb   : > { %v8668_v20 = vadd.f32 %v8667_v35, %v8666_v41  ;;  %v8669_v23 = vpop.f32.mrb[174].mxu1 }
 0x2fc   : > { %v8670_v4 = vpop.f32.mrb[175].mxu1 }
 0x2fd   : > { %v6894_v51 = vadd.f32 %v8668_v20, %v6829_v60  ;;  %v8671_v44 = vadd.f32 %v8670_v4, %v8669_v23 }
 0x2ff   : > { %v6897_v25 = vadd.f32 %v8671_v44, %v6832_v17 }
 0x301   : > { %v8688_v48 = vpop.f32.mrb[176].mxu1 }
 0x302   : > { %v8689_v40 = vpop.f32.mrb[177].mxu1 }
 0x303   : > { %v8690_v7 = vadd.f32 %v8689_v40, %v8688_v48  ;;  %v8691_v22 = vpop.f32.mrb[178].mxu1 }
 0x304   : > { %v8692_v43 = vpop.f32.mrb[179].mxu1 }
 0x305   : > { %v6935_v62 = vadd.f32 %v8690_v7, %v6870_v58  ;;  %v8693_v3 = vadd.f32 %v8692_v43, %v8691_v22 }
 0x307   : > { %v6938_v53 = vadd.f32 %v8693_v3, %v6873_v39 }
 0x309   : > { %v8694_v5 = vpop.f32.mrb[180].mxu1 }
 0x30a   : > { %v8695_v54 = vpop.f32.mrb[181].mxu1 }
 0x30b   : > { %v8696_v2 = vadd.f32 %v8695_v54, %v8694_v5  ;;  %v8697_v24 = vpop.f32.mrb[182].mxu1 }
 0x30c   : > { %v8698_v63 = vpop.f32.mrb[183].mxu1 }
 0x30d   : > { %v6943_v9 = vadd.f32 %v8696_v2, %v6878_v37  ;;  %v8699_v46 = vadd.f32 %v8698_v63, %v8697_v24 }
 0x30f   : > { %v6946_v18 = vadd.f32 %v8699_v46, %v6881_v38 }
 0x311   : > { %v8700_v1 = vpop.f32.mrb[184].mxu1 }
 0x312   : > { %v8701_v60 = vpop.f32.mrb[185].mxu1 }
 0x313   : > { %v8702_v41 = vadd.f32 %v8701_v60, %v8700_v1  ;;  %v8703_v17 = vpop.f32.mrb[186].mxu1 }
 0x314   : > { %v8704_v35 = vpop.f32.mrb[187].mxu1 }
 0x315   : > { %v6951_v20 = vadd.f32 %v8702_v41, %v6886_v27  ;;  %v8705_v23 = vadd.f32 %v8704_v35, %v8703_v17 }
 0x317   : > { %v6954_v4 = vadd.f32 %v8705_v23, %v6889_v29 }
 0x319   : > { %v8706_v44 = vpop.f32.mrb[188].mxu1 }
 0x31a   : > { %v8707_v58 = vpop.f32.mrb[189].mxu1 }
 0x31b   : > { %v8708_v48 = vadd.f32 %v8707_v58, %v8706_v44  ;;  %v8709_v39 = vpop.f32.mrb[190].mxu1 }
 0x31c   : > { %v8710_v40 = vpop.f32.mrb[191].mxu1 }
 0x31d   : > { %v6959_v7 = vadd.f32 %v8708_v48, %v6894_v51  ;;  %v8711_v22 = vadd.f32 %v8710_v40, %v8709_v39 }
 0x31f   : > { %v6962_v43 = vadd.f32 %v8711_v22, %v6897_v25 }
 0x321   : > { %v8728_v3 = vpop.f32.mrb[192].mxu1 }
 0x322   : > { %v8729_v37 = vpop.f32.mrb[193].mxu1 }
 0x323   : > { %v8730_v5 = vadd.f32 %v8729_v37, %v8728_v3  ;;  %v8731_v38 = vpop.f32.mrb[194].mxu1 }
 0x324   : > { %v8732_v54 = vpop.f32.mrb[195].mxu1 }
 0x325   : > { %v7000_v2 = vadd.f32 %v8730_v5, %v6935_v62  ;;  %v8733_v24 = vadd.f32 %v8732_v54, %v8731_v38 }
 0x327   : > { %v7003_v63 = vadd.f32 %v8733_v24, %v6938_v53 }
 0x329   : > { %v8734_v46 = vpop.f32.mrb[196].mxu1 }
 0x32a   : > { %v8735_v27 = vpop.f32.mrb[197].mxu1 }
 0x32b   : > { %v8736_v1 = vadd.f32 %v8735_v27, %v8734_v46  ;;  %v8737_v29 = vpop.f32.mrb[198].mxu1 }
 0x32c   : > { %v8738_v60 = vpop.f32.mrb[199].mxu1 }
 0x32d   : > { %v7008_v41 = vadd.f32 %v8736_v1, %v6943_v9  ;;  %v8739_v17 = vadd.f32 %v8738_v60, %v8737_v29 }
 0x32f   : > { %v7011_v35 = vadd.f32 %v8739_v17, %v6946_v18 }
 0x331   : > { %v8740_v23 = vpop.f32.mrb[200].mxu1 }
 0x332   : > { %v8741_v51 = vpop.f32.mrb[201].mxu1 }
 0x333   : > { %v8742_v44 = vadd.f32 %v8741_v51, %v8740_v23  ;;  %v8743_v25 = vpop.f32.mrb[202].mxu1 }
 0x334   : > { %v8744_v58 = vpop.f32.mrb[203].mxu1 }
 0x335   : > { %v7016_v48 = vadd.f32 %v8742_v44, %v6951_v20  ;;  %v8745_v39 = vadd.f32 %v8744_v58, %v8743_v25 }
 0x337   : > { %v7019_v40 = vadd.f32 %v8745_v39, %v6954_v4 }
 0x339   : > { %v8746_v22 = vpop.f32.mrb[204].mxu1 }
 0x33a   : > { %v8747_v62 = vpop.f32.mrb[205].mxu1 }
 0x33b   : > { %v8748_v3 = vadd.f32 %v8747_v62, %v8746_v22  ;;  %v8749_v53 = vpop.f32.mrb[206].mxu1 }
 0x33c   : > { %v8750_v37 = vpop.f32.mrb[207].mxu1 }
 0x33d   : > { %v7024_v5 = vadd.f32 %v8748_v3, %v6959_v7  ;;  %v8751_v38 = vadd.f32 %v8750_v37, %v8749_v53 }
 0x33f   : > { %v7027_v54 = vadd.f32 %v8751_v38, %v6962_v43 }
 0x341   : > { %v8768_v24 = vpop.f32.mrb[208].mxu1 }
 0x342   : > { %v8769_v9 = vpop.f32.mrb[209].mxu1 }
 0x343   : > { %v8770_v46 = vadd.f32 %v8769_v9, %v8768_v24  ;;  %v8771_v18 = vpop.f32.mrb[210].mxu1 }
 0x344   : > { %v8772_v27 = vpop.f32.mrb[211].mxu1 }
 0x345   : > { %v7065_v1 = vadd.f32 %v8770_v46, %v7000_v2  ;;  %v8773_v29 = vadd.f32 %v8772_v27, %v8771_v18 }
 0x347   : > { %v7068_v60 = vadd.f32 %v8773_v29, %v7003_v63 }
 0x349   : > { %v8774_v17 = vpop.f32.mrb[212].mxu1 }
 0x34a   : > { %v8775_v20 = vpop.f32.mrb[213].mxu1 }
 0x34b   : > { %v8776_v23 = vadd.f32 %v8775_v20, %v8774_v17  ;;  %v8777_v4 = vpop.f32.mrb[214].mxu1  ;;  %v293_v17 = vld [vmem:[%s12787_s19] sm:$0xff] }
 0x34c   : > { %v8778_v51 = vpop.f32.mrb[215].mxu1 }
 0x34d   : > { %v12771_v44 = vadd.f32 %v8776_v23, %v7008_v41  ;;  %v8779_v25 = vadd.f32 %v8778_v51, %v8777_v4  ;;  %v294_v51 = vld [vmem:[%s12787_s19 + $0x8] sm:$0xff] }
 0x34f   : > { %v12773_v7 = vadd.f32 %v8779_v25, %v7011_v35 }
 0x351   : > { %v8780_v43 = vpop.f32.mrb[216].mxu1 }
 0x352   : > { %v8781_v58 = vpop.f32.mrb[217].mxu1 }
 0x353   : > { %v8782_v39 = vadd.f32 %v8781_v58, %v8780_v43  ;;  %v8783_v22 = vpop.f32.mrb[218].mxu1 }
 0x354   : > { %v8784_v62 = vpop.f32.mrb[219].mxu1 }
 0x355   : > { %v12775_v3 = vadd.f32 %v8782_v39, %v7016_v48  ;;  %v8785_v2 = vadd.f32 %v8784_v62, %v8783_v22  ;;  %v296_v22 = vld [vmem:[%s12787_s19 + $0x18] sm:$0xff] }
 0x357   : > { %v12777_v63 = vadd.f32 %v8785_v2, %v7019_v40 }
 0x359   : > { %v8786_v53 = vpop.f32.mrb[220].mxu1 }
 0x35a   : > { %v8787_v37 = vpop.f32.mrb[221].mxu1 }
 0x35b   : > { %v8788_v38 = vadd.f32 %v8787_v37, %v8786_v53  ;;  %v8789_v24 = vpop.f32.mrb[222].mxu1  ;;  %v297_v37 = vld [vmem:[%s12787_s19 + $0x20] sm:$0xff] }
 0x35c   : > { %v8790_v41 = vpop.f32.mrb[223].mxu1 }
 0x35d   : > { %v12780_v9 = vadd.f32 %v8788_v38, %v7024_v5  ;;  %v8791_v35 = vadd.f32 %v8790_v41, %v8789_v24 }
 0x35f   : > { %v12782_v46 = vadd.f32 %v8791_v35, %v7027_v54 }
 0x361   : > { %v8808_v40 = vpop.f32.mrb[224].mxu1 }
 0x362   : > { %v6203_v48 = vpop.f32.mrb[0].mxu0  ;;  %v8809_v29 = vpop.f32.mrb[225].mxu1 }
 0x363   : > { %v8884_v18 = vadd.f32 %v6203_v48, %v11708_v12  ;;  %v6205_v27 = vpop.f32.mrb[1].mxu0  ;;  %v8810_v54 = vadd.f32 %v8809_v29, %v8808_v40  ;;  %v8811_v23 = vpop.f32.mrb[226].mxu1  ;;  %v299_v29 = vld [vmem:[%s12787_s19 + $0x30] sm:$0xff] }
 0x364   : > { %v8886_v5 = vadd.f32 %v6205_v27, %v11717_v16  ;;  %v6207_v20 = vpop.f32.mrb[2].mxu0  ;;  %v8812_v58 = vpop.f32.mrb[227].mxu1 }
 0x365   : > { %v8885_v4 = vadd.f32 %v8884_v18, %v11850_v8  ;;  %v8888_v25 = vadd.f32 %v6207_v20, %v11723_v19  ;;  %v6209_v43 = vpop.f32.mrb[3].mxu0  ;;  %v8813_v62 = vadd.f32 %v8812_v58, %v8811_v23  ;;  %v12798_v2 = vadd.f32 %v8810_v54, %v7065_v1  ;;  %v300_v20 = vld [vmem:[%s12787_s19 + $0x38] sm:$0xff] }
 0x366   : > { %v8887_v39 = vadd.f32 %v8886_v5, %v11855_v10  ;;  %v8890_v12 = vadd.f32 %v6209_v43, %v11728_v21 }
 0x367   : > { %v7225_v16 = vadd.f32 %v8885_v4, %v293_v17  ;;  %v8889_v53 = vadd.f32 %v8888_v25, %v11857_v11  ;;  %v12803_v24 = vadd.f32 %v8813_v62, %v7068_v60  ;;  %v302_v25 = vld [vmem:[%s12787_s19 + $0x48] sm:$0xff] }
 0x368   : > { %v7226_v38 = vadd.f32 %v8887_v39, %v294_v51  ;;  %v8891_v8 = vadd.f32 %v8890_v12, %v11865_v15 }
 0x369   : > { %v8294_v19 = vmul.f32 -1.442695, %v7225_v16  ;;  %v7228_v41 = vadd.f32 %v8889_v53, %v296_v22  ;;  %v8814_v21 = vpop.f32.mrb[228].mxu1  ;;  %v303_v22 = vld [vmem:[%s12787_s19 + $0x50] sm:$0xff] }
 0x36a   : > { %v8302_v35 = vmul.f32 -1.442695, %v7226_v38  ;;  %v7229_v10 = vadd.f32 %v8891_v8, %v297_v37  ;;  %v6213_v48 = vpop.f32.mrb[4].mxu0  ;;  %v8815_v11 = vpop.f32.mrb[229].mxu1 }
 0x36b   : > { %10127 = vpow2.f32 %v8294_v19  ;;  %v8295_v1 = vmul.f32 -1.442695, %v7228_v41  ;;  %v8892_v40 = vadd.f32 %v6213_v48, %v11744_v28  ;;  %v6215_v18 = vpop.f32.mrb[5].mxu0  ;;  %v8816_v60 = vadd.f32 %v8815_v11, %v8814_v21  ;;  %v8817_v5 = vpop.f32.mrb[230].mxu1 }
 0x36c   : > { %10129 = vpow2.f32 %v8302_v35  ;;  %v8303_v27 = vmul.f32 -1.442695, %v7229_v10  ;;  %v8894_v15 = vadd.f32 %v6215_v18, %v11747_v30  ;;  %v6217_v17 = vpop.f32.mrb[6].mxu0  ;;  %v8818_v28 = vpop.f32.mrb[231].mxu1  ;;  %v305_v35 = vld [vmem:[%s12787_s19 + $0x60] sm:$0xff] }
 0x36d   : > { %10131 = vpow2.f32 %v8295_v1  ;;  %v8893_v54 = vadd.f32 %v8892_v40, %v11882_v26  ;;  %v8896_v23 = vadd.f32 %v6217_v17, %v11752_v32  ;;  %v6219_v4 = vpop.f32.mrb[7].mxu0  ;;  %v8819_v58 = vadd.f32 %v8818_v28, %v8817_v5  ;;  %v306_v40 = vld [vmem:[%s12787_s19 + $0x68] sm:$0xff] }
 0x36e   : > { %10133 = vpow2.f32 %v8303_v27  ;;  %v8895_v51 = vadd.f32 %v8894_v15, %v11890_v31  ;;  %v8898_v43 = vadd.f32 %v6219_v4, %v11757_v34  ;;  %v12817_v12 = vadd.f32 %v8816_v60, %v12771_v44  ;;  %v308_v60 = vld [vmem:[%s12787_s19 + $0x78] sm:$0xff] }
 0x36f   : > { %v7231_v30 = vadd.f32 %v8893_v54, %v299_v29  ;;  %v8897_v39 = vadd.f32 %v8896_v23, %v11892_v33  ;;  %v12821_v62 = vadd.f32 %v8819_v58, %v12773_v7  ;;  %v309_v23 = vld [vmem:[%s12787_s19 + $0x80] sm:$0xff] }
 0x370   : > { %v7232_v26 = vadd.f32 %v8895_v51, %v300_v20  ;;  %v8899_v32 = vadd.f32 %v8898_v43, %v11897_v36 }
 0x371   : > { %v8296_v16 = vmul.f32 -1.442695, %v7231_v30  ;;  %v7234_v31 = vadd.f32 %v8897_v39, %v302_v25  ;;  %v8820_v38 = vpop.f32.mrb[232].mxu1 }
 0x372   : > { %v8304_v53 = vmul.f32 -1.442695, %v7232_v26  ;;  %v7235_v37 = vadd.f32 %v8899_v32, %v303_v22  ;;  %v6223_v34 = vpop.f32.mrb[8].mxu0  ;;  %v8821_v19 = vpop.f32.mrb[233].mxu1 }
 0x373   : > { %10135 = vpow2.f32 %v8296_v16  ;;  %v8297_v33 = vmul.f32 -1.442695, %v7234_v31  ;;  %v8900_v8 = vadd.f32 %v6223_v34, %v11778_v42  ;;  %v6225_v44 = vpop.f32.mrb[9].mxu0  ;;  %v8822_v7 = vadd.f32 %v8821_v19, %v8820_v38  ;;  %v8823_v48 = vpop.f32.mrb[234].mxu1 }
 0x374   : > { %10137 = vpow2.f32 %v8304_v53  ;;  %v8305_v41 = vmul.f32 -1.442695, %v7235_v37  ;;  %v8902_v36 = vadd.f32 %v6225_v44, %v11784_v45  ;;  %v6227_v10 = vpop.f32.mrb[10].mxu0  ;;  %v8824_v11 = vpop.f32.mrb[235].mxu1  ;;  %v311_v53 = vld [vmem:[%s12787_s19 + $0x90] sm:$0xff] }
 0x375   : > { %v10128_v21 = vpop.eup %10127  ;;  %10139 = vpow2.f32 %v8297_v33  ;;  %v8901_v1 = vadd.f32 %v8900_v8, %v11920_v49  ;;  %v8904_v18 = vadd.f32 %v6227_v10, %v11789_v47  ;;  %v6229_v42 = vpop.f32.mrb[11].mxu0  ;;  %v8825_v49 = vadd.f32 %v8824_v11, %v8823_v48 }
 0x376   : > { %v10130_v27 = vpop.eup %10129  ;;  %v7273_v29 = vadd.f32 1.0, %v10128_v21  ;;  %10141 = vpow2.f32 %v8305_v41  ;;  %v8903_v15 = vadd.f32 %v8902_v36, %v11925_v52  ;;  %v8906_v45 = vadd.f32 %v6229_v42, %v11797_v50  ;;  %v12936_v42 = vld [vmem:[#allocation2_spill] sm:$0xff] }
 0x377   : > { %v10132_v17 = vpop.eup %10131  ;;  %v7321_v5 = vadd.f32 1.0, %v10130_v27  ;;  %v7237_v54 = vadd.f32 %v8901_v1, %v305_v35  ;;  %v8905_v20 = vadd.f32 %v8904_v18, %v11931_v55  ;;  %v12836_v55 = vadd.f32 %v8822_v7, %v12775_v3  ;;  %v314_v7 = vld [vmem:[%s12787_s19 + $0xa8] sm:$0xff]  ;;  %v315_v1 = vld [vmem:[%s12787_s19 + $0xb0] sm:$0xff] }
 0x378   : > { %v10134_v4 = vpop.eup %10133  ;;  %10143 = vrcp.f32 %v7273_v29  ;;  %v7274_v47 = vadd.f32 1.0, %v10132_v17  ;;  %v7238_v28 = vadd.f32 %v8903_v15, %v306_v40  ;;  %v8907_v51 = vadd.f32 %v8906_v45, %v11933_v57  ;;  %v301_v17 = vld [vmem:[%s12787_s19 + $0x40] sm:$0xff] }
 0x379   : > { %10145 = vrcp.f32 %v7321_v5  ;;  %v7322_v25 = vadd.f32 1.0, %v10134_v4  ;;  %v8298_v43 = vmul.f32 -1.442695, %v7237_v54  ;;  %v7240_v52 = vadd.f32 %v8905_v20, %v308_v60  ;;  %v8826_v39 = vpop.f32.mrb[236].mxu1 }
 0x37a   : > { %10147 = vrcp.f32 %v7274_v47  ;;  %v8306_v50 = vmul.f32 -1.442695, %v7238_v28  ;;  %v7241_v58 = vadd.f32 %v8907_v51, %v309_v23  ;;  %v6233_v30 = vpop.f32.mrb[12].mxu0  ;;  %v8827_v57 = vpop.f32.mrb[237].mxu1  ;;  %v12840_v16 = vadd.f32 %v8825_v49, %v12777_v63 }
 0x37b   : > { %10149 = vrcp.f32 %v7322_v25  ;;  %v8299_v22 = vmul.f32 -1.442695, %v7240_v52  ;;  %v8908_v26 = vadd.f32 %v6233_v30, %v11812_v56  ;;  %v6235_v32 = vpop.f32.mrb[13].mxu0  ;;  %v8828_v34 = vadd.f32 %v8827_v57, %v8826_v39  ;;  %v8829_v3 = vpop.f32.mrb[238].mxu1  ;;  %v312_v56 = vld [vmem:[%s12787_s19 + $0x98] sm:$0xff] }
 0x37c   : > { %10151 = vpow2.f32 %v8298_v43  ;;  %v8307_v31 = vmul.f32 -1.442695, %v7241_v58  ;;  %v8910_v37 = vadd.f32 %v6235_v32, %v11818_v59  ;;  %v6237_v38 = vpop.f32.mrb[14].mxu0  ;;  %v8830_v63 = vpop.f32.mrb[239].mxu1 }
 0x37d   : > { %v10136_v33 = vpop.eup %10135  ;;  %10153 = vpow2.f32 %v8306_v50  ;;  %v8909_v8 = vadd.f32 %v8908_v26, %v11956_v6  ;;  %v8912_v44 = vadd.f32 %v6237_v38, %v11823_v61  ;;  %v6239_v19 = vpop.f32.mrb[15].mxu0  ;;  %v8831_v45 = vadd.f32 %v8830_v63, %v8829_v3  ;;  %v313_v26 = vld [vmem:[%s12787_s19 + $0xa0] sm:$0xff]  ;;  %v307_v38 = vld [vmem:[%s12787_s19 + $0x70] sm:$0xff] }
 0x37e   : > { %v10138_v41 = vpop.eup %10137  ;;  %v7275_v35 = vadd.f32 1.0, %v10136_v33  ;;  %10155 = vpow2.f32 %v8299_v22  ;;  %v8911_v36 = vadd.f32 %v8910_v37, %v11962_v13  ;;  %v8914_v59 = vadd.f32 %v6239_v19, %v11831_v0 }
 0x37f   : > { %v10140_v10 = vpop.eup %10139  ;;  %v7323_v48 = vadd.f32 1.0, %v10138_v41  ;;  %10157 = vpow2.f32 %v8307_v31  ;;  %v7243_v21 = vadd.f32 %v8909_v8, %v311_v53  ;;  %v8913_v6 = vadd.f32 %v8912_v44, %v11964_v14  ;;  %v295_v53 = vld [vmem:[%s12787_s19 + $0x10] sm:$0xff] }
 0x380   : > { %v10142_v40 = vpop.eup %10141  ;;  %10159 = vrcp.f32 %v7275_v35  ;;  %v7276_v61 = vadd.f32 1.0, %v10140_v10  ;;  %v7244_v18 = vadd.f32 %v8911_v36, %v312_v56  ;;  %v8915_v11 = vadd.f32 %v8914_v59, %v12936_v42  ;;  %v304_v56 = vld [vmem:[%s12787_s19 + $0x58] sm:$0xff] }
 0x381   : > { %10161 = vrcp.f32 %v7323_v48  ;;  %v7324_v27 = vadd.f32 1.0, %v10142_v40  ;;  %v8300_v13 = vmul.f32 -1.442695, %v7243_v21  ;;  %v7246_v29 = vadd.f32 %v8913_v6, %v314_v7  ;;  %v8866_v5 = vpop.f32.mrb[240].mxu1  ;;  %v316_v10 = vld [vmem:[%s12787_s19 + $0xb8] sm:$0xff]  ;;  %v7355_v40 = vld [vmem:[%s12882_s24 + $0x10] sm:$0xff] }
 0x382   : > { %v12853_v15 = vpop.eup %10143  ;;  %10163 = vrcp.f32 %v7276_v61  ;;  %v8308_v0 = vmul.f32 -1.442695, %v7244_v18  ;;  %v7247_v60 = vadd.f32 %v8915_v11, %v315_v1  ;;  %v8862_v14 = vpop.f32.mrb[16].mxu0  ;;  %v7154_v49 = vadd.f32 %v8828_v34, %v12780_v9  ;;  %v310_v11 = vld [vmem:[%s12787_s19 + $0x88] sm:$0xff] }
 0x383   : > { %v12856_v54 = vpop.eup %10145  ;;  %10165 = vrcp.f32 %v7324_v27  ;;  %v8301_v20 = vmul.f32 -1.442695, %v7246_v29  ;;  %v7203_v23 = vadd.f32 %v8862_v14, %v12817_v12  ;;  %v7194_v4 = vpop.f32.mrb[17].mxu0 }
 0x384   : > { %v7210_v47 = vpop.f32.mrb[241].mxu1  ;;  %v12860_v28 = vpop.eup %10147  ;;  %10167 = vpow2.f32 %v8300_v13  ;;  %v8309_v51 = vmul.f32 -1.442695, %v7247_v60  ;;  %v7195_v25 = vadd.f32 %v7194_v4, %v12798_v2  ;;  %v7219_v30 = vadd.f32 %v8866_v5, %v7154_v49  ;;  %v7353_v4 = vld [vmem:[%s12882_s24] sm:$0xff] }
 0x385   : > { %v8863_v43 = vpop.f32.mrb[18].mxu0  ;;  %v8867_v52 = vpop.f32.mrb[242].mxu1  ;;  %10169 = vpow2.f32 %v8308_v0  ;;  %v7233_v58 = vadd.f32 %v7203_v23, %v301_v17  ;;  %v7211_v9 = vadd.f32 %v7210_v47, %v12836_v55  ;;  %v7157_v2 = vadd.f32 %v8831_v45, %v12782_v46  ;;  %v7357_v23 = vld [vmem:[%s12882_s24 + $0x20] sm:$0xff] }
 0x386   : > { %v12863_v50 = vpop.eup %10149  ;;  %v7197_v12 = vpop.f32.mrb[19].mxu0  ;;  %10171 = vpow2.f32 %v8301_v20  ;;  %v7206_v32 = vadd.f32 %v8863_v43, %v12821_v62  ;;  %v7245_v8 = vadd.f32 %v7219_v30, %v313_v26  ;;  %v7227_v19 = vadd.f32 %v7195_v25, %v295_v53  ;;  %v7356_v43 = vld [vmem:[%s12882_s24 + $0x18] sm:$0xff] }
 0x387   : > { %v7213_v39 = vpop.f32.mrb[243].mxu1  ;;  %v10152_v22 = vpop.eup %10151  ;;  %10173 = vpow2.f32 %v8309_v51  ;;  %v7222_v3 = vadd.f32 %v8867_v52, %v7157_v2  ;;  %v7198_v44 = vadd.f32 %v7197_v12, %v12803_v24  ;;  %v7239_v35 = vadd.f32 %v7211_v9, %v307_v38  ;;  %v7359_v12 = vld [vmem:[%s12882_s24 + $0x30] sm:$0xff] }
 0x388   : > { %v10154_v57 = vpop.eup %10153  ;;  %v7277_v31 = vadd.f32 1.0, %v10152_v22  ;;  %10175 = vtanh.f32 %v7233_v58  ;;  %v7214_v63 = vadd.f32 %v7213_v39, %v12840_v16  ;;  %v7236_v7 = vadd.f32 %v7206_v32, %v304_v56  ;;  %v298_v16 = vld [vmem:[%s12787_s19 + $0x28] sm:$0xff] }
 0x389   : > { %v10156_v37 = vpop.eup %10155  ;;  %v7325_v34 = vadd.f32 1.0, %v10154_v57  ;;  %v7248_v42 = vadd.f32 %v7222_v3, %v316_v10  ;;  %v7230_v29 = vadd.f32 %v7198_v44, %v298_v16  ;;  %v7361_v58 = vmul.f32 %v12856_v54, %v7353_v4  ;;  %v7354_v3 = vld [vmem:[%s12882_s24 + $0x8] sm:$0xff] }
 0x38a   : > { %v10158_v55 = vpop.eup %10157  ;;  %10177 = vrcp.f32 %v7277_v31  ;;  %v7278_v33 = vadd.f32 1.0, %v10156_v37  ;;  %v7242_v14 = vadd.f32 %v7214_v63, %v310_v11  ;;  %v7360_v37 = vld [vmem:[%s12882_s24 + $0x38] sm:$0xff] }
 0x38b   : > { %v10160_v62 = vpop.eup %10159  ;;  %10179 = vrcp.f32 %v7325_v34  ;;  %v7326_v46 = vadd.f32 1.0, %v10158_v55  ;;  %v7358_v55 = vld [vmem:[%s12882_s24 + $0x28] sm:$0xff] }
 0x38c   : > { %v10162_v41 = vpop.eup %10161  ;;  %10181 = vrcp.f32 %v7278_v33 }
 0x38d   : > { %v10164_v36 = vpop.eup %10163  ;;  %10183 = vrcp.f32 %v7326_v46  ;;  %v7363_v60 = vmul.f32 %v10162_v41, %v7355_v40 }
 0x38e   : > { %v10166_v59 = vpop.eup %10165  ;;  %10185 = vtanh.f32 %v7245_v8 }
 0x38f   : > { %v10168_v24 = vpop.eup %10167  ;;  %10187 = vtanh.f32 %v7227_v19  ;;  %v7364_v32 = vmul.f32 %v10166_v59, %v7356_v43  ;;  %v7362_v19 = vmul.f32 %v12863_v50, %v7354_v3 }
 0x390   : > { %v10170_v48 = vpop.eup %10169  ;;  %v7279_v21 = vadd.f32 1.0, %v10168_v24  ;;  %10189 = vtanh.f32 %v7239_v35 }
 0x391   : > { %v10172_v6 = vpop.eup %10171  ;;  %v7327_v1 = vadd.f32 1.0, %v10170_v48  ;;  %10191 = vtanh.f32 %v7236_v7 }
 0x392   : > { %v10174_v61 = vpop.eup %10173  ;;  %10193 = vrcp.f32 %v7279_v21  ;;  %v7280_v18 = vadd.f32 1.0, %v10172_v6 }
 0x393   : > { %v10176_v27 = vpop.eup %10175  ;;  %10195 = vrcp.f32 %v7327_v1  ;;  %v7328_v13 = vadd.f32 1.0, %v10174_v61 }
 0x394   : > { %v10178_v0 = vpop.eup %10177  ;;  %10197 = vrcp.f32 %v7280_v18  ;;  %v7371_v45 = vmul.f32 %v10176_v27, %v10160_v62 }
 0x395   : > { %v10180_v17 = vpop.eup %10179  ;;  %10199 = vrcp.f32 %v7328_v13 }
 0x396   : > { %v10182_v5 = vpop.eup %10181  ;;  %v7379_v20 = vadd.f32 %v7371_v45, %v7363_v60  ;;  %10201 = vtanh.f32 %v7248_v42  ;;  %v7365_v25 = vmul.f32 %v10180_v17, %v7357_v23 }
 0x397   : > { %v10184_v49 = vpop.eup %10183  ;;  %10203 = vtanh.f32 %v7230_v29 }
 0x398   : > { %v10186_v47 = vpop.eup %10185  ;;  %7387 = vst [vmem:[%s12891_s26 + $0x10] sm:$0xff] %v7379_v20  ;;  %10205 = vtanh.f32 %v7379_v20  ;;  %v7366_v41 = vmul.f32 %v10184_v49, %v7358_v55 }
 0x399   : > { %v10188_v51 = vpop.eup %10187  ;;  %10207 = vtanh.f32 %v7242_v14 }
 0x39a   : > { %v10190_v52 = vpop.eup %10189  ;;  %v7369_v30 = vmul.f32 %v10188_v51, %v12853_v15 }
 0x39b   : > { %v10192_v9 = vpop.eup %10191  ;;  %v7373_v39 = vmul.f32 %v10190_v52, %v10178_v0 }
 0x39c   : > { %v10194_v22 = vpop.eup %10193  ;;  %v7377_v26 = vadd.f32 %v7369_v30, %v7361_v58  ;;  %v7372_v2 = vmul.f32 %v10192_v9, %v10164_v36 }
 0x39d   : > { %v10196_v57 = vpop.eup %10195  ;;  %v7375_v31 = vmul.f32 %v10194_v22, %v10186_v47  ;;  %v7381_v53 = vadd.f32 %v7373_v39, %v7365_v25 }
 0x39e   : > { %v10198_v34 = vpop.eup %10197  ;;  %v7367_v54 = vmul.f32 %v10196_v57, %v7359_v12  ;;  %7385 = vst [vmem:[%s12891_s26] sm:$0xff] %v7377_v26  ;;  %10209 = vtanh.f32 %v7377_v26  ;;  %v7380_v15 = vadd.f32 %v7372_v2, %v7364_v32 }
 0x39f   : > { %v10200_v38 = vpop.eup %10199  ;;  %7389 = vst [vmem:[%s12891_s26 + $0x20] sm:$0xff] %v7381_v53  ;;  %10211 = vtanh.f32 %v7381_v53 }
 0x3a0   : > { %v10202_v33 = vpop.eup %10201  ;;  %v7383_v8 = vadd.f32 %v7375_v31, %v7367_v54  ;;  %7388 = vst [vmem:[%s12891_s26 + $0x18] sm:$0xff] %v7380_v15  ;;  %10213 = vtanh.f32 %v7380_v15  ;;  %v7368_v56 = vmul.f32 %v10200_v38, %v7360_v37 }
 0x3a1   : > { %v10204_v44 = vpop.eup %10203  ;;  %v7376_v62 = vmul.f32 %v10202_v33, %v10198_v34 }
 0x3a2   : > { %v10206_v46 = vpop.eup %10205  ;;  %7391 = vst [vmem:[%s12891_s26 + $0x30] sm:$0xff] %v7383_v8  ;;  %10215 = vtanh.f32 %v7383_v8  ;;  %v7370_v63 = vmul.f32 %v10204_v44, %v12860_v28 }
 0x3a3   : > { %v10208_v35 = vpop.eup %10207  ;;  %7403 = vst [vmem:[%s12909_s29 + $0x10] sm:$0xff] %v10206_v46  ;;  %v7384_v36 = vadd.f32 %v7376_v62, %v7368_v56 }
 0x3a4   : > { %v7378_v7 = vadd.f32 %v7370_v63, %v7362_v19  ;;  %v7374_v59 = vmul.f32 %v10208_v35, %v10182_v5 }
 0x3a5   : > { %7392 = vst [vmem:[%s12891_s26 + $0x38] sm:$0xff] %v7384_v36  ;;  %10217 = vtanh.f32 %v7384_v36 }
 0x3a6   : > { %7386 = vst [vmem:[%s12891_s26 + $0x8] sm:$0xff] %v7378_v7  ;;  %10219 = vtanh.f32 %v7378_v7  ;;  %v7382_v24 = vadd.f32 %v7374_v59, %v7366_v41 }
 0x3a8   : > { %v10210_v50 = vpop.eup %10209  ;;  %7390 = vst [vmem:[%s12891_s26 + $0x28] sm:$0xff] %v7382_v24  ;;  %10221 = vtanh.f32 %v7382_v24 }
 0x3a9   : > { %v10212_v28 = vpop.eup %10211  ;;  %7401 = vst [vmem:[%s12909_s29] sm:$0xff] %v10210_v50 }
 0x3aa   : > { %v10214_v10 = vpop.eup %10213  ;;  %7405 = vst [vmem:[%s12909_s29 + $0x20] sm:$0xff] %v10212_v28 }
 0x3ab   : > { %7404 = vst [vmem:[%s12909_s29 + $0x18] sm:$0xff] %v10214_v10 }
 0x3ac   : > { %v10216_v48 = vpop.eup %10215 }
 0x3ad   : > { %7407 = vst [vmem:[%s12909_s29 + $0x30] sm:$0xff] %v10216_v48 }
 0x3af   : > { %v10218_v21 = vpop.eup %10217 }
 0x3b0   : > { %v10220_v16 = vpop.eup %10219  ;;  %7408 = vst [vmem:[%s12909_s29 + $0x38] sm:$0xff] %v10218_v21 }
 0x3b1   : > { %7402 = vst [vmem:[%s12909_s29 + $0x8] sm:$0xff] %v10220_v16 }
 0x3b2   : > { %v10222_v6 = vpop.eup %10221 }
 0x3b3   : > { %7406 = vst [vmem:[%s12909_s29 + $0x28] sm:$0xff] %v10222_v6 }
 0x3b4 PF: > { %s16_s18 = sadd.s32 1, %s10314_s18  }
 0x3b5   : > { %p13_p4 = scmp.ge.s32.totalorder %s16_s18, 4  }
 0x3b7   :  { %15 = sbr.rel (!%p13_p4) target bundleno = 1 (0x1), region = 84 }

</bundles_post_ra>
